<compile_context>
chip_gen: v7x
topology: tpu7x:2x2x1
jax: 0.10.0
libtpu: 0.0.40
codegen_flags: <defaults>
</compile_context>

<pallas_src>
import functools

import numpy as np

import jax
import jax.numpy as jnp
from jax.experimental import pallas as pl
from jax.experimental.pallas import tpu as pltpu


# ---------------------------------------------------------------------------
# Host-built (numpy) constants — baked at trace time, never an HBM pass.
# ---------------------------------------------------------------------------
def _upsample_1d_matrix_np(S):
    """(2S, S) interpolation matrix for 2x bilinear, align_corners=False
    (PyTorch nn.Upsample(scale_factor=2, mode='bilinear') semantics)."""
    i = np.arange(2 * S, dtype=np.float64)
    src = np.maximum((i + 0.5) * 0.5 - 0.5, 0.0)           # PyTorch-style clamp
    i0 = np.clip(np.floor(src).astype(np.int64), 0, S - 1)
    i1 = np.minimum(i0 + 1, S - 1)
    frac = src - i0
    m = np.zeros((2 * S, S), dtype=np.float64)
    m[np.arange(2 * S), i0] += 1.0 - frac
    m[np.arange(2 * S), i1] += frac
    return m.astype(np.float32)


def _tap_masks_np(H2, W2):
    """(9, H2*W2) masks emulating zero padding for each 3x3 tap in the
    flattened (h-major) lane layout; tap order t = kh*3 + kw, offsets (kh-1, kw-1)."""
    p = np.arange(H2 * W2)
    h, w = p // W2, p % W2
    rows = []
    for dh in (-1, 0, 1):
        for dw in (-1, 0, 1):
            ok = (h + dh >= 0) & (h + dh < H2) & (w + dw >= 0) & (w + dw < W2)
            rows.append(ok.astype(np.float32))
    return np.stack(rows, axis=0)


# ---------------------------------------------------------------------------
# Kernel
# ---------------------------------------------------------------------------
def _conv3x3_flat(a, w_ref, masks, slab_ref, W2):
    """3x3 / stride 1 / pad 1 convolution in flattened-spatial layout.

    a        : (C_in, L) f32, L = H2*W2 row-major flatten of (H2, W2)
    w_ref    : (C_out, 9*C_in) ref, column order (kh*3 + kw)*C_in + ci
    masks    : (9, L) per-tap validity masks (emulate zero padding)
    slab_ref : (9*C_in, L) VMEM scratch (operand dtype) staging the 9 taps
    returns  : (C_out, L) f32 pre-activation
    """
    C, L = a.shape
    for kh in range(3):
        for kw in range(3):
            t = kh * 3 + kw
            off = (kh - 1) * W2 + (kw - 1)
            if off == 0:
                tap = a                                     # centre tap, no mask needed
            else:
                # XLU lane rotate; wrap-around lands only on mask-zeroed lanes.
                tap = pltpu.roll(a, (-off) % L, axis=1) * masks[t:t + 1, :]
            slab_ref[t * C:(t + 1) * C, :] = tap.astype(slab_ref.dtype)
    # Single fused MXU contraction: K = 9*C, N = L (lane-dense output).
    return jnp.dot(w_ref[...], slab_ref[...], preferred_element_type=jnp.float32)


def _decoder_block_kernel(x_ref, uw_ref, uh_ref, w1_ref, w2_ref, mask_ref,
                          o_ref, slab1_ref, slab2_ref, *, C_in, H, W):
    """One image per grid step; every intermediate stays in VMEM.

    x_ref    : (1, C_in*H, W)      input image, rows = (ci, h)
    uw_ref   : (W, 2W)             1-D width upsample matrix (transposed)
    uh_ref   : (2H, H)             1-D height upsample matrix
    w1_ref   : (C_mid, 9*C_in)     conv1 weights, tap-major columns
    w2_ref   : (C_out, 9*C_mid)    conv2 weights, tap-major columns
    mask_ref : (9, 4*H*W)          per-tap boundary masks
    o_ref    : (1, C_out, 4*H*W)   flattened output image
    slab*_ref: VMEM scratch for the conv tap slabs
    """
    H2, W2 = 2 * H, 2 * W
    L = H2 * W2

    # 1) Separable bilinear 2x upsample (align_corners=False): two small contractions
    #    instead of one dense O((HW)^2) matrix.
    xw = x_ref[0]                                                      # (C_in*H, W)
    yw = jnp.dot(xw, uw_ref[...], preferred_element_type=jnp.float32)  # (C_in*H, 2W)
    yw3 = yw.reshape(C_in, H, W2).astype(uh_ref.dtype)
    uh_b = jnp.broadcast_to(uh_ref[...], (C_in, H2, H))                # tiny broadcast
    u = jnp.einsum("cih,chw->ciw", uh_b, yw3,
                   preferred_element_type=jnp.float32)                 # (C_in, 2H, 2W)
    u = u.reshape(C_in, L)                                             # lane-dense

    masks = mask_ref[...]

    # 2) ConvRelu(C_in -> C_mid)
    h1 = jnp.maximum(_conv3x3_flat(u, w1_ref, masks, slab1_ref, W2), 0.0)

    # 3) ConvRelu(C_mid -> C_out)
    y = jnp.maximum(_conv3x3_flat(h1, w2_ref, masks, slab2_ref, W2), 0.0)

    o_ref[0] = y.astype(o_ref.dtype)


# ---------------------------------------------------------------------------
# Wrapper
# ---------------------------------------------------------------------------
def decoder_se_block_v2(x, w1, w2, *, operand_dtype=None):
    """Forward pass of DecoderSEBlockV2 (Upsample 2x bilinear + 2x ConvRelu).

    x  : (N, C_in, H, W)       NCHW (PyTorch convention)
    w1 : (C_mid, C_in, 3, 3)   conv1 weight, OIHW, bias=False
    w2 : (C_out, C_mid, 3, 3)  conv2 weight, OIHW, bias=False
    operand_dtype : optional dtype for the MXU operands (e.g. jnp.bfloat16 on
      v6e/v7x).  Accumulation and all elementwise math stay f32.
    returns (N, C_out, 2H, 2W) in x.dtype
    """
    N, C_in, H, W = x.shape
    C_mid = w1.shape[0]
    C_out = w2.shape[0]
    H2, W2 = 2 * H, 2 * W
    L = H2 * W2
    odt = jnp.dtype(x.dtype if operand_dtype is None else operand_dtype)

    # Host-built constants: O(H^2 + W^2 + H*W) instead of O((H*W)^2).
    uw_t = jnp.asarray(_upsample_1d_matrix_np(W).T, dtype=odt)   # (W, 2W)
    uh = jnp.asarray(_upsample_1d_matrix_np(H), dtype=odt)       # (2H, H)
    mask9 = jnp.asarray(_tap_masks_np(H2, W2), dtype=odt)        # (9, L)

    # OIHW -> column index (kh*3 + kw)*C_in + ci  (matches the tap-slab row order).
    w1_mat = jnp.transpose(w1, (0, 2, 3, 1)).reshape(C_mid, 9 * C_in).astype(odt)
    w2_mat = jnp.transpose(w2, (0, 2, 3, 1)).reshape(C_out, 9 * C_mid).astype(odt)

    x_rows = x.reshape(N, C_in * H, W).astype(odt)   # free row-major reshape

    kernel = functools.partial(_decoder_block_kernel, C_in=C_in, H=H, W=W)
    out_flat = pl.pallas_call(
        kernel,
        out_shape=jax.ShapeDtypeStruct((N, C_out, L), x.dtype),
        grid_spec=pltpu.PrefetchScalarGridSpec(
            num_scalar_prefetch=0,
            grid=(N,),
            in_specs=[
                pl.BlockSpec((1, C_in * H, W), lambda n: (n, 0, 0)),
                # Grid-invariant operands (~40 KiB total after the separable fix;
                # pipeline_mode=pl.Buffered(1) is the lever if these ever grow).
                pl.BlockSpec((W, W2), lambda n: (0, 0)),
                pl.BlockSpec((H2, H), lambda n: (0, 0)),
                pl.BlockSpec((C_mid, 9 * C_in), lambda n: (0, 0)),
                pl.BlockSpec((C_out, 9 * C_mid), lambda n: (0, 0)),
                pl.BlockSpec((9, L), lambda n: (0, 0)),
            ],
            out_specs=pl.BlockSpec((1, C_out, L), lambda n: (n, 0, 0)),
            scratch_shapes=[
                pltpu.VMEM((9 * C_in, L), odt),    # conv1 tap slab
                pltpu.VMEM((9 * C_mid, L), odt),   # conv2 tap slab
            ],
        ),
        compiler_params=pltpu.CompilerParams(
            dimension_semantics=("parallel",)),
    )(x_rows, uw_t, uh, w1_mat, w2_mat, mask9)

    return out_flat.reshape(N, C_out, H2, W2)   # free row-major reshape


# ---------------------------------------------------------------------------
# Reference (PyTorch semantics) + self-check
# ---------------------------------------------------------------------------
def _upsample2x_bilinear_ref(x):
    """nn.Upsample(scale_factor=2, mode='bilinear') i.e. align_corners=False."""
    _, _, h_in, w_in = x.shape

    def coords(S):
        i = jnp.arange(2 * S, dtype=jnp.float32)
        src = jnp.maximum((i + 0.5) * 0.5 - 0.5, 0.0)
        i0 = jnp.clip(jnp.floor(src).astype(jnp.int32), 0, S - 1)
        i1 = jnp.minimum(i0 + 1, S - 1)
        frac = src - i0.astype(jnp.float32)
        return i0, i1, frac

    h_0, h_1, fh = coords(h_in)
    w_0, w_1, fw = coords(w_in)
    xh = (x[:, :, h_0, :] * (1.0 - fh)[None, None, :, None]
          + x[:, :, h_1, :] * fh[None, None, :, None])
    return xh[:, :, :, w_0] * (1.0 - fw) + xh[:, :, :, w_1] * fw


def _reference(x, w1, w2):
    dn = ("NCHW", "OIHW", "NCHW")
    up = _upsample2x_bilinear_ref(x)
    h = jax.nn.relu(jax.lax.conv_general_dilated(
        up, w1, (1, 1), ((1, 1), (1, 1)), dimension_numbers=dn,
        precision=jax.lax.Precision.HIGHEST))
    return jax.nn.relu(jax.lax.conv_general_dilated(
        h, w2, (1, 1), ((1, 1), (1, 1)), dimension_numbers=dn,
        precision=jax.lax.Precision.HIGHEST))


if __name__ == "__main__":
    key = jax.random.PRNGKey(0)
    kx, k1, k2 = jax.random.split(key, 3)

    # DecoderSEBlockV2(in_channels=8, middle_channels=16, out_channels=8)
    N, C_in, C_mid, C_out, H, W = 2, 8, 16, 8, 16, 16
    x = jax.random.normal(kx, (N, C_in, H, W), dtype=jnp.float32)
    w1 = 0.1 * jax.random.normal(k1, (C_mid, C_in, 3, 3), dtype=jnp.float32)
    w2 = 0.1 * jax.random.normal(k2, (C_out, C_mid, 3, 3), dtype=jnp.float32)

    fwd = jax.jit(decoder_se_block_v2)
    out = jax.block_until_ready(fwd(x, w1, w2))

    ref = _reference(x, w1, w2)
    assert out.shape == (N, C_out, 2 * H, 2 * W)
    assert bool(jnp.allclose(out, ref, atol=1e-3, rtol=1e-3))

    print("KERNEL_OK")
</pallas_src>

<mosaic_0001>
module attributes {stable_mosaic.version = 11 : i64} {
  func.func @_decoder_block_kernel(%arg0: i32, %arg1: memref<1x128x16xf32, #tpu.memory_space<vmem>>, %arg2: memref<16x32xf32, #tpu.memory_space<vmem>>, %arg3: memref<32x16xf32, #tpu.memory_space<vmem>>, %arg4: memref<16x72xf32, #tpu.memory_space<vmem>>, %arg5: memref<8x144xf32, #tpu.memory_space<vmem>>, %arg6: memref<9x1024xf32, #tpu.memory_space<vmem>>, %arg7: memref<1x8x1024xf32, #tpu.memory_space<vmem>>, %arg8: memref<72x1024xf32, #tpu.memory_space<vmem>>, %arg9: memref<144x1024xf32, #tpu.memory_space<vmem>>) attributes {dimension_semantics = [#tpu.dimension_semantics<parallel>], iteration_bounds = array<i64: 2>, scalar_prefetch = 0 : i64, scratch_operands = 2 : i64, tpu.core_type = #tpu.core_type<tc>, window_params = [{transform_indices = @transform_0, window_bounds = array<i64: 1, 128, 16>}, {pipeline_mode = #tpu.pipeline_mode<synchronous>, transform_indices = @transform_1, window_bounds = array<i64: 16, 32>}, {pipeline_mode = #tpu.pipeline_mode<synchronous>, transform_indices = @transform_2, window_bounds = array<i64: 32, 16>}, {pipeline_mode = #tpu.pipeline_mode<synchronous>, transform_indices = @transform_3, window_bounds = array<i64: 16, 72>}, {pipeline_mode = #tpu.pipeline_mode<synchronous>, transform_indices = @transform_4, window_bounds = array<i64: 8, 144>}, {pipeline_mode = #tpu.pipeline_mode<synchronous>, transform_indices = @transform_5, window_bounds = array<i64: 9, 1024>}, {transform_indices = @transform_6, window_bounds = array<i64: 1, 8, 1024>}]} {
    %c0 = arith.constant 0 : index
    %c0_0 = arith.constant 0 : index
    %c0_1 = arith.constant 0 : index
    %0 = vector.load %arg1[%c0, %c0_0, %c0_1] : memref<1x128x16xf32, #tpu.memory_space<vmem>>, vector<1x128x16xf32>
    %1 = vector.shape_cast %0 : vector<1x128x16xf32> to vector<128x16xf32>
    %c0_2 = arith.constant 0 : index
    %c0_3 = arith.constant 0 : index
    %2 = vector.load %arg2[%c0_2, %c0_3] : memref<16x32xf32, #tpu.memory_space<vmem>>, vector<16x32xf32>
    %cst = arith.constant dense<0.000000e+00> : vector<128x32xf32>
    %3 = tpu.matmul %1, %2, %cst {dimension_numbers = #tpu.dot_dimension_numbers<[1], [0], [0], [1], [0, 0, 1, 1], [], []>} : vector<128x16xf32>, vector<16x32xf32>, vector<128x32xf32> -> vector<128x32xf32>
    %4 = vector.shape_cast %3 : vector<128x32xf32> to vector<8x16x32xf32>
    %c0_4 = arith.constant 0 : index
    %c0_5 = arith.constant 0 : index
    %5 = vector.load %arg3[%c0_4, %c0_5] : memref<32x16xf32, #tpu.memory_space<vmem>>, vector<32x16xf32>
    %6 = vector.shape_cast %5 : vector<32x16xf32> to vector<1x32x16xf32>
    %7 = vector.broadcast %6 : vector<1x32x16xf32> to vector<8x32x16xf32>
    "tpu.trace_start"() <{level = 10 : i32, message = "cih,chw->ciw"}> : () -> ()
    %cst_6 = arith.constant dense<0.000000e+00> : vector<8x32x32xf32>
    %8 = tpu.matmul %7, %4, %cst_6 {dimension_numbers = #tpu.dot_dimension_numbers<[2], [1], [1], [2], [0, 0, 0, 1, 1, 2], [0], [0]>} : vector<8x32x16xf32>, vector<8x16x32xf32>, vector<8x32x32xf32> -> vector<8x32x32xf32>
    "tpu.trace_stop"() : () -> ()
    %9 = vector.shape_cast %8 : vector<8x32x32xf32> to vector<8x1024xf32>
    %c0_7 = arith.constant 0 : index
    %c0_8 = arith.constant 0 : index
    %10 = vector.load %arg6[%c0_7, %c0_8] : memref<9x1024xf32, #tpu.memory_space<vmem>>, vector<9x1024xf32>
    %c33_i32 = arith.constant 33 : i32
    %11 = tpu.dynamic_rotate %9 by %c33_i32 dim 1 : vector<8x1024xf32>, i32 -> vector<8x1024xf32>
    %12 = vector.extract_strided_slice %10 {offsets = [0, 0], sizes = [1, 1024], strides = [1, 1]} : vector<9x1024xf32> to vector<1x1024xf32>
    %13 = vector.broadcast %12 : vector<1x1024xf32> to vector<8x1024xf32>
    %14 = arith.mulf %11, %13 : vector<8x1024xf32>
    %c0_9 = arith.constant 0 : index
    %c0_10 = arith.constant 0 : index
    %15 = vector.load %arg8[%c0_9, %c0_10] : memref<72x1024xf32, #tpu.memory_space<vmem>>, vector<8x1024xf32>
    tpu.vector_store %arg8[%c0_9, %c0_10], %14 {strides = array<i32>} : memref<72x1024xf32, #tpu.memory_space<vmem>>, vector<8x1024xf32>,
    %c32_i32 = arith.constant 32 : i32
    %16 = tpu.dynamic_rotate %9 by %c32_i32 dim 1 : vector<8x1024xf32>, i32 -> vector<8x1024xf32>
    %17 = vector.extract_strided_slice %10 {offsets = [1, 0], sizes = [1, 1024], strides = [1, 1]} : vector<9x1024xf32> to vector<1x1024xf32>
    %18 = vector.broadcast %17 : vector<1x1024xf32> to vector<8x1024xf32>
    %19 = arith.mulf %16, %18 : vector<8x1024xf32>
    %c8 = arith.constant 8 : index
    %c0_11 = arith.constant 0 : index
    %20 = vector.load %arg8[%c8, %c0_11] : memref<72x1024xf32, #tpu.memory_space<vmem>>, vector<8x1024xf32>
    tpu.vector_store %arg8[%c8, %c0_11], %19 {strides = array<i32>} : memref<72x1024xf32, #tpu.memory_space<vmem>>, vector<8x1024xf32>,
    %c31_i32 = arith.constant 31 : i32
    %21 = tpu.dynamic_rotate %9 by %c31_i32 dim 1 : vector<8x1024xf32>, i32 -> vector<8x1024xf32>
    %22 = vector.extract_strided_slice %10 {offsets = [2, 0], sizes = [1, 1024], strides = [1, 1]} : vector<9x1024xf32> to vector<1x1024xf32>
    %23 = vector.broadcast %22 : vector<1x1024xf32> to vector<8x1024xf32>
    %24 = arith.mulf %21, %23 : vector<8x1024xf32>
    %c16 = arith.constant 16 : index
    %c0_12 = arith.constant 0 : index
    %25 = vector.load %arg8[%c16, %c0_12] : memref<72x1024xf32, #tpu.memory_space<vmem>>, vector<8x1024xf32>
    tpu.vector_store %arg8[%c16, %c0_12], %24 {strides = array<i32>} : memref<72x1024xf32, #tpu.memory_space<vmem>>, vector<8x1024xf32>,
    %c1_i32 = arith.constant 1 : i32
    %26 = tpu.dynamic_rotate %9 by %c1_i32 dim 1 : vector<8x1024xf32>, i32 -> vector<8x1024xf32>
    %27 = vector.extract_strided_slice %10 {offsets = [3, 0], sizes = [1, 1024], strides = [1, 1]} : vector<9x1024xf32> to vector<1x1024xf32>
    %28 = vector.broadcast %27 : vector<1x1024xf32> to vector<8x1024xf32>
    %29 = arith.mulf %26, %28 : vector<8x1024xf32>
    %c24 = arith.constant 24 : index
    %c0_13 = arith.constant 0 : index
    %30 = vector.load %arg8[%c24, %c0_13] : memref<72x1024xf32, #tpu.memory_space<vmem>>, vector<8x1024xf32>
    tpu.vector_store %arg8[%c24, %c0_13], %29 {strides = array<i32>} : memref<72x1024xf32, #tpu.memory_space<vmem>>, vector<8x1024xf32>,
    %c32 = arith.constant 32 : index
    %c0_14 = arith.constant 0 : index
    %31 = vector.load %arg8[%c32, %c0_14] : memref<72x1024xf32, #tpu.memory_space<vmem>>, vector<8x1024xf32>
    tpu.vector_store %arg8[%c32, %c0_14], %9 {strides = array<i32>} : memref<72x1024xf32, #tpu.memory_space<vmem>>, vector<8x1024xf32>,
    %c1023_i32 = arith.constant 1023 : i32
    %32 = tpu.dynamic_rotate %9 by %c1023_i32 dim 1 : vector<8x1024xf32>, i32 -> vector<8x1024xf32>
    %33 = vector.extract_strided_slice %10 {offsets = [5, 0], sizes = [1, 1024], strides = [1, 1]} : vector<9x1024xf32> to vector<1x1024xf32>
    %34 = vector.broadcast %33 : vector<1x1024xf32> to vector<8x1024xf32>
    %35 = arith.mulf %32, %34 : vector<8x1024xf32>
    %c40 = arith.constant 40 : index
    %c0_15 = arith.constant 0 : index
    %36 = vector.load %arg8[%c40, %c0_15] : memref<72x1024xf32, #tpu.memory_space<vmem>>, vector<8x1024xf32>
    tpu.vector_store %arg8[%c40, %c0_15], %35 {strides = array<i32>} : memref<72x1024xf32, #tpu.memory_space<vmem>>, vector<8x1024xf32>,
    %c993_i32 = arith.constant 993 : i32
    %37 = tpu.dynamic_rotate %9 by %c993_i32 dim 1 : vector<8x1024xf32>, i32 -> vector<8x1024xf32>
    %38 = vector.extract_strided_slice %10 {offsets = [6, 0], sizes = [1, 1024], strides = [1, 1]} : vector<9x1024xf32> to vector<1x1024xf32>
    %39 = vector.broadcast %38 : vector<1x1024xf32> to vector<8x1024xf32>
    %40 = arith.mulf %37, %39 : vector<8x1024xf32>
    %c48 = arith.constant 48 : index
    %c0_16 = arith.constant 0 : index
    %41 = vector.load %arg8[%c48, %c0_16] : memref<72x1024xf32, #tpu.memory_space<vmem>>, vector<8x1024xf32>
    tpu.vector_store %arg8[%c48, %c0_16], %40 {strides = array<i32>} : memref<72x1024xf32, #tpu.memory_space<vmem>>, vector<8x1024xf32>,
    %c992_i32 = arith.constant 992 : i32
    %42 = tpu.dynamic_rotate %9 by %c992_i32 dim 1 : vector<8x1024xf32>, i32 -> vector<8x1024xf32>
    %43 = vector.extract_strided_slice %10 {offsets = [7, 0], sizes = [1, 1024], strides = [1, 1]} : vector<9x1024xf32> to vector<1x1024xf32>
    %44 = vector.broadcast %43 : vector<1x1024xf32> to vector<8x1024xf32>
    %45 = arith.mulf %42, %44 : vector<8x1024xf32>
    %c56 = arith.constant 56 : index
    %c0_17 = arith.constant 0 : index
    %46 = vector.load %arg8[%c56, %c0_17] : memref<72x1024xf32, #tpu.memory_space<vmem>>, vector<8x1024xf32>
    tpu.vector_store %arg8[%c56, %c0_17], %45 {strides = array<i32>} : memref<72x1024xf32, #tpu.memory_space<vmem>>, vector<8x1024xf32>,
    %c991_i32 = arith.constant 991 : i32
    %47 = tpu.dynamic_rotate %9 by %c991_i32 dim 1 : vector<8x1024xf32>, i32 -> vector<8x1024xf32>
    %48 = vector.extract_strided_slice %10 {offsets = [8, 0], sizes = [1, 1024], strides = [1, 1]} : vector<9x1024xf32> to vector<1x1024xf32>
    %49 = vector.broadcast %48 : vector<1x1024xf32> to vector<8x1024xf32>
    %50 = arith.mulf %47, %49 : vector<8x1024xf32>
    %c64 = arith.constant 64 : index
    %c0_18 = arith.constant 0 : index
    %51 = vector.load %arg8[%c64, %c0_18] : memref<72x1024xf32, #tpu.memory_space<vmem>>, vector<8x1024xf32>
    tpu.vector_store %arg8[%c64, %c0_18], %50 {strides = array<i32>} : memref<72x1024xf32, #tpu.memory_space<vmem>>, vector<8x1024xf32>,
    %c0_19 = arith.constant 0 : index
    %c0_20 = arith.constant 0 : index
    %52 = vector.load %arg4[%c0_19, %c0_20] : memref<16x72xf32, #tpu.memory_space<vmem>>, vector<16x72xf32>
    %c0_21 = arith.constant 0 : index
    %c0_22 = arith.constant 0 : index
    %53 = vector.load %arg8[%c0_21, %c0_22] : memref<72x1024xf32, #tpu.memory_space<vmem>>, vector<72x1024xf32>
    %cst_23 = arith.constant dense<0.000000e+00> : vector<16x1024xf32>
    %54 = tpu.matmul %52, %53, %cst_23 {dimension_numbers = #tpu.dot_dimension_numbers<[1], [0], [0], [1], [0, 0, 1, 1], [], []>} : vector<16x72xf32>, vector<72x1024xf32>, vector<16x1024xf32> -> vector<16x1024xf32>
    %cst_24 = arith.constant 0.000000e+00 : f32
    %55 = vector.broadcast %cst_24 : f32 to vector<16x1024xf32>
    %56 = arith.maximumf %54, %55 : vector<16x1024xf32>
    %c33_i32_25 = arith.constant 33 : i32
    %57 = tpu.dynamic_rotate %56 by %c33_i32_25 dim 1 : vector<16x1024xf32>, i32 -> vector<16x1024xf32>
    %58 = vector.extract_strided_slice %10 {offsets = [0, 0], sizes = [1, 1024], strides = [1, 1]} : vector<9x1024xf32> to vector<1x1024xf32>
    %59 = vector.broadcast %58 : vector<1x1024xf32> to vector<16x1024xf32>
    %60 = arith.mulf %57, %59 : vector<16x1024xf32>
    %c0_26 = arith.constant 0 : index
    %c0_27 = arith.constant 0 : index
    %61 = vector.load %arg9[%c0_26, %c0_27] : memref<144x1024xf32, #tpu.memory_space<vmem>>, vector<16x1024xf32>
    tpu.vector_store %arg9[%c0_26, %c0_27], %60 {strides = array<i32>} : memref<144x1024xf32, #tpu.memory_space<vmem>>, vector<16x1024xf32>,
    %c32_i32_28 = arith.constant 32 : i32
    %62 = tpu.dynamic_rotate %56 by %c32_i32_28 dim 1 : vector<16x1024xf32>, i32 -> vector<16x1024xf32>
    %63 = vector.extract_strided_slice %10 {offsets = [1, 0], sizes = [1, 1024], strides = [1, 1]} : vector<9x1024xf32> to vector<1x1024xf32>
    %64 = vector.broadcast %63 : vector<1x1024xf32> to vector<16x1024xf32>
    %65 = arith.mulf %62, %64 : vector<16x1024xf32>
    %c16_29 = arith.constant 16 : index
    %c0_30 = arith.constant 0 : index
    %66 = vector.load %arg9[%c16_29, %c0_30] : memref<144x1024xf32, #tpu.memory_space<vmem>>, vector<16x1024xf32>
    tpu.vector_store %arg9[%c16_29, %c0_30], %65 {strides = array<i32>} : memref<144x1024xf32, #tpu.memory_space<vmem>>, vector<16x1024xf32>,
    %c31_i32_31 = arith.constant 31 : i32
    %67 = tpu.dynamic_rotate %56 by %c31_i32_31 dim 1 : vector<16x1024xf32>, i32 -> vector<16x1024xf32>
    %68 = vector.extract_strided_slice %10 {offsets = [2, 0], sizes = [1, 1024], strides = [1, 1]} : vector<9x1024xf32> to vector<1x1024xf32>
    %69 = vector.broadcast %68 : vector<1x1024xf32> to vector<16x1024xf32>
    %70 = arith.mulf %67, %69 : vector<16x1024xf32>
    %c32_32 = arith.constant 32 : index
    %c0_33 = arith.constant 0 : index
    %71 = vector.load %arg9[%c32_32, %c0_33] : memref<144x1024xf32, #tpu.memory_space<vmem>>, vector<16x1024xf32>
    tpu.vector_store %arg9[%c32_32, %c0_33], %70 {strides = array<i32>} : memref<144x1024xf32, #tpu.memory_space<vmem>>, vector<16x1024xf32>,
    %c1_i32_34 = arith.constant 1 : i32
    %72 = tpu.dynamic_rotate %56 by %c1_i32_34 dim 1 : vector<16x1024xf32>, i32 -> vector<16x1024xf32>
    %73 = vector.extract_strided_slice %10 {offsets = [3, 0], sizes = [1, 1024], strides = [1, 1]} : vector<9x1024xf32> to vector<1x1024xf32>
    %74 = vector.broadcast %73 : vector<1x1024xf32> to vector<16x1024xf32>
    %75 = arith.mulf %72, %74 : vector<16x1024xf32>
    %c48_35 = arith.constant 48 : index
    %c0_36 = arith.constant 0 : index
    %76 = vector.load %arg9[%c48_35, %c0_36] : memref<144x1024xf32, #tpu.memory_space<vmem>>, vector<16x1024xf32>
    tpu.vector_store %arg9[%c48_35, %c0_36], %75 {strides = array<i32>} : memref<144x1024xf32, #tpu.memory_space<vmem>>, vector<16x1024xf32>,
    %c64_37 = arith.constant 64 : index
    %c0_38 = arith.constant 0 : index
    %77 = vector.load %arg9[%c64_37, %c0_38] : memref<144x1024xf32, #tpu.memory_space<vmem>>, vector<16x1024xf32>
    tpu.vector_store %arg9[%c64_37, %c0_38], %56 {strides = array<i32>} : memref<144x1024xf32, #tpu.memory_space<vmem>>, vector<16x1024xf32>,
    %c1023_i32_39 = arith.constant 1023 : i32
    %78 = tpu.dynamic_rotate %56 by %c1023_i32_39 dim 1 : vector<16x1024xf32>, i32 -> vector<16x1024xf32>
    %79 = vector.extract_strided_slice %10 {offsets = [5, 0], sizes = [1, 1024], strides = [1, 1]} : vector<9x1024xf32> to vector<1x1024xf32>
    %80 = vector.broadcast %79 : vector<1x1024xf32> to vector<16x1024xf32>
    %81 = arith.mulf %78, %80 : vector<16x1024xf32>
    %c80 = arith.constant 80 : index
    %c0_40 = arith.constant 0 : index
    %82 = vector.load %arg9[%c80, %c0_40] : memref<144x1024xf32, #tpu.memory_space<vmem>>, vector<16x1024xf32>
    tpu.vector_store %arg9[%c80, %c0_40], %81 {strides = array<i32>} : memref<144x1024xf32, #tpu.memory_space<vmem>>, vector<16x1024xf32>,
    %c993_i32_41 = arith.constant 993 : i32
    %83 = tpu.dynamic_rotate %56 by %c993_i32_41 dim 1 : vector<16x1024xf32>, i32 -> vector<16x1024xf32>
    %84 = vector.extract_strided_slice %10 {offsets = [6, 0], sizes = [1, 1024], strides = [1, 1]} : vector<9x1024xf32> to vector<1x1024xf32>
    %85 = vector.broadcast %84 : vector<1x1024xf32> to vector<16x1024xf32>
    %86 = arith.mulf %83, %85 : vector<16x1024xf32>
    %c96 = arith.constant 96 : index
    %c0_42 = arith.constant 0 : index
    %87 = vector.load %arg9[%c96, %c0_42] : memref<144x1024xf32, #tpu.memory_space<vmem>>, vector<16x1024xf32>
    tpu.vector_store %arg9[%c96, %c0_42], %86 {strides = array<i32>} : memref<144x1024xf32, #tpu.memory_space<vmem>>, vector<16x1024xf32>,
    %c992_i32_43 = arith.constant 992 : i32
    %88 = tpu.dynamic_rotate %56 by %c992_i32_43 dim 1 : vector<16x1024xf32>, i32 -> vector<16x1024xf32>
    %89 = vector.extract_strided_slice %10 {offsets = [7, 0], sizes = [1, 1024], strides = [1, 1]} : vector<9x1024xf32> to vector<1x1024xf32>
    %90 = vector.broadcast %89 : vector<1x1024xf32> to vector<16x1024xf32>
    %91 = arith.mulf %88, %90 : vector<16x1024xf32>
    %c112 = arith.constant 112 : index
    %c0_44 = arith.constant 0 : index
    %92 = vector.load %arg9[%c112, %c0_44] : memref<144x1024xf32, #tpu.memory_space<vmem>>, vector<16x1024xf32>
    tpu.vector_store %arg9[%c112, %c0_44], %91 {strides = array<i32>} : memref<144x1024xf32, #tpu.memory_space<vmem>>, vector<16x1024xf32>,
    %c991_i32_45 = arith.constant 991 : i32
    %93 = tpu.dynamic_rotate %56 by %c991_i32_45 dim 1 : vector<16x1024xf32>, i32 -> vector<16x1024xf32>
    %94 = vector.extract_strided_slice %10 {offsets = [8, 0], sizes = [1, 1024], strides = [1, 1]} : vector<9x1024xf32> to vector<1x1024xf32>
    %95 = vector.broadcast %94 : vector<1x1024xf32> to vector<16x1024xf32>
    %96 = arith.mulf %93, %95 : vector<16x1024xf32>
    %c128 = arith.constant 128 : index
    %c0_46 = arith.constant 0 : index
    %97 = vector.load %arg9[%c128, %c0_46] : memref<144x1024xf32, #tpu.memory_space<vmem>>, vector<16x1024xf32>
    tpu.vector_store %arg9[%c128, %c0_46], %96 {strides = array<i32>} : memref<144x1024xf32, #tpu.memory_space<vmem>>, vector<16x1024xf32>,
    %c0_47 = arith.constant 0 : index
    %c0_48 = arith.constant 0 : index
    %98 = vector.load %arg5[%c0_47, %c0_48] : memref<8x144xf32, #tpu.memory_space<vmem>>, vector<8x144xf32>
    %c0_49 = arith.constant 0 : index
    %c0_50 = arith.constant 0 : index
    %99 = vector.load %arg9[%c0_49, %c0_50] : memref<144x1024xf32, #tpu.memory_space<vmem>>, vector<144x1024xf32>
    %cst_51 = arith.constant dense<0.000000e+00> : vector<8x1024xf32>
    %100 = tpu.matmul %98, %99, %cst_51 {dimension_numbers = #tpu.dot_dimension_numbers<[1], [0], [0], [1], [0, 0, 1, 1], [], []>} : vector<8x144xf32>, vector<144x1024xf32>, vector<8x1024xf32> -> vector<8x1024xf32>
    %cst_52 = arith.constant 0.000000e+00 : f32
    %101 = vector.broadcast %cst_52 : f32 to vector<8x1024xf32>
    %102 = arith.maximumf %100, %101 : vector<8x1024xf32>
    %c0_53 = arith.constant 0 : index
    %c0_54 = arith.constant 0 : index
    %c0_55 = arith.constant 0 : index
    %103 = vector.load %arg7[%c0_53, %c0_54, %c0_55] : memref<1x8x1024xf32, #tpu.memory_space<vmem>>, vector<1x8x1024xf32>
    %104 = vector.shape_cast %103 : vector<1x8x1024xf32> to vector<8x1024xf32>
    %105 = vector.shape_cast %102 : vector<8x1024xf32> to vector<1x8x1024xf32>
    tpu.vector_store %arg7[%c0_53, %c0_54, %c0_55], %105 {strides = array<i32>} : memref<1x8x1024xf32, #tpu.memory_space<vmem>>, vector<1x8x1024xf32>,
    return
  }
  func.func @transform_0(%arg0: i32) -> (i32, i32, i32) {
    %c0_i32 = arith.constant 0 : i32
    %c0_i32_0 = arith.constant 0 : i32
    %c0_i32_1 = arith.constant 0 : i32
    return %arg0, %c0_i32, %c0_i32_0 : i32, i32, i32
  }
  func.func @transform_1(%arg0: i32) -> (i32, i32) {
    %c0_i32 = arith.constant 0 : i32
    %c0_i32_0 = arith.constant 0 : i32
    %c0_i32_1 = arith.constant 0 : i32
    return %c0_i32, %c0_i32_0 : i32, i32
  }
  func.func @transform_2(%arg0: i32) -> (i32, i32) {
    %c0_i32 = arith.constant 0 : i32
    %c0_i32_0 = arith.constant 0 : i32
    %c0_i32_1 = arith.constant 0 : i32
    return %c0_i32, %c0_i32_0 : i32, i32
  }
  func.func @transform_3(%arg0: i32) -> (i32, i32) {
    %c0_i32 = arith.constant 0 : i32
    %c0_i32_0 = arith.constant 0 : i32
    %c0_i32_1 = arith.constant 0 : i32
    return %c0_i32, %c0_i32_0 : i32, i32
  }
  func.func @transform_4(%arg0: i32) -> (i32, i32) {
    %c0_i32 = arith.constant 0 : i32
    %c0_i32_0 = arith.constant 0 : i32
    %c0_i32_1 = arith.constant 0 : i32
    return %c0_i32, %c0_i32_0 : i32, i32
  }
  func.func @transform_5(%arg0: i32) -> (i32, i32) {
    %c0_i32 = arith.constant 0 : i32
    %c0_i32_0 = arith.constant 0 : i32
    %c0_i32_1 = arith.constant 0 : i32
    return %c0_i32, %c0_i32_0 : i32, i32
  }
  func.func @transform_6(%arg0: i32) -> (i32, i32, i32) {
    %c0_i32 = arith.constant 0 : i32
    %c0_i32_0 = arith.constant 0 : i32
    %c0_i32_1 = arith.constant 0 : i32
    return %arg0, %c0_i32, %c0_i32_0 : i32, i32, i32
  }
}

</mosaic_0001>

<bundles_post_ra>
// kernel: decoder_se_block_v2.1
= control target key start
LH: loop header
LB: loop body
LE: loop exit
PB: predicated region body
PF: predicated region fallthrough
CT: control target
= control target key end

     0   :  { %11 = vsyncpa [#allocation5], 0  ;;  %s7306_s0 = inlined_call_operand.vmem [shape: f32[2,128,16], index: 0, kind: input, shape index: {}]   ;;  %s7307_s1 = inlined_call_operand.hbm [shape: f32[16,32], index: 1, kind: input, shape index: {}]   ;;  %s7308_s2 = inlined_call_operand.hbm [shape: f32[32,16], index: 2, kind: input, shape index: {}]   ;;  %s7309_s3 = inlined_call_operand.vmem [shape: f32[16,72], index: 3, kind: input, shape index: {}]   ;;  %s7310_s4 = inlined_call_operand.vmem [shape: f32[8,144], index: 4, kind: input, shape index: {}]   ;;  %s7311_s5 = inlined_call_operand.vmem [shape: f32[9,1024], index: 5, kind: input, shape index: {}]   ;;  %s7312_s6 = inlined_call_operand.vmem [shape: f32[2,8,1024], index: 6, kind: output, shape index: {}]  }
   0x1   :  { %12 = vsyncpa [#allocation7], 0  ;;  %s4729_s21 = smov 0  }
   0x2 LB: > { %s4735_s22 = sadd.s32 4294967295, %s4676_s21   ;;  %p4056_p0 = scmp.ge.s32.totalorder %s4676_s21, 1  ;;  %s4676_s21 = sphi %s4729_s21, %s18_s21  }
   0x3   : > { %p180_p1 = scmp.lt.s32.totalorder %s4676_s21, 3  ;;  %s4678_s23 = smov [#allocation4]  }
   0x4   : > { %s192_s24 = sshll.u32 %s4678_s23, 4  ;;  %p7313_p3 = scmp.eq.s32.totalorder %s4735_s22, 0  ;;  %s193_s24 = int_to_ptr.vmem [resolvable:$true] %s192_s24 }
   0x5   : > { %p4739_p2 = pnand %p4056_p0, %p180_p1  ;;  %s4679_s26 = smov [#allocation6]  }
   0x6   : > { %s205_s27 = sshll.u32 %s4679_s26, 4  ;;  %s4606_s7 = scalar_lea.hbm %s7307_s1, 256  ;;  %s4752_s27 = int_to_ptr.vmem [resolvable:$true] %s205_s27 }
   0x7   : > { %s7471_s25 = scalar_select %p4739_p2, 1, 0 }
   0x8   : > { %p4565_p4 = pneg %p4739_p2  ;;  %p4607_p6 = scmp.ne.s32.totalorder %s7307_s1, %s4606_s7 }
   0x9   : > { %p4613_p10 = scmp.lt.u32.totalorder %s4606_s7, %s7307_s1 }
   0xa   : > { %p4748_p5 = pnand %p7313_p3, %p4565_p4 }
   0xc   : > { %p4608_p7 = pneg %p4748_p5 }
   0xe   : > { %p4609_p8 = pnand %p4608_p7, %p4607_p6 }
  0x10   : > { %p4610_p9 = pneg %p4609_p8 }
  0x12   : > { %p4615_p11 = pnand %p4613_p10, %p4610_p9 }
  0x14   : > { %4618 = shalt.err (!%p4615_p11)
}
  0x15   : > { %s4619_s12 = scalar_lea.vmem %s193_s24, 256  ;;  %p4627_p1 = scmp.lt.s32.totalorder %s193_s24, %s193_s24 }
  0x16   : > { %p4620_p12 = scmp.ne.s32.totalorder %s193_s24, %s4619_s12  ;;  %p4628_p4 = scmp.lt.s32.totalorder %s4619_s12, %s4619_s12 }
  0x18   : > { %p4622_p13 = pnand %p4620_p12, %p4608_p7  ;;  %p4629_p3 = por %p4628_p4, %p4627_p1 }
  0x1a   : > { %p4623_p0 = pneg %p4622_p13 }
  0x1c   : > { %p4630_p2 = pnand %p4629_p3, %p4623_p0 }
  0x1e   : > { %4633 = shalt.err (!%p4630_p2)
}
  0x1f   : > { %s4680_s13 = smov 128   ;;  %s4681_s14 = smov 8  }
  0x20   : > { %4568 = dma.hbm_to_vmem [thread:$0]  (!%p4748_p5), %s7307_s1, 256, %s193_s24, [#allocation5], %s4680_s13, %s4680_s13, %s4681_s14  }
  0x21   : > { %s4634_s19 = scalar_lea.hbm %s7308_s2, 512 }
  0x22   : > { %p4635_p6 = scmp.ne.s32.totalorder %s7308_s2, %s4634_s19  ;;  %p4641_p8 = scmp.lt.u32.totalorder %s4634_s19, %s7308_s2 }
  0x24   : > { %p4637_p2 = pnand %p4635_p6, %p4608_p7 }
  0x26   : > { %p4638_p3 = pneg %p4637_p2 }
  0x28   : > { %p4643_p9 = pnand %p4641_p8, %p4638_p3 }
  0x2a   : > { %4646 = shalt.err (!%p4643_p9)
}
  0x2b   : > { %s4647_s24 = scalar_lea.vmem %s4752_s27, 512  ;;  %p4655_p13 = scmp.lt.s32.totalorder %s4752_s27, %s4752_s27 }
  0x2c   : > { %p4648_p10 = scmp.ne.s32.totalorder %s4752_s27, %s4647_s24  ;;  %p4656_p0 = scmp.lt.s32.totalorder %s4647_s24, %s4647_s24 }
  0x2e   : > { %p4650_p11 = pnand %p4648_p10, %p4608_p7  ;;  %p4657_p1 = por %p4656_p0, %p4655_p13 }
  0x30   : > { %p4651_p12 = pneg %p4650_p11 }
  0x32   : > { %p4658_p4 = pnand %p4657_p1, %p4651_p12 }
  0x34   : > { %4661 = shalt.err (!%p4658_p4)
}
  0x35   : > { %4571 = dma.hbm_to_vmem [thread:$0]  (!%p4748_p5), %s7308_s2, 512, %s4752_s27, [#allocation7], %s4680_s13, %s4680_s13, %s4681_s14  }
  0x36   : > { %p7473_p6 = scmp.ne.s32.totalorder %s7471_s25, 0 }
  0x38   : > { %238 = sbr.rel (%p7473_p6) target bundleno = 1709 (0x6ad), region = 44 }
  0x3f   : > { %p7474_p2 = scmp.eq.s32.totalorder %s4735_s22, 0 }
  0x41   : > { %4667 = dma.done.wait (%p7474_p2), [#allocation5], 256   ;;  %p7475_p7 = pmov %p7474_p2 }
  0x42   : > { %p7476_p3 = pmov %p7474_p2 }
  0x43   : > { %4669 = vsyncadd (%p7475_p7), [#allocation5], 4294967040 }
  0x44   : > { %4671 = dma.done.wait (%p7476_p3), [#allocation7], 512   ;;  %p7477_p8 = pmov %p7474_p2 }
  0x45   : > { %p272_p9 = scmp.lt.s32.totalorder %s4735_s22, 1  ;;  %vm300_vm0 = vcmask 130048   ;;  %v298_v0 = vld [vmem:[#allocation4] sm:$0xff]  ;;  %v299_v1 = vld [vmem:[#allocation4 + $0x8] sm:$0xff]  ;;  %v4853_v19 = vld [vmem:[#allocation6] sm:$0xff]  ;;  %v1195_v56 = vlaneseq  ;;  %s4684_s9 = smov 64  }
  0x46   : > { %4673 = vsyncadd (%p7477_p8), [#allocation7], 4294966784  ;;  %v4313_v3 = vpack.c.bf16 %v299_v1, %v298_v0  ;;  %4237 = vmatprep.mubr.msk.f32.mxu1 %vm300_vm0, %v4853_v19  ;;  %v4859_v25 = vld [vmem:[#allocation6 + $0x8] sm:$0xff]  ;;  %v496_v27 = vld [vmem:[#allocation6 + $0x10] sm:$0xff]  ;;  %v4682_v54 = vmov 1983009808  }
  0x47   : > { %s7696_s22 = smov (!%p272_p9, %s4735_s22), 1  ;;  %v497_v30 = vld [vmem:[#allocation6 + $0x18] sm:$0xff]  ;;  %v1193_v55 = vunpack.c.l.s4 %v4682_v54  ;;  %v4912_v60 = vshrl.u32 %v1195_v56, 7  ;;  %s4685_s10 = smov 32   ;;  %vm1830_vm1 = vcmask 261120   ;;  %vm1834_vm2 = vcmask 785408  }
  0x48   : > { %s4137_s25 = sshll.u32 %s7696_s22, 7  ;;  %4314 = vmatprep.subr.bf16.mxu0 %v4313_v3  ;;  %s4686_s11 = smov 96   ;;  %vm1832_vm3 = vcmask 523264   ;;  %vm2541_vm12 = vcmask 588800  }
  0x49   : > { %s4819_s8 = scalar_lea.vmem %s7306_s0, %s4137_s25  ;;  %4316 = vmatpush3.bf16.msra.mxu0 %v4313_v3  ;;  %v1194_v59 = vunpack.c.0.s8 %v1193_v55  ;;  %s4687_s12 = smov 33  }
  0x4a   : > { %v282_v2 = vld [vmem:[%s4819_s8] sm:$0xff]  ;;  %v283_v4 = vld [vmem:[%s4819_s8 + $0x8] sm:$0xff]  ;;  %v284_v5 = vld [vmem:[%s4819_s8 + $0x10] sm:$0xff]  ;;  %s4688_s13 = smov 31   ;;  %s4689_s14 = smov 1  }
  0x4b   : > { %4209 = vmatprep.mubr.msk.f32.mxu0 %vm300_vm0, %v282_v2  ;;  %v285_v6 = vld [vmem:[%s4819_s8 + $0x18] sm:$0xff]  ;;  %v286_v7 = vld [vmem:[%s4819_s8 + $0x20] sm:$0xff]  ;;  %v287_v8 = vld [vmem:[%s4819_s8 + $0x28] sm:$0xff]  ;;  %s4690_s15 = smov 97   ;;  %s4691_s16 = smov 127  }
  0x4c   : > { %4210 = vmatmul.mubr.msk.f32.vlgmr.msra.gmra.mrb[0].mxu0 %vm300_vm0, %v283_v4  ;;  %v288_v9 = vld [vmem:[%s4819_s8 + $0x30] sm:$0xff]  ;;  %v289_v10 = vld [vmem:[%s4819_s8 + $0x38] sm:$0xff]  ;;  %v290_v11 = vld [vmem:[%s4819_s8 + $0x40] sm:$0xff]  ;;  %v4921_v4 = vsub.s32 %v1194_v59, %v4912_v60  ;;  %s4692_s17 = smov 95   ;;  %s4138_s20 = sshll.u32 %s7696_s22, 6 }
  0x4d   : > { %4212 = vmatprep.mubr.msk.f32.mxu0 %vm300_vm0, %v284_v5  ;;  %v291_v12 = vld [vmem:[%s4819_s8 + $0x48] sm:$0xff]  ;;  %v292_v13 = vld [vmem:[%s4819_s8 + $0x50] sm:$0xff]  ;;  %v293_v14 = vld [vmem:[%s4819_s8 + $0x58] sm:$0xff]  ;;  %s281_s29 = scalar_lea.vmem %s7312_s6, %s4138_s20 }
  0x4e   : > { %v294_v15 = vld [vmem:[%s4819_s8 + $0x60] sm:$0xff]  ;;  %v295_v16 = vld [vmem:[%s4819_s8 + $0x68] sm:$0xff]  ;;  %v296_v17 = vld [vmem:[%s4819_s8 + $0x70] sm:$0xff] }
  0x4f   : > { %v297_v18 = vld [vmem:[%s4819_s8 + $0x78] sm:$0xff] }
  0x50   : > { %4213 = vmatmul.mubr.msk.f32.gmra.mrb[2].mxu0 %vm300_vm0, %v285_v6 }
  0x51   : > { %4215 = vmatprep.mubr.msk.f32.mxu0 %vm300_vm0, %v286_v7  ;;  %v4683_v7 = vmov 1934713408  }
  0x54   : > { %4216 = vmatmul.mubr.msk.f32.gmra.mrb[4].mxu0 %vm300_vm0, %v287_v8  ;;  %v1257_v8 = vunpack.c.l.s4 %v4683_v7 }
  0x55   : > { %4218 = vmatprep.mubr.msk.f32.mxu0 %vm300_vm0, %v288_v9 }
  0x58   : > { %4219 = vmatmul.mubr.msk.f32.gmra.mrb[6].mxu0 %vm300_vm0, %v289_v10 }
  0x59   : > { %4221 = vmatprep.mubr.msk.f32.mxu0 %vm300_vm0, %v290_v11 }
  0x5c   : > { %4222 = vmatmul.mubr.msk.f32.gmra.mrb[8].mxu0 %vm300_vm0, %v291_v12 }
  0x5d   : > { %4224 = vmatprep.mubr.msk.f32.mxu0 %vm300_vm0, %v292_v13 }
  0x60   : > { %4225 = vmatmul.mubr.msk.f32.gmra.mrb[10].mxu0 %vm300_vm0, %v293_v14 }
  0x61   : > { %4227 = vmatprep.mubr.msk.f32.mxu0 %vm300_vm0, %v294_v15 }
  0x64   : > { %4228 = vmatmul.mubr.msk.f32.gmra.mrb[12].mxu0 %vm300_vm0, %v295_v16 }
  0x65   : > { %4230 = vmatprep.mubr.msk.f32.mxu0 %vm300_vm0, %v296_v17  ;;  %v1258_v17 = vunpack.c.0.s8 %v1257_v8 }
  0x67   : > { %v4966_v59 = vsub.s32 %v1258_v17, %v4912_v60 }
  0x68   : > { %4231 = vmatmul.mubr.msk.f32.gmra.mrb[14].mxu0 %vm300_vm0, %v297_v18 }
  0x69   : > { %4277 = vmatprep.mubr.msk.f32.mxu0 %vm300_vm0, %v4853_v19 }
 0x11f   : > { %v4211_v20 = vpop.f32.mrb[0].mxu0 }
 0x120   : > { %v415_v21 = vpop.f32.mrb[1].mxu0 }
 0x121   : > { %v4317_v22 = vpack.c.bf16 %v4211_v20, %v415_v21 }
 0x123   : > { %v4214_v23 = vpop.f32.mrb[2].mxu0  ;;  %4318 = vmatprep.subr.bf16.mxu1 %v4317_v22 }
 0x124   : > { %v425_v24 = vpop.f32.mrb[3].mxu0  ;;  %4320 = vmatpush3.bf16.msra.mxu1 %v4317_v22 }
 0x125   : > { %v4321_v26 = vpack.c.bf16 %v4214_v23, %v425_v24 }
 0x127   : > { %v4217_v28 = vpop.f32.mrb[4].mxu0  ;;  %4238 = vmatmul.mubr.msk.f32.vlgmr.msra.gmra.mrb[0].mxu1 %vm300_vm0, %v4859_v25  ;;  %4322 = vmatprep.subr.bf16.mxu1 %v4321_v26 }
 0x128   : > { %v435_v29 = vpop.f32.mrb[5].mxu0  ;;  %4324 = vmatpush3.bf16.msra.mxu1 %v4321_v26  ;;  %4240 = vmatprep.mubr.msk.f32.mxu1 %vm300_vm0, %v496_v27 }
 0x129   : > { %v4325_v31 = vpack.c.bf16 %v4217_v28, %v435_v29 }
 0x12b   : > { %v4220_v32 = vpop.f32.mrb[6].mxu0  ;;  %4241 = vmatmul.mubr.msk.f32.gmra.mrb[2].mxu1 %vm300_vm0, %v497_v30  ;;  %4326 = vmatprep.subr.bf16.mxu1 %v4325_v31 }
 0x12c   : > { %v445_v33 = vpop.f32.mrb[7].mxu0  ;;  %4247 = vmatprep.mubr.msk.f32.mxu1 %vm300_vm0, %v4853_v19 }
 0x12d   : > { %v4329_v34 = vpack.c.bf16 %v4220_v32, %v445_v33 }
 0x12f   : > { %v4223_v35 = vpop.f32.mrb[8].mxu0  ;;  %4248 = vmatmul.mubr.msk.f32.vlgmr.msra.gmra.mrb[4].mxu1 %vm300_vm0, %v4859_v25 }
 0x130   : > { %4328 = vmatpush3.bf16.msra.mxu1 %v4325_v31  ;;  %v455_v36 = vpop.f32.mrb[9].mxu0  ;;  %4250 = vmatprep.mubr.msk.f32.mxu1 %vm300_vm0, %v496_v27 }
 0x131   : > { %v4333_v37 = vpack.c.bf16 %v4223_v35, %v455_v36  ;;  %4330 = vmatprep.subr.bf16.mxu1 %v4329_v34 }
 0x133   : > { %4251 = vmatmul.mubr.msk.f32.gmra.mrb[6].mxu1 %vm300_vm0, %v497_v30  ;;  %4334 = vmatprep.subr.bf16.mxu0 %v4333_v37  ;;  %v4226_v38 = vpop.f32.mrb[10].mxu0 }
 0x134   : > { %4336 = vmatpush3.bf16.msra.mxu0 %v4333_v37  ;;  %4257 = vmatprep.mubr.msk.f32.mxu1 %vm300_vm0, %v4853_v19  ;;  %v465_v39 = vpop.f32.mrb[11].mxu0 }
 0x135   : > { %v4337_v40 = vpack.c.bf16 %v4226_v38, %v465_v39 }
 0x137   : > { %4258 = vmatmul.mubr.msk.f32.vlgmr.msra.gmra.mrb[8].mxu1 %vm300_vm0, %v4859_v25  ;;  %v4229_v41 = vpop.f32.mrb[12].mxu0  ;;  %4278 = vmatmul.mubr.msk.f32.vlgmr.msra.gmra.mrb[16].mxu0 %vm300_vm0, %v4859_v25 }
 0x138   : > { %4332 = vmatpush3.bf16.msra.mxu1 %v4329_v34  ;;  %4260 = vmatprep.mubr.msk.f32.mxu1 %vm300_vm0, %v496_v27  ;;  %v475_v42 = vpop.f32.mrb[13].mxu0 }
 0x139   : > { %4338 = vmatprep.subr.bf16.mxu1 %v4337_v40  ;;  %v4341_v43 = vpack.c.bf16 %v4229_v41, %v475_v42  ;;  %4280 = vmatprep.mubr.msk.f32.mxu0 %vm300_vm0, %v496_v27 }
 0x13b   : > { %4261 = vmatmul.mubr.msk.f32.gmra.mrb[10].mxu1 %vm300_vm0, %v497_v30  ;;  %v4232_v44 = vpop.f32.mrb[14].mxu0  ;;  %4281 = vmatmul.mubr.msk.f32.gmra.mrb[18].mxu0 %vm300_vm0, %v497_v30 }
 0x13c   : > { %4267 = vmatprep.mubr.msk.f32.mxu1 %vm300_vm0, %v4853_v19  ;;  %v485_v45 = vpop.f32.mrb[15].mxu0  ;;  %4342 = vmatprep.subr.bf16.mxu0 %v4341_v43 }
 0x13d   : > { %v4345_v46 = vpack.c.bf16 %v4232_v44, %v485_v45  ;;  %4344 = vmatpush3.bf16.msra.mxu0 %v4341_v43  ;;  %4297 = vmatprep.mubr.msk.f32.mxu0 %vm300_vm0, %v4853_v19 }
 0x13f   : > { %4268 = vmatmul.mubr.msk.f32.vlgmr.msra.gmra.mrb[12].mxu1 %vm300_vm0, %v4859_v25 }
 0x140   : > { %4270 = vmatprep.mubr.msk.f32.mxu1 %vm300_vm0, %v496_v27  ;;  %4340 = vmatpush3.bf16.msra.mxu1 %v4337_v40 }
 0x141   : > { %4346 = vmatprep.subr.bf16.mxu1 %v4345_v46  ;;  %4298 = vmatmul.mubr.msk.f32.vlgmr.msra.gmra.mrb[20].mxu0 %vm300_vm0, %v4859_v25 }
 0x142   : > { %4300 = vmatprep.mubr.msk.f32.mxu0 %vm300_vm0, %v496_v27 }
 0x143   : > { %4271 = vmatmul.mubr.msk.f32.gmra.mrb[14].mxu1 %vm300_vm0, %v497_v30 }
 0x144   : > { %4287 = vmatprep.mubr.msk.f32.mxu1 %vm300_vm0, %v4853_v19 }
 0x145   : > { %4301 = vmatmul.mubr.msk.f32.gmra.mrb[22].mxu0 %vm300_vm0, %v497_v30 }
 0x147   : > { %4288 = vmatmul.mubr.msk.f32.vlgmr.msra.gmra.mrb[16].mxu1 %vm300_vm0, %v4859_v25 }
 0x148   : > { %4290 = vmatprep.mubr.msk.f32.mxu1 %vm300_vm0, %v496_v27  ;;  %4348 = vmatpush3.bf16.msra.mxu1 %v4345_v46 }
 0x14b   : > { %4291 = vmatmul.mubr.msk.f32.gmra.mrb[18].mxu1 %vm300_vm0, %v497_v30 }
 0x14c   : > { %4307 = vmatprep.mubr.msk.f32.mxu1 %vm300_vm0, %v4853_v19 }
 0x14f   : > { %4308 = vmatmul.mubr.msk.f32.vlgmr.msra.gmra.mrb[20].mxu1 %vm300_vm0, %v4859_v25 }
 0x150   : > { %4310 = vmatprep.mubr.msk.f32.mxu1 %vm300_vm0, %v496_v27 }
 0x153   : > { %4311 = vmatmul.mubr.msk.f32.gmra.mrb[22].mxu1 %vm300_vm0, %v497_v30 }
 0x1fa   : > { %v4905_v47 = vpop.f32.mrb[0].mxu1 }
 0x1fb   : > { %v576_v48 = vpop.f32.mrb[1].mxu1 }
 0x1fe   : > { %v4242_v49 = vpop.f32.mrb[2].mxu1 }
 0x1ff   : > { %v4907_v50 = vpop.f32.mrb[3].mxu1 }
 0x202   : > { %v4249_v51 = vpop.f32.mrb[4].mxu1 }
 0x203   : > { %v661_v52 = vpop.f32.mrb[5].mxu1 }
 0x206   : > { %v4252_v53 = vpop.f32.mrb[6].mxu1 }
 0x207   : > { %v4909_v57 = vpop.f32.mrb[7].mxu1 }
 0x20a   : > { %v4259_v58 = vpop.f32.mrb[8].mxu1  ;;  %v4914_v61 = vpop.f32.mrb[16].mxu0 }
 0x20b   : > { %v1326_v62 = vcombine.low %v4905_v47, %v4259_v58  ;;  %v1327_v63 = vcombine.high %v4905_v47, %v4259_v58  ;;  %v746_v0 = vpop.f32.mrb[9].mxu1  ;;  %v4918_v1 = vpop.f32.mrb[17].mxu0 }
 0x20c   : > { %v1190_v2 = vcombine.low %v576_v48, %v746_v0  ;;  %v1191_v3 = vcombine.high %v576_v48, %v746_v0 }
 0x20d   : > { %v4930_v15 = vrot.slane %v1327_v63, %v4921_v4 }
 0x20e   : > { %v4262_v5 = vpop.f32.mrb[10].mxu1  ;;  %v4923_v6 = vpop.f32.mrb[18].mxu0  ;;  %v4933_v18 = vrot.slane %v1190_v2, %v4921_v4  ;;  %v4936_v19 = vrot.slane %v1191_v3, %v4921_v4 }
 0x20f   : > { %v1598_v9 = vcombine.low %v4242_v49, %v4262_v5  ;;  %v1599_v10 = vcombine.high %v4242_v49, %v4262_v5  ;;  %v756_v11 = vpop.f32.mrb[11].mxu1  ;;  %v4925_v12 = vpop.f32.mrb[19].mxu0 }
 0x210   : > { %v1462_v13 = vcombine.low %v4907_v50, %v756_v11  ;;  %v1463_v14 = vcombine.high %v4907_v50, %v756_v11 }
 0x211   : > { %v4939_v23 = vrot.slane %v1598_v9, %v4921_v4  ;;  %v4942_v24 = vrot.slane %v1599_v10, %v4921_v4 }
 0x212   : > { %v4269_v16 = vpop.f32.mrb[12].mxu1  ;;  %v1470_v54 = vrot.slane %v1462_v13, %v4921_v4  ;;  %v1477_v55 = vrot.slane %v1463_v14, %v4921_v4 }
 0x213   : > { %v1342_v20 = vcombine.low %v4249_v51, %v4269_v16  ;;  %v1343_v21 = vcombine.high %v4249_v51, %v4269_v16  ;;  %v831_v22 = vpop.f32.mrb[13].mxu1 }
 0x214   : > { %v1206_v25 = vcombine.low %v661_v52, %v831_v22  ;;  %v1207_v26 = vcombine.high %v661_v52, %v831_v22  ;;  %v4299_v27 = vpop.f32.mrb[20].mxu0 }
 0x215   : > { %v1350_v28 = vrot.slane %v1342_v20, %v4921_v4  ;;  %v1357_v29 = vrot.slane %v1343_v21, %v4921_v4  ;;  %v1358_v30 = vcombine.low %v4914_v61, %v4299_v27  ;;  %v1359_v31 = vcombine.high %v4914_v61, %v4299_v27  ;;  %v1086_v32 = vpop.f32.mrb[21].mxu0 }
 0x216   : > { %v1214_v33 = vrot.slane %v1206_v25, %v4921_v4  ;;  %v1221_v34 = vrot.slane %v1207_v26, %v4921_v4  ;;  %v4272_v35 = vpop.f32.mrb[14].mxu1  ;;  %v1222_v36 = vcombine.low %v4918_v1, %v1086_v32  ;;  %v1223_v37 = vcombine.high %v4918_v1, %v1086_v32 }
 0x217   : > { %v1406_v38 = vcombine.low %v4930_v15, %v1357_v29  ;;  %v1407_v39 = vcombine.high %v4930_v15, %v1357_v29  ;;  %v1614_v40 = vcombine.low %v4252_v53, %v4272_v35  ;;  %v1615_v41 = vcombine.high %v4252_v53, %v4272_v35  ;;  %v841_v42 = vpop.f32.mrb[15].mxu1 }
 0x218   : > { %v1254_v43 = vcombine.low %v4933_v18, %v1214_v33  ;;  %v1255_v44 = vcombine.high %v4933_v18, %v1214_v33  ;;  %v1270_v45 = vcombine.low %v4936_v19, %v1221_v34  ;;  %v1271_v46 = vcombine.high %v4936_v19, %v1221_v34  ;;  %v4302_v47 = vpop.f32.mrb[22].mxu0 }
 0x219   : > { %v1622_v48 = vrot.slane %v1614_v40, %v4921_v4  ;;  %v1629_v49 = vrot.slane %v1615_v41, %v4921_v4  ;;  %v1478_v50 = vcombine.low %v4909_v57, %v841_v42  ;;  %v1479_v51 = vcombine.high %v4909_v57, %v841_v42  ;;  %v1096_v52 = vpop.f32.mrb[23].mxu0 }
 0x21a   : > { %v1334_v53 = vrot.slane %v1326_v62, %v4921_v4  ;;  %v4289_v58 = vpop.f32.mrb[16].mxu1  ;;  %v1630_v3 = vcombine.low %v4923_v6, %v4302_v47  ;;  %v1631_v5 = vcombine.high %v4923_v6, %v4302_v47  ;;  %v1494_v7 = vcombine.low %v4925_v12, %v1096_v52 }
 0x21b   : > { %v1662_v61 = vcombine.low %v4939_v23, %v1622_v48  ;;  %v1663_v63 = vcombine.high %v4939_v23, %v1622_v48  ;;  %v1678_v0 = vcombine.low %v4942_v24, %v1629_v49  ;;  %v1679_v1 = vcombine.high %v4942_v24, %v1629_v49  ;;  %v1001_v57 = vpop.f32.mrb[17].mxu1 }
 0x21c   : > { %v1486_v2 = vrot.slane %v1478_v50, %v4921_v4  ;;  %v1493_v62 = vrot.slane %v1479_v51, %v4921_v4  ;;  %v1495_v8 = vcombine.high %v4925_v12, %v1096_v52  ;;  %v1391_v9 = vcombine.high %v1334_v53, %v1350_v28 }
 0x21d   : > { %v1390_v10 = vcombine.low %v1334_v53, %v1350_v28  ;;  %v1366_v18 = vrot.slane %v1358_v30, %v4921_v4  ;;  %v1373_v19 = vrot.slane %v1359_v31, %v4921_v4  ;;  %v4981_v20 = vrot.slane %v1222_v36, %v4921_v4 }
 0x21e   : > { %v1526_v11 = vcombine.low %v1470_v54, %v1486_v2  ;;  %v1527_v13 = vcombine.high %v1470_v54, %v1486_v2  ;;  %v1542_v14 = vcombine.low %v1477_v55, %v1493_v62  ;;  %v1543_v15 = vcombine.high %v1477_v55, %v1493_v62  ;;  %v4292_v16 = vpop.f32.mrb[18].mxu1 }
 0x21f   : > { %v1011_v17 = vpop.f32.mrb[19].mxu1  ;;  %v4984_v6 = vrot.slane %v1223_v37, %v4921_v4  ;;  %v4987_v12 = vrot.slane %v1630_v3, %v4921_v4  ;;  %v4990_v21 = vrot.slane %v1631_v5, %v4921_v4  ;;  %v4993_v22 = vrot.slane %v1494_v7, %v4921_v4 }
 0x220   : > { %v4996_v23 = vrot.slane %v1495_v8, %v4921_v4  ;;  %v4999_v24 = vrot.slane %v1391_v9, %v4966_v59  ;;  %v5002_v25 = vrot.slane %v1390_v10, %v4966_v59  ;;  %v5005_v26 = vrot.slane %v1407_v39, %v4966_v59 }
 0x221   : > { %v5008_v27 = vrot.slane %v1406_v38, %v4966_v59  ;;  %v5011_v29 = vrot.slane %v1270_v45, %v4966_v59  ;;  %v5014_v30 = vrot.slane %v1271_v46, %v4966_v59  ;;  %v5017_v31 = vrot.slane %v1255_v44, %v4966_v59 }
 0x222   : > { %v4309_v28 = vpop.f32.mrb[20].mxu1  ;;  %v5020_v32 = vrot.slane %v1254_v43, %v4966_v59  ;;  %v5023_v36 = vrot.slane %v1678_v0, %v4966_v59  ;;  %v5026_v37 = vrot.slane %v1679_v1, %v4966_v59  ;;  %v5029_v40 = vrot.slane %v1663_v63, %v4966_v59 }
 0x223   : > { %v1374_v33 = vcombine.low %v4289_v58, %v4309_v28  ;;  %v1375_v34 = vcombine.high %v4289_v58, %v4309_v28  ;;  %v1171_v35 = vpop.f32.mrb[21].mxu1  ;;  %v5032_v41 = vrot.slane %v1662_v61, %v4966_v59  ;;  %v5036_v43 = vrot.slane %v1526_v11, %v4966_v59 }
 0x224   : > { %v1238_v38 = vcombine.low %v1001_v57, %v1171_v35  ;;  %v1239_v39 = vcombine.high %v1001_v57, %v1171_v35  ;;  %v5039_v44 = vrot.slane %v1527_v13, %v4966_v59  ;;  %v5042_v45 = vrot.slane %v1542_v14, %v4966_v59 }
 0x225   : > { %v1389_v42 = vrot.slane %v1375_v34, %v4921_v4  ;;  %v1382_v46 = vrot.slane %v1374_v33, %v4921_v4  ;;  %v5048_v50 = vrot.slane %v1543_v15, %v4966_v59 }
 0x226   : > { %v1246_v47 = vrot.slane %v1238_v38, %v4921_v4  ;;  %v1253_v48 = vrot.slane %v1239_v39, %v4921_v4  ;;  %v4312_v49 = vpop.f32.mrb[22].mxu1 }
 0x227   : > { %v1438_v51 = vcombine.low %v1373_v19, %v1389_v42  ;;  %v1439_v52 = vcombine.high %v1373_v19, %v1389_v42  ;;  %v1646_v53 = vcombine.low %v4292_v16, %v4312_v49  ;;  %v1647_v54 = vcombine.high %v4292_v16, %v4312_v49  ;;  %v1181_v55 = vpop.f32.mrb[23].mxu1 }
 0x228   : > { %v1286_v58 = vcombine.low %v4981_v20, %v1246_v47  ;;  %v1287_v61 = vcombine.high %v4981_v20, %v1246_v47  ;;  %v1302_v63 = vcombine.low %v4984_v6, %v1253_v48  ;;  %v1303_v0 = vcombine.high %v4984_v6, %v1253_v48 }
 0x229   : > { %v1654_v1 = vrot.slane %v1646_v53, %v4921_v4  ;;  %v1661_v57 = vrot.slane %v1647_v54, %v4921_v4  ;;  %v1510_v2 = vcombine.low %v1011_v17, %v1181_v55  ;;  %v1511_v62 = vcombine.high %v1011_v17, %v1181_v55 }
 0x22a   : > { %v1423_v3 = vcombine.high %v1366_v18, %v1382_v46  ;;  %v1422_v5 = vcombine.low %v1366_v18, %v1382_v46  ;;  %v5057_v7 = vrot.slane %v1439_v52, %v4966_v59  ;;  %v5060_v8 = vrot.slane %v1438_v51, %v4966_v59 }
 0x22b   : > { %v1694_v9 = vcombine.low %v4987_v12, %v1654_v1  ;;  %v1695_v10 = vcombine.high %v4987_v12, %v1654_v1  ;;  %v1710_v11 = vcombine.low %v4990_v21, %v1661_v57  ;;  %v1711_v13 = vcombine.high %v4990_v21, %v1661_v57 }
 0x22c   : > { %v1518_v14 = vrot.slane %v1510_v2, %v4921_v4  ;;  %v1525_v15 = vrot.slane %v1511_v62, %v4921_v4  ;;  %v1437_v16 = vrot.slane %v1423_v3, %v4966_v59  ;;  %v5070_v17 = vrot.slane %v1422_v5, %v4966_v59 }
 0x22d   : > { %v1461_v18 = vcombine.high %v5005_v26, %v5057_v7  ;;  %v1459_v19 = vcombine.high %v5008_v27, %v5060_v8  ;;  %v1460_v20 = vcombine.low %v5005_v26, %v5057_v7  ;;  %v5079_v6 = vrot.slane %v1302_v63, %v4966_v59 }
 0x22e   : > { %v1558_v12 = vcombine.low %v4993_v22, %v1518_v14  ;;  %v1559_v4 = vcombine.high %v4993_v22, %v1518_v14  ;;  %v1574_v21 = vcombine.low %v4996_v23, %v1525_v15  ;;  %v1575_v28 = vcombine.high %v4996_v23, %v1525_v15 }
 0x22f   : > { %v1456_v33 = vcombine.low %v4999_v24, %v1437_v16  ;;  %v1455_v34 = vcombine.high %v5002_v25, %v5070_v17  ;;  %v1454_v35 = vcombine.low %v5002_v25, %v5070_v17  ;;  %v1323_v26 = vcombine.high %v5011_v29, %v5079_v6 }
 0x230   : > { %v1457_v38 = vcombine.high %v4999_v24, %v1437_v16  ;;  %v1317_v39 = vrot.slane %v1303_v0, %v4966_v59  ;;  %v1301_v22 = vrot.slane %v1287_v61, %v4966_v59  ;;  %v5096_v42 = vrot.slane %v1286_v58, %v4966_v59 }
 0x231   : > { %1763 = vrot.lane.b32.xlu1 %v1456_v33, %s4684_s9  ;;  %1759 = vrot.lane.b32.xlu0 %v1455_v34, %s4685_s10  ;;  %v5101_v23 = vrot.slane %v1710_v11, %v4966_v59  ;;  %v1725_v46 = vrot.slane %v1711_v13, %v4966_v59  ;;  %v1709_v24 = vrot.slane %v1695_v10, %v4966_v59 }
 0x232   : > { %v1324_v47 = vcombine.low %v5014_v30, %v1317_v39  ;;  %v1325_v48 = vcombine.high %v5014_v30, %v1317_v39  ;;  %v1320_v49 = vcombine.low %v5017_v31, %v1301_v22  ;;  %v1319_v51 = vcombine.high %v5020_v32, %v5096_v42 }
 0x233   : > { %v1731_v52 = vcombine.high %v5023_v36, %v5101_v23  ;;  %v1321_v53 = vcombine.high %v5017_v31, %v1301_v22  ;;  %v1732_v54 = vcombine.low %v5026_v37, %v1725_v46  ;;  %v1729_v55 = vcombine.high %v5029_v40, %v1709_v24 }
 0x234   : > { %v5116_v58 = vrot.slane %v1694_v9, %v4966_v59  ;;  %v1728_v61 = vcombine.low %v5029_v40, %v1709_v24  ;;  %v5120_v30 = vrot.slane %v1558_v12, %v4966_v59  ;;  %v1733_v63 = vcombine.high %v5026_v37, %v1725_v46 }
 0x235   : > { %1779 = vrot.lane.b32.xlu1 %v1461_v18, %s4686_s11  ;;  %1771 = vrot.lane.b32.xlu0 %v1459_v19, %s4685_s10  ;;  %v1573_v31 = vrot.slane %v1559_v4, %v4966_v59  ;;  %v5127_v0 = vrot.slane %v1574_v21, %v4966_v59  ;;  %v1589_v1 = vrot.slane %v1575_v28, %v4966_v59 }
 0x236   : > { %v1727_v40 = vcombine.high %v5032_v41, %v5116_v58  ;;  %v1591_v57 = vcombine.high %v5036_v43, %v5120_v30  ;;  %v1458_v37 = vcombine.low %v5008_v27, %v5060_v8  ;;  %v1322_v2 = vcombine.low %v5011_v29, %v5079_v6 }
 0x237   : > { %v1593_v62 = vcombine.high %v5039_v44, %v1573_v31  ;;  %v1592_v3 = vcombine.low %v5039_v44, %v1573_v31  ;;  %v1595_v5 = vcombine.high %v5042_v45, %v5127_v0  ;;  %v1596_v59 = vcombine.low %v5048_v50, %v1589_v1 }
 0x238   : > { %v1597_v7 = vcombine.high %v5048_v50, %v1589_v1  ;;  %v1318_v9 = vcombine.low %v5020_v32, %v5096_v42  ;;  %v1730_v27 = vcombine.low %v5023_v36, %v5101_v23  ;;  %v1726_v8 = vcombine.low %v5032_v41, %v5116_v58 }
 0x239   : > { %1775 = vrot.lane.b32.xlu0 %v1460_v20, %s4684_s9  ;;  %1747 = vrot.lane.b32.xlu1 %v1323_v26, %s4685_s10  ;;  %v1590_v44 = vcombine.low %v5036_v43, %v5120_v30  ;;  %v1594_v10 = vcombine.low %v5042_v45, %v5127_v0  ;;  %v7315_v36 = vmov 0.0   ;;  %v5352_v23 = vand.u32 127, %v1195_v56 }
 0x23a   : > { %2689 = vmatprep.mubr.f32.mxu1 %v7315_v36  ;;  %2612 = vmatprep.mubr.f32.mxu0 %v7315_v36 }
 0x23b   : > { %vm1891_vm4 = vcmp.lt.s32.totalorder %v5352_v23, 33  ;;  %vm1964_vm5 = vcmp.lt.s32.totalorder %v5352_v23, 32  ;;  %vm2110_vm6 = vcmp.lt.s32.totalorder %v5352_v23, 1  ;;  %vm2037_vm7 = vcmp.lt.s32.totalorder %v5352_v23, 31 }
 0x23c   : > { %vm2191_vm8 = vcmp.lt.s32.totalorder %v5352_v23, 127  ;;  %vm2337_vm9 = vcmp.lt.s32.totalorder %v5352_v23, 96  ;;  %vm2264_vm10 = vcmp.lt.s32.totalorder %v5352_v23, 97  ;;  %vm2410_vm11 = vcmp.lt.s32.totalorder %v5352_v23, 95 }
 0x23d   : > { %1767 = vrot.lane.b32.xlu0 %v1457_v38, %s4686_s11  ;;  %1751 = vrot.lane.b32.xlu1 %v1324_v47, %s4684_s9 }
 0x241   : > { %1755 = vrot.lane.b32.xlu0 %v1325_v48, %s4686_s11  ;;  %1739 = vrot.lane.b32.xlu1 %v1320_v49, %s4684_s9 }
 0x245   : > { %1735 = vrot.lane.b32.xlu0 %v1319_v51, %s4685_s10  ;;  %1819 = vrot.lane.b32.xlu1 %v1731_v52, %s4685_s10 }
 0x249   : > { %1743 = vrot.lane.b32.xlu0 %v1321_v53, %s4686_s11  ;;  %1823 = vrot.lane.b32.xlu1 %v1732_v54, %s4684_s9 }
 0x24d   : > { %1815 = vrot.lane.b32.xlu1 %v1729_v55, %s4686_s11  ;;  %1807 = vrot.lane.b32.xlu0 %v1727_v40, %s4685_s10 }
 0x251   : > { %1811 = vrot.lane.b32.xlu0 %v1728_v61, %s4684_s9  ;;  %1783 = vrot.lane.b32.xlu1 %v1591_v57, %s4685_s10 }
 0x255   : > { %1827 = vrot.lane.b32.xlu0 %v1733_v63, %s4686_s11  ;;  %1791 = vrot.lane.b32.xlu1 %v1593_v62, %s4686_s11  ;;  %v5362_v62 = vsub.s32 1, %v4912_v60 }
 0x259   : > { %1787 = vrot.lane.b32.xlu0 %v1592_v3, %s4684_s9  ;;  %1795 = vrot.lane.b32.xlu1 %v1595_v5, %s4685_s10  ;;  %v5369_v3 = vld [vmem:[%s7311_s5 + $0x18] sm:$0xff] }
 0x25d   : > { %1799 = vrot.lane.b32.xlu0 %v1596_v59, %s4684_s9  ;;  %1803 = vrot.lane.b32.xlu1 %v1597_v7, %s4686_s11  ;;  %v5383_v7 = vrot.slane %v5369_v3, %v5362_v62 }
 0x25f   : > { %7478 = vst [vmem:[#allocation10_spill] sm:$0xff] %v5383_v7 }
 0x2a3   : > { %v1764_v50 = vpop.permute.xlu1 %1763  ;;  %v1760_v11 = vpop.permute.xlu0 %1759 }
 0x2a4   : > { %v1839_v19 = vsel %vm1830_vm1, %v1454_v35, %v1760_v11 }
 0x2a5   : > { %v1840_v21 = vsel %vm1832_vm3, %v1839_v19, %v1764_v50 }
 0x2a7   : > { %v1780_v13 = vpop.permute.xlu1 %1779  ;;  %v1772_v14 = vpop.permute.xlu0 %1771 }
 0x2a8   : > { %v1842_v15 = vsel %vm1830_vm1, %v1458_v37, %v1772_v14 }
 0x2ab   : > { %v1776_v16 = vpop.permute.xlu0 %1775  ;;  %v1748_v18 = vpop.permute.xlu1 %1747 }
 0x2ac   : > { %v1843_v20 = vsel %vm1832_vm3, %v1842_v15, %v1776_v16  ;;  %v1836_v51 = vsel %vm1830_vm1, %v1322_v2, %v1748_v18  ;;  %v5359_v2 = vsub.s32 0, %v4912_v60 }
 0x2ad   : > { %v5181_v12 = vsel %vm1834_vm2, %v1843_v20, %v1780_v13 }
 0x2ae   : > { %1879 = vrot.lane.b32.xlu1 %v5181_v12, %s4687_s12  ;;  %v5376_v59 = vrot.slane %v5369_v3, %v5359_v2 }
 0x2af   : > { %v1768_v4 = vpop.permute.xlu0 %1767  ;;  %v1752_v28 = vpop.permute.xlu1 %1751 }
 0x2b0   : > { %v5187_v33 = vsel %vm1834_vm2, %v1840_v21, %v1768_v4  ;;  %v1837_v43 = vsel %vm1832_vm3, %v1836_v51, %v1752_v28 }
 0x2b1   : > { %1877 = vrot.lane.b32.xlu0 %v5187_v33, %s4687_s12 }
 0x2b2   : > { %1954 = vrot.lane.b32.xlu1 %v5181_v12, %s4685_s10 }
 0x2b3   : > { %v1756_v25 = vpop.permute.xlu0 %1755  ;;  %v1740_v17 = vpop.permute.xlu1 %1739 }
 0x2b4   : > { %v5227_v54 = vsel %vm1834_vm2, %v1837_v43, %v1756_v25  ;;  %v5420_v25 = vsub.s32 3, %v4912_v60 }
 0x2b5   : > { %1952 = vrot.lane.b32.xlu0 %v5187_v33, %s4685_s10 }
 0x2b6   : > { %2027 = vrot.lane.b32.xlu1 %v5181_v12, %s4688_s13 }
 0x2b7   : > { %v1736_v34 = vpop.permute.xlu0 %1735  ;;  %v1820_v35 = vpop.permute.xlu1 %1819 }
 0x2b8   : > { %v1831_v63 = vsel %vm1830_vm1, %v1318_v9, %v1736_v34  ;;  %v1854_v42 = vsel %vm1830_vm1, %v1730_v27, %v1820_v35 }
 0x2b9   : > { %2025 = vrot.lane.b32.xlu0 %v5187_v33, %s4688_s13  ;;  %v1833_v0 = vsel %vm1832_vm3, %v1831_v63, %v1740_v17  ;;  %v5423_v17 = vsub.s32 2, %v4912_v60 }
 0x2ba   : > { %2100 = vrot.lane.b32.xlu1 %v5181_v12, %s4689_s14 }
 0x2bb   : > { %v1744_v26 = vpop.permute.xlu0 %1743  ;;  %v1824_v38 = vpop.permute.xlu1 %1823 }
 0x2bc   : > { %v5255_v1 = vsel %vm1834_vm2, %v1833_v0, %v1744_v26  ;;  %v1855_v57 = vsel %vm1832_vm3, %v1854_v42, %v1824_v38  ;;  %v5431_v26 = vrot.slane %v5369_v3, %v5420_v25  ;;  %v5436_v38 = vld [vmem:[%s7311_s5 + $0x10] sm:$0xff] }
 0x2bd   : > { %2098 = vrot.lane.b32.xlu0 %v5187_v33, %s4689_s14 }
 0x2be   : > { %2254 = vrot.lane.b32.xlu1 %v5181_v12, %s4690_s15  ;;  %7479 = vst [vmem:[#allocation11_spill] sm:$0xff] %v5431_v26 }
 0x2bf   : > { %v1816_v39 = vpop.permute.xlu1 %1815  ;;  %v1808_v22 = vpop.permute.xlu0 %1807 }
 0x2c0   : > { %v1851_v32 = vsel %vm1830_vm1, %v1726_v8, %v1808_v22  ;;  %v5443_v22 = vrot.slane %v5436_v38, %v5359_v2 }
 0x2c1   : > { %2181 = vrot.lane.b32.xlu0 %v5181_v12, %s4691_s16 }
 0x2c2   : > { %2327 = vrot.lane.b32.xlu1 %v5181_v12, %s4686_s11  ;;  %7480 = vst [vmem:[#allocation12_spill] sm:$0xff] %v5443_v22 }
 0x2c3   : > { %v1812_v46 = vpop.permute.xlu0 %1811  ;;  %v1784_v24 = vpop.permute.xlu1 %1783 }
 0x2c4   : > { %v1845_v47 = vsel %vm1830_vm1, %v1590_v44, %v1784_v24  ;;  %v1852_v40 = vsel %vm1832_vm3, %v1851_v32, %v1812_v46  ;;  %v5447_v46 = vrot.slane %v5436_v38, %v5362_v62  ;;  %v5451_v24 = vrot.slane %v5369_v3, %v5423_v17 }
 0x2c5   : > { %2179 = vrot.lane.b32.xlu0 %v5187_v33, %s4691_s16  ;;  %v5291_v41 = vsel %vm1834_vm2, %v1852_v40, %v1816_v39 }
 0x2c6   : > { %2252 = vrot.lane.b32.xlu1 %v5187_v33, %s4690_s15  ;;  %7481 = vst [vmem:[#allocation13_spill] sm:$0xff] %v5447_v46  ;;  %7482 = vst [vmem:[#allocation14_spill] sm:$0xff] %v5451_v24 }
 0x2c7   : > { %v1828_v48 = vpop.permute.xlu0 %1827  ;;  %v1792_v49 = vpop.permute.xlu1 %1791 }
 0x2c8   : > { %v5288_v37 = vsel %vm1834_vm2, %v1855_v57, %v1828_v48 }
 0x2c9   : > { %2325 = vrot.lane.b32.xlu0 %v5187_v33, %s4686_s11 }
 0x2ca   : > { %2400 = vrot.lane.b32.xlu1 %v5181_v12, %s4692_s17 }
 0x2cb   : > { %v1788_v52 = vpop.permute.xlu0 %1787  ;;  %v1796_v53 = vpop.permute.xlu1 %1795 }
 0x2cc   : > { %v1846_v55 = vsel %vm1832_vm3, %v1845_v47, %v1788_v52  ;;  %v1848_v29 = vsel %vm1830_vm1, %v1594_v10, %v1796_v53 }
 0x2cd   : > { %v5235_v6 = vsel %vm1834_vm2, %v1846_v55, %v1792_v49  ;;  %1875 = vrot.lane.b32.xlu0 %v5227_v54, %s4687_s12  ;;  %v5464_v55 = vrot.slane %v5436_v38, %v5423_v17 }
 0x2ce   : > { %2398 = vrot.lane.b32.xlu1 %v5187_v33, %s4692_s17 }
 0x2cf   : > { %v1800_v61 = vpop.permute.xlu0 %1799  ;;  %v1804_v30 = vpop.permute.xlu1 %1803  ;;  %7483 = vst [vmem:[#allocation15_spill] sm:$0xff] %v5464_v55 }
 0x2d0   : > { %v1849_v45 = vsel %vm1832_vm3, %v1848_v29, %v1800_v61  ;;  %v5469_v61 = vrot.slane %v5436_v38, %v5420_v25 }
 0x2d1   : > { %v5247_v31 = vsel %vm1834_vm2, %v1849_v45, %v1804_v30  ;;  %2023 = vrot.lane.b32.xlu0 %v5227_v54, %s4688_s13  ;;  %v5477_v45 = vld [vmem:[%s7311_s5 + $0x8] sm:$0xff] }
 0x2d2   : > { %1950 = vrot.lane.b32.xlu1 %v5227_v54, %s4685_s10  ;;  %7484 = vst [vmem:[#allocation16_spill] sm:$0xff] %v5469_v61 }
 0x2d5   : > { %1948 = vrot.lane.b32.xlu0 %v5255_v1, %s4685_s10 }
 0x2d6   : > { %2096 = vrot.lane.b32.xlu1 %v5227_v54, %s4689_s14 }
 0x2d9   : > { %2021 = vrot.lane.b32.xlu0 %v5255_v1, %s4688_s13 }
 0x2da   : > { %1873 = vrot.lane.b32.xlu1 %v5255_v1, %s4687_s12 }
 0x2dd   : > { %2177 = vrot.lane.b32.xlu0 %v5227_v54, %s4691_s16 }
 0x2de   : > { %2094 = vrot.lane.b32.xlu1 %v5255_v1, %s4689_s14 }
 0x2e1   : > { %2250 = vrot.lane.b32.xlu0 %v5227_v54, %s4690_s15 }
 0x2e2   : > { %2175 = vrot.lane.b32.xlu1 %v5255_v1, %s4691_s16 }
 0x2e5   : > { %2248 = vrot.lane.b32.xlu0 %v5255_v1, %s4690_s15 }
 0x2e6   : > { %2323 = vrot.lane.b32.xlu1 %v5227_v54, %s4686_s11 }
 0x2e9   : > { %1887 = vrot.lane.b32.xlu0 %v5288_v37, %s4687_s12 }
 0x2ea   : > { %1885 = vrot.lane.b32.xlu1 %v5291_v41, %s4687_s12 }
 0x2ed   : > { %1962 = vrot.lane.b32.xlu0 %v5288_v37, %s4685_s10 }
 0x2ee   : > { %1960 = vrot.lane.b32.xlu1 %v5291_v41, %s4685_s10 }
 0x2f1   : > { %2033 = vrot.lane.b32.xlu0 %v5291_v41, %s4688_s13 }
 0x2f2   : > { %2035 = vrot.lane.b32.xlu1 %v5288_v37, %s4688_s13 }
 0x2f5   : > { %2106 = vrot.lane.b32.xlu0 %v5291_v41, %s4689_s14 }
 0x2f6   : > { %2108 = vrot.lane.b32.xlu1 %v5288_v37, %s4689_s14 }
 0x2f9   : > { %2189 = vrot.lane.b32.xlu0 %v5288_v37, %s4691_s16 }
 0x2fa   : > { %2187 = vrot.lane.b32.xlu1 %v5291_v41, %s4691_s16 }
 0x2fd   : > { %2321 = vrot.lane.b32.xlu0 %v5255_v1, %s4686_s11 }
 0x2fe   : > { %2183 = vrot.lane.b32.xlu1 %v5235_v6, %s4691_s16 }
 0x301   : > { %2256 = vrot.lane.b32.xlu0 %v5235_v6, %s4690_s15 }
 0x302   : > { %2262 = vrot.lane.b32.xlu1 %v5288_v37, %s4690_s15 }
 0x305   : > { %2329 = vrot.lane.b32.xlu0 %v5235_v6, %s4686_s11 }
 0x306   : > { %2335 = vrot.lane.b32.xlu1 %v5288_v37, %s4686_s11 }
 0x309   : > { %2402 = vrot.lane.b32.xlu0 %v5235_v6, %s4692_s17 }
 0x30a   : > { %1883 = vrot.lane.b32.xlu1 %v5247_v31, %s4687_s12 }
 0x30d   : > { %1958 = vrot.lane.b32.xlu0 %v5247_v31, %s4685_s10 }
 0x30e   : > { %2104 = vrot.lane.b32.xlu1 %v5247_v31, %s4689_s14 }
 0x311   : > { %2031 = vrot.lane.b32.xlu0 %v5247_v31, %s4688_s13 }
 0x312   : > { %2333 = vrot.lane.b32.xlu1 %v5291_v41, %s4686_s11 }
 0x315   : > { %2260 = vrot.lane.b32.xlu0 %v5291_v41, %s4690_s15 }
 0x316   : > { %2394 = vrot.lane.b32.xlu1 %v5255_v1, %s4692_s17 }
 0x319   : > { %2396 = vrot.lane.b32.xlu0 %v5227_v54, %s4692_s17 }
 0x31a   : > { %2406 = vrot.lane.b32.xlu1 %v5291_v41, %s4692_s17 }
 0x31d   : > { %2408 = vrot.lane.b32.xlu0 %v5288_v37, %s4692_s17 }
 0x31e   : > { %1956 = vrot.lane.b32.xlu1 %v5235_v6, %s4685_s10 }
 0x320   : > { %v5354_v58 = vpop.permute.xlu1 %1879 }
 0x321   : > { %1881 = vrot.lane.b32.xlu0 %v5235_v6, %s4687_s12 }
 0x322   : > { %2102 = vrot.lane.b32.xlu1 %v5235_v6, %s4689_s14 }
 0x323   : > { %v1878_v56 = vpop.permute.xlu0 %1877 }
 0x324   : > { %v5372_v5 = vpop.permute.xlu1 %1954  ;;  %v1896_v9 = vsel %vm1891_vm4, %v1878_v56, %v5354_v58 }
 0x325   : > { %2029 = vrot.lane.b32.xlu0 %v5235_v6, %s4688_s13  ;;  %v1935_v10 = vmul.f32 %v5376_v59, %v1896_v9  ;;  %v5484_v9 = vrot.slane %v5477_v45, %v5362_v62 }
 0x326   : > { %2258 = vrot.lane.b32.xlu1 %v5247_v31, %s4690_s15 }
 0x327   : > { %v1953_v27 = vpop.permute.xlu0 %1952  ;;  %7485 = vst [vmem:[#allocation17_spill] sm:$0xff] %v5484_v9 }
 0x328   : > { %v1969_v8 = vsel %vm1964_vm5, %v1953_v27, %v5372_v5  ;;  %v5393_v44 = vpop.permute.xlu1 %2027 }
 0x329   : > { %v2008_v50 = vmul.f32 %v5383_v7, %v1969_v8  ;;  %2185 = vrot.lane.b32.xlu0 %v5247_v31, %s4691_s16  ;;  %v5489_v8 = vrot.slane %v5477_v45, %v5359_v2 }
 0x32a   : > { %2404 = vrot.lane.b32.xlu1 %v5247_v31, %s4692_s17 }
 0x32b   : > { %v2026_v11 = vpop.permute.xlu0 %2025  ;;  %v4365_v13 = vpack.c.bf16 %v2008_v50, %v1935_v10 }
 0x32c   : > { %v5401_v14 = vpop.permute.xlu1 %2100  ;;  %v2042_v49 = vsel %vm2037_vm7, %v2026_v11, %v5393_v44 }
 0x32d   : > { %4366 = vmatprep.subr.bf16.mxu1 %v4365_v13  ;;  %2331 = vrot.lane.b32.xlu0 %v5247_v31, %s4686_s11  ;;  %v2081_v30 = vmul.f32 %v5451_v24, %v2042_v49 }
 0x32f   : > { %v2099_v15 = vpop.permute.xlu0 %2098 }
 0x330   : > { %v5405_v16 = vpop.permute.xlu1 %2254  ;;  %v2115_v39 = vsel %vm2110_vm6, %v2099_v15, %v5401_v14 }
 0x331   : > { %v2154_v43 = vmul.f32 %v5431_v26, %v2115_v39 }
 0x333   : > { %v5407_v18 = vpop.permute.xlu0 %2181  ;;  %v4369_v57 = vpack.c.bf16 %v2154_v43, %v2081_v30 }
 0x334   : > { %v5409_v19 = vpop.permute.xlu1 %2327 }
 0x337   : > { %v5411_v20 = vpop.permute.xlu0 %2179 }
 0x338   : > { %v5413_v4 = vpop.permute.xlu1 %2252 }
 0x33b   : > { %v5415_v21 = vpop.permute.xlu0 %2325 }
 0x33c   : > { %v5417_v28 = vpop.permute.xlu1 %2400 }
 0x33f   : > { %v1876_v34 = vpop.permute.xlu0 %1875 }
 0x340   : > { %v5426_v35 = vpop.permute.xlu1 %2398  ;;  %v1897_v47 = vsel %vm1891_vm4, %v1876_v34, %v1878_v56 }
 0x341   : > { %v1934_v53 = vmul.f32 %v5443_v22, %v1897_v47 }
 0x343   : > { %v2024_v48 = vpop.permute.xlu0 %2023 }
 0x344   : > { %v1951_v51 = vpop.permute.xlu1 %1950  ;;  %v2043_v63 = vsel %vm2037_vm7, %v2024_v48, %v2026_v11 }
 0x345   : > { %v1970_v52 = vsel %vm1964_vm5, %v1951_v51, %v1953_v27  ;;  %v2080_v56 = vmul.f32 %v5464_v55, %v2043_v63 }
 0x346   : > { %v2007_v29 = vmul.f32 %v5447_v46, %v1970_v52 }
 0x347   : > { %v1949_v0 = vpop.permute.xlu0 %1948 }
 0x348   : > { %v4367_v32 = vpack.c.bf16 %v2007_v29, %v1934_v53  ;;  %v2097_v42 = vpop.permute.xlu1 %2096  ;;  %v1971_v10 = vsel %vm1964_vm5, %v1949_v0, %v1951_v51 }
 0x349   : > { %v2116_v40 = vsel %vm2110_vm6, %v2097_v42, %v2099_v15  ;;  %v2006_v39 = vmul.f32 %v5484_v9, %v1971_v10  ;;  %v5524_v10 = vrot.slane %v5477_v45, %v5423_v17 }
 0x34a   : > { %v2153_v27 = vmul.f32 %v5469_v61, %v2116_v40  ;;  %4368 = vmatpush1.bf16.msra.mxu1 %v4367_v32  ;;  %v1857_v32 = vld [vmem:[%s7311_s5] sm:$0xff] }
 0x34b   : > { %v2022_v50 = vpop.permute.xlu0 %2021  ;;  %4370 = vmatprep.subr.bf16.mxu1 %v4369_v57  ;;  %7489 = vst [vmem:[#allocation21_spill] sm:$0xff] %v5524_v10 }
 0x34c   : > { %v4371_v11 = vpack.c.bf16 %v2153_v27, %v2080_v56  ;;  %v1874_v13 = vpop.permute.xlu1 %1873  ;;  %v5517_v56 = vrot.slane %v1857_v32, %v5359_v2  ;;  %v5520_v27 = vrot.slane %v1857_v32, %v5362_v62 }
 0x34d   : > { %v1898_v15 = vsel %vm1891_vm4, %v1874_v13, %v1876_v34  ;;  %v5507_v34 = vrot.slane %v5477_v45, %v5420_v25 }
 0x34e   : > { %v1933_v47 = vmul.f32 %v5489_v8, %v1898_v15  ;;  %4372 = vmatpush1.bf16.msra.mxu1 %v4371_v11  ;;  %7487 = vst [vmem:[#allocation19_spill] sm:$0xff] %v5517_v56  ;;  %7488 = vst [vmem:[#allocation20_spill] sm:$0xff] %v5520_v27  ;;  %v2044_v15 = vsel %vm2037_vm7, %v2022_v50, %v2024_v48 }
 0x34f   : > { %v2178_v49 = vpop.permute.xlu0 %2177  ;;  %7486 = vst [vmem:[#allocation18_spill] sm:$0xff] %v5507_v34  ;;  %v2079_v61 = vmul.f32 %v5524_v10, %v2044_v15  ;;  %v5558_v15 = vrot.slane %v1857_v32, %v5423_v17 }
 0x350   : > { %v2095_v43 = vpop.permute.xlu1 %2094  ;;  %v4349_v52 = vpack.c.bf16 %v2006_v39, %v1933_v47 }
 0x351   : > { %v2117_v57 = vsel %vm2110_vm6, %v2095_v43, %v2097_v42  ;;  %7491 = vst [vmem:[#allocation23_spill] sm:$0xff] %v5558_v15 }
 0x352   : > { %4350 = vmatprep.subr.bf16.mxu0 %v4349_v52  ;;  %v2152_v42 = vmul.f32 %v5507_v34, %v2117_v57 }
 0x353   : > { %v2251_v53 = vpop.permute.xlu0 %2250 }
 0x354   : > { %v5497_v29 = vpop.permute.xlu1 %2175  ;;  %v4353_v57 = vpack.c.bf16 %v2152_v42, %v2079_v61  ;;  %v5564_v61 = vsub.s32 7, %v4912_v60  ;;  %v2270_v24 = vsel %vm2264_vm10, %v2251_v53, %v5413_v4 }
 0x356   : > { %v5623_v7 = vrot.slane %v1857_v32, %v5564_v61 }
 0x357   : > { %v5499_v51 = vpop.permute.xlu0 %2248 }
 0x358   : > { %v5501_v30 = vpop.permute.xlu1 %2323 }
 0x359   : > { %v2343_v10 = vsel %vm2337_vm9, %v5501_v30, %v5415_v21 }
 0x35b   : > { %v5503_v63 = vpop.permute.xlu0 %1887 }
 0x35c   : > { %v5512_v40 = vpop.permute.xlu1 %1885  ;;  %v1899_v11 = vsel %vm1891_vm4, %v5503_v63, %v1874_v13  ;;  %v5543_v13 = vsub.s32 5, %v4912_v60 }
 0x35d   : > { %v1932_v36 = vmul.f32 %v5517_v56, %v1899_v11  ;;  %v2197_v11 = vsel %vm2191_vm8, %v2178_v49, %v5411_v20 }
 0x35f   : > { %v5531_v39 = vpop.permute.xlu0 %1962 }
 0x360   : > { %v1972_v47 = vsel %vm1964_vm5, %v5531_v39, %v1949_v0  ;;  %v5537_v52 = vpop.permute.xlu1 %1960  ;;  %v5552_v0 = vrot.slane %v5477_v45, %v5543_v13 }
 0x361   : > { %v2005_v9 = vmul.f32 %v5520_v27, %v1972_v47  ;;  %v5572_v47 = vsub.s32 6, %v4912_v60  ;;  %v2198_v27 = vsel %vm2191_vm8, %v5497_v29, %v2178_v49  ;;  %v5599_v49 = vrot.slane %v5436_v38, %v5543_v13 }
 0x362   : > { %7490 = vst [vmem:[#allocation22_spill] sm:$0xff] %v5552_v0  ;;  %v2233_v34 = vmul.f32 %v5552_v0, %v2197_v11 }
 0x363   : > { %v4351_v48 = vpack.c.bf16 %v2005_v9, %v1932_v36  ;;  %v5545_v26 = vpop.permute.xlu0 %2033  ;;  %v5561_v36 = vrot.slane %v1857_v32, %v5420_v25  ;;  %7494 = vst [vmem:[#allocation26_spill] sm:$0xff] %v5599_v49  ;;  %v5604_v0 = vrot.slane %v5477_v45, %v5572_v47 }
 0x364   : > { %v5547_v55 = vpop.permute.xlu1 %2035  ;;  %v4357_v22 = vpack.c.bf16 %v2233_v34, %v5227_v54 }
 0x365   : > { %4352 = vmatpush1.bf16.msra.mxu0 %v4351_v48  ;;  %7492 = vst [vmem:[#allocation24_spill] sm:$0xff] %v5561_v36  ;;  %v2045_v9 = vsel %vm2037_vm7, %v5547_v55, %v2022_v50  ;;  %v5576_v48 = vrot.slane %v1857_v32, %v5543_v13  ;;  %v5586_v50 = vrot.slane %v5477_v45, %v5564_v61 }
 0x366   : > { %4354 = vmatprep.subr.bf16.mxu0 %v4353_v57  ;;  %v2078_v56 = vmul.f32 %v5558_v15, %v2045_v9  ;;  %v2196_v45 = vsel %vm2191_vm8, %v5411_v20, %v5407_v18 }
 0x367   : > { %v5569_v42 = vpop.permute.xlu0 %2106  ;;  %7493 = vst [vmem:[#allocation25_spill] sm:$0xff] %v5576_v48  ;;  %v2232_v9 = vmul.f32 %v5576_v48, %v2198_v27  ;;  %v2379_v46 = vmul.f32 %v5586_v50, %v2343_v10  ;;  %v2271_v27 = vsel %vm2264_vm10, %v5499_v51, %v2251_v53  ;;  %v2234_v20 = vmul.f32 %v5599_v49, %v2196_v45 }
 0x368   : > { %v5578_v57 = vpop.permute.xlu1 %2108 }
 0x369   : > { %v2118_v60 = vsel %vm2110_vm6, %v5578_v57, %v2095_v43 }
 0x36a   : > { %v2151_v11 = vmul.f32 %v5561_v36, %v2118_v60  ;;  %v5613_v60 = vrot.slane %v1857_v32, %v5572_v47  ;;  %v4359_v32 = vpack.c.bf16 %v2232_v9, %v5255_v1 }
 0x36b   : > { %v5606_v43 = vpop.permute.xlu0 %2189 }
 0x36c   : > { %v4355_v36 = vpack.c.bf16 %v2151_v11, %v2078_v56  ;;  %v5615_v15 = vpop.permute.xlu1 %2187  ;;  %v5631_v56 = vrot.slane %v5369_v3, %v5543_v13  ;;  %v2306_v11 = vmul.f32 %v5604_v0, %v2270_v24  ;;  %v2305_v34 = vmul.f32 %v5613_v60, %v2271_v27 }
 0x36e   : > { %4356 = vmatpush1.bf16.msra.mxu0 %v4355_v36  ;;  %7495 = vst [vmem:[#allocation27_spill] sm:$0xff] %v5631_v56  ;;  %v4361_v24 = vpack.c.bf16 %v2379_v46, %v2306_v11  ;;  %v5667_v46 = vrot.slane %v5369_v3, %v5572_v47  ;;  %v5671_v11 = vrot.slane %v5369_v3, %v5564_v61 }
 0x36f   : > { %v5634_v48 = vpop.permute.xlu0 %2321  ;;  %4358 = vmatprep.subr.bf16.mxu0 %v4357_v22 }
 0x370   : > { %v2344_v54 = vsel %vm2337_vm9, %v5634_v48, %v5501_v30  ;;  %v5642_v53 = vpop.permute.xlu1 %2183  ;;  %v5655_v30 = vrot.slane %v5436_v38, %v5564_v61  ;;  %7497 = vst [vmem:[#allocation29_spill] sm:$0xff] %v5667_v46  ;;  %7498 = vst [vmem:[#allocation30_spill] sm:$0xff] %v5671_v11 }
 0x371   : > { %v2378_v10 = vmul.f32 %v5623_v7, %v2344_v54  ;;  %v2195_v22 = vsel %vm2191_vm8, %v5407_v18, %v5642_v53  ;;  %v4375_v54 = vpack.c.bf16 %v2234_v20, %v5187_v33  ;;  %v2342_v18 = vsel %vm2337_vm9, %v5415_v21, %v5409_v19 }
 0x372   : > { %v2235_v36 = vmul.f32 %v5631_v56, %v2195_v22  ;;  %4360 = vmatpush1.bf16.msra.mxu0 %v4359_v32  ;;  %7496 = vst [vmem:[#allocation28_spill] sm:$0xff] %v5655_v30  ;;  %v5675_v32 = vrot.slane %v5436_v38, %v5572_v47  ;;  %v2269_v33 = vsel %vm2264_vm10, %v5413_v4, %v5405_v16  ;;  %v5691_v38 = vld [vmem:[%s7311_s5 + $0x38] sm:$0xff] }
 0x373   : > { %v4363_v1 = vpack.c.bf16 %v2378_v10, %v2305_v34  ;;  %4362 = vmatprep.subr.bf16.mxu0 %v4361_v24  ;;  %v5651_v9 = vpop.permute.xlu0 %2256  ;;  %v2380_v3 = vmul.f32 %v5655_v30, %v2342_v18  ;;  %v1965_v24 = vsel %vm1964_vm5, %v5537_v52, %v5531_v39 }
 0x374   : > { %v5657_v45 = vpop.permute.xlu1 %2262  ;;  %v4373_v27 = vpack.c.bf16 %v2235_v36, %v5181_v12  ;;  %7499 = vst [vmem:[#allocation31_spill] sm:$0xff] %v5675_v32  ;;  %v2268_v12 = vsel %vm2264_vm10, %v5405_v16, %v5651_v9  ;;  %v5701_v16 = vrot.slane %v5691_v38, %v5362_v62  ;;  %v2307_v22 = vmul.f32 %v5675_v32, %v2269_v33  ;;  %v4118_v36 = vld [vmem:[%s7311_s5 + $0x58] ss:$0 sm:$0xff] }
 0x375   : > { %v2308_v4 = vmul.f32 %v5667_v46, %v2268_v12  ;;  %v1892_v33 = vsel %vm1891_vm4, %v5512_v40, %v5503_v63  ;;  %v2415_v63 = vsel %vm2410_vm11, %v5426_v35, %v5417_v28  ;;  %v5761_v46 = vrot.slane %v5691_v38, %v5423_v17 }
 0x376   : > { %4364 = vmatpush1.bf16.msra.mxu0 %v4363_v1  ;;  %4374 = vmatprep.subr.bf16.mxu1 %v4373_v27  ;;  %7500 = vst [vmem:[#allocation32_spill] sm:$0xff] %v5701_v16  ;;  %v5721_v1 = vrot.slane %v5691_v38, %v5359_v2  ;;  %v5725_v27 = vrot.slane %v5691_v38, %v5420_v25 }
 0x377   : > { %v5685_v21 = vpop.permute.xlu0 %2329  ;;  %4376 = vmatpush1.bf16.msra.mxu1 %v4375_v54  ;;  %v4379_v12 = vpack.c.bf16 %v2380_v3, %v2307_v22  ;;  %v4117_v3 = vld [vmem:[%s7311_s5 + $0x50] ss:$0 sm:$0xff]  ;;  %7505 = vst [vmem:[#allocation37_spill] sm:$0xff] %v5761_v46  ;;  %v5765_v32 = vrot.slane %v5691_v38, %v5543_v13 }
 0x378   : > { %v2341_v20 = vsel %vm2337_vm9, %v5409_v19, %v5685_v21  ;;  %v5697_v34 = vpop.permute.xlu1 %2335  ;;  %v5714_v19 = vld [vmem:[%s7311_s5 + $0x30] sm:$0xff]  ;;  %7501 = vst [vmem:[#allocation33_spill] sm:$0xff] %v5721_v1  ;;  %7502 = vst [vmem:[#allocation34_spill] sm:$0xff] %v5725_v27 }
 0x379   : > { %v2381_v10 = vmul.f32 %v5671_v11, %v2341_v20  ;;  %v5731_v39 = vrot.slane %v5714_v19, %v5359_v2  ;;  %v5745_v30 = vrot.slane %v5714_v19, %v5362_v62  ;;  %7506 = vst [vmem:[#allocation38_spill] sm:$0xff] %v5765_v32 }
 0x37b   : > { %v5727_v54 = vpop.permute.xlu0 %2402  ;;  %7503 = vst [vmem:[#allocation35_spill] sm:$0xff] %v5731_v39  ;;  %v4377_v18 = vpack.c.bf16 %v2381_v10, %v2308_v4  ;;  %7504 = vst [vmem:[#allocation36_spill] sm:$0xff] %v5745_v30  ;;  %v2012_v4 = vmul.f32 %v5701_v16, %v1965_v24  ;;  %v2111_v10 = vsel %vm2110_vm6, %v5569_v42, %v5578_v57 }
 0x37c   : > { %v2414_v20 = vsel %vm2410_vm11, %v5417_v28, %v5727_v54  ;;  %v5741_v11 = vpop.permute.xlu1 %1883  ;;  %v1939_v24 = vmul.f32 %v5721_v1, %v1892_v33  ;;  %v2038_v57 = vsel %vm2037_vm7, %v5545_v26, %v5547_v55  ;;  %v5811_v1 = vrot.slane %v5714_v19, %v5543_v13 }
 0x37d   : > { %4378 = vmatprep.subr.bf16.mxu1 %v4377_v18  ;;  %v2454_v22 = vmul.f32 %v4118_v36, %v2414_v20  ;;  %v1893_v28 = vsel %vm1891_vm4, %v5741_v11, %v5512_v40  ;;  %v5780_v18 = vrot.slane %v5714_v19, %v5420_v25  ;;  %v5784_v20 = vrot.slane %v5714_v19, %v5423_v17 }
 0x37e   : > { %4380 = vmatpush1.bf16.msra.mxu1 %v4379_v12  ;;  %v2453_v40 = vmul.f32 %v4117_v3, %v2415_v63  ;;  %v2158_v12 = vmul.f32 %v5725_v27, %v2111_v10  ;;  %v2199_v3 = vsel %vm2191_vm8, %v5606_v43, %v5497_v29  ;;  %v1938_v63 = vmul.f32 %v5731_v39, %v1893_v28 }
 0x37f   : > { %v5776_v36 = vpop.permute.xlu0 %1958  ;;  %2641 = vmatprep.subr.mxu1 %v2454_v22  ;;  %7507 = vst [vmem:[#allocation39_spill] sm:$0xff] %v5780_v18  ;;  %7508 = vst [vmem:[#allocation40_spill] sm:$0xff] %v5784_v20  ;;  %v5796_v22 = vld [vmem:[%s7309_s3] sm:$0xff]  ;;  %v4397_v27 = vpack.c.bf16 %v2012_v4, %v1939_v24  ;;  %v5815_v29 = vrot.slane %v5691_v38, %v5564_v61  ;;  %v2239_v4 = vmul.f32 %v5765_v32, %v2199_v3 }
 0x380   : > { %v1966_v33 = vsel %vm1964_vm5, %v5776_v36, %v5537_v52  ;;  %v5791_v55 = vpop.permute.xlu1 %2104  ;;  %v2085_v52 = vmul.f32 %v5761_v46, %v2038_v57  ;;  %7509 = vst [vmem:[#allocation41_spill] sm:$0xff] %v5811_v1 }
 0x381   : > { %v2011_v10 = vmul.f32 %v5745_v30, %v1966_v33  ;;  %v2112_v16 = vsel %vm2110_vm6, %v5791_v55, %v5569_v42  ;;  %7510 = vst [vmem:[#allocation42_spill] sm:$0xff] %v5815_v29  ;;  %v2192_v42 = vsel %vm2191_vm8, %v5615_v15, %v5606_v43  ;;  %v2345_v43 = vsel %vm2337_vm9, %v5697_v34, %v5634_v48 }
 0x382   : > { %2642 = vmatpush1.msra.mxu1 %v2453_v40  ;;  %v7511_v40 = vmov 0.0   ;;  %v4401_v33 = vpack.c.bf16 %v2158_v12, %v2085_v52  ;;  %v2157_v3 = vmul.f32 %v5780_v18, %v2112_v16  ;;  %v2238_v12 = vmul.f32 %v5811_v1, %v2192_v42 }
 0x383   : > { %v4399_v28 = vpack.c.bf16 %v2011_v10, %v1938_v63  ;;  %v5817_v39 = vpop.permute.xlu0 %2031  ;;  %4125 = vmatmul.mubr.msk.f32.vlgmr.msra.gmra.mrb[24].mxu1 %vm2541_vm12, %v5796_v22  ;;  %4398 = vmatprep.subr.bf16.mxu1 %v4397_v27  ;;  %v5836_v27 = vld [vmem:[%s7309_s3 + $0x8] sm:$0xff]  ;;  %v2272_v10 = vsel %vm2264_vm10, %v5657_v45, %v5499_v51  ;;  %v5855_v48 = vrot.slane %v5714_v19, %v5572_v47 }
 0x384   : > { %v2039_v24 = vsel %vm2037_vm7, %v5817_v39, %v5545_v26  ;;  %v5830_v57 = vpop.permute.xlu1 %2333  ;;  %2695 = vmatprep.mubr.f32.mxu1 %v7511_v40  ;;  %v5846_v26 = vrot.slane %v5691_v38, %v5572_v47  ;;  %v2385_v38 = vmul.f32 %v5815_v29, %v2345_v43  ;;  %v4405_v51 = vpack.c.bf16 %v2239_v4, %v5288_v37  ;;  %v5885_v37 = vld [vmem:[%s7311_s5 + $0x48] ss:$0 sm:$0xff] }
 0x385   : > { %v2084_v63 = vmul.f32 %v5784_v20, %v2039_v24  ;;  %4400 = vmatpush1.bf16.msra.mxu1 %v4399_v28  ;;  %7513 = vst [vmem:[#allocation44_spill] sm:$0xff] %v5855_v48  ;;  %v5870_v24 = vrot.slane %v5714_v19, %v5564_v61  ;;  %v2338_v43 = vsel %vm2337_vm9, %v5830_v57, %v5697_v34 }
 0x386   : > { %7512 = vst [vmem:[#allocation43_spill] sm:$0xff] %v5846_v26  ;;  %4402 = vmatprep.subr.bf16.mxu1 %v4401_v33  ;;  %v2312_v33 = vmul.f32 %v5846_v26, %v2272_v10  ;;  %v4407_v19 = vpack.c.bf16 %v2238_v12, %v5291_v41  ;;  %v5902_v12 = vld [vmem:[%s7311_s5 + $0x20] sm:$0xff] }
 0x387   : > { %v4403_v52 = vpack.c.bf16 %v2157_v3, %v2084_v63  ;;  %v5857_v16 = vpop.permute.xlu0 %2260  ;;  %4126 = vmatmul.mubr.msk.f32.gmra.mrb[26].mxu1 %vm2541_vm12, %v5836_v27  ;;  %7514 = vst [vmem:[#allocation45_spill] sm:$0xff] %v5870_v24 }
 0x388   : > { %v2265_v28 = vsel %vm2264_vm10, %v5857_v16, %v5657_v45  ;;  %v2395_v42 = vpop.permute.xlu1 %2394  ;;  %2843 = vmatprep.mubr.f32.mxu1 %v7511_v40  ;;  %v5880_v45 = vld [vmem:[%s7311_s5 + $0x40] ss:$0 sm:$0xff] }
 0x389   : > { %4404 = vmatpush1.bf16.msra.mxu1 %v4403_v52  ;;  %v2311_v4 = vmul.f32 %v5855_v48, %v2265_v28  ;;  %v4409_v52 = vpack.c.bf16 %v2385_v38, %v2312_v33  ;;  %v4122_v38 = vld [vmem:[%s7311_s5 + $0x78] ss:$0 sm:$0xff] }
 0x38a   : > { %4406 = vmatprep.subr.bf16.mxu1 %v4405_v51  ;;  %v2384_v51 = vmul.f32 %v5870_v24, %v2338_v43  ;;  %v4121_v43 = vld [vmem:[%s7311_s5 + $0x70] ss:$0 sm:$0xff] }
 0x38b   : > { %v2397_v3 = vpop.permute.xlu0 %2396 }
 0x38c   : > { %v2416_v34 = vsel %vm2410_vm11, %v2397_v3, %v5426_v35  ;;  %v2417_v63 = vsel %vm2410_vm11, %v2395_v42, %v2397_v3  ;;  %v5894_v10 = vpop.permute.xlu1 %2406  ;;  %v5907_v35 = vld [vmem:[%s7311_s5 + $0x28] sm:$0xff]  ;;  %v4411_v28 = vpack.c.bf16 %v2384_v51, %v2311_v4 }
 0x38d   : > { %v2451_v29 = vmul.f32 %v5880_v45, %v2417_v63  ;;  %4408 = vmatpush1.bf16.msra.mxu1 %v4407_v19  ;;  %v2452_v41 = vmul.f32 %v5885_v37, %v2416_v34  ;;  %v5922_v34 = vrot.slane %v5902_v12, %v5362_v62  ;;  %v5926_v4 = vrot.slane %v5907_v35, %v5362_v62 }
 0x38e   : > { %4410 = vmatprep.subr.bf16.mxu1 %v4409_v52  ;;  %v5930_v52 = vrot.slane %v5902_v12, %v5359_v2  ;;  %v5934_v51 = vrot.slane %v5907_v35, %v5359_v2  ;;  %v5950_v2 = vrot.slane %v5907_v35, %v5420_v25 }
 0x38f   : > { %2564 = vmatprep.subr.mxu0 %v2452_v41  ;;  %v2409_v33 = vpop.permute.xlu0 %2408  ;;  %7515 = vst [vmem:[#allocation46_spill] sm:$0xff] %v5922_v34  ;;  %7516 = vst [vmem:[#allocation47_spill] sm:$0xff] %v5926_v4 }
 0x390   : > { %v2411_v19 = vsel %vm2410_vm11, %v5894_v10, %v2409_v33  ;;  %v2418_v3 = vsel %vm2410_vm11, %v2409_v33, %v2395_v42  ;;  %2565 = vmatpush1.msra.mxu0 %v2451_v29  ;;  %v1957_v63 = vpop.permute.xlu1 %1956  ;;  %7517 = vst [vmem:[#allocation48_spill] sm:$0xff] %v5930_v52  ;;  %7518 = vst [vmem:[#allocation49_spill] sm:$0xff] %v5934_v51  ;;  %v5946_v33 = vrot.slane %v5902_v12, %v5420_v25 }
 0x391   : > { %4412 = vmatpush1.bf16.msra.mxu1 %v4411_v28  ;;  %v2458_v42 = vmul.f32 %v4122_v38, %v2418_v3  ;;  %v1967_v29 = vsel %vm1964_vm5, %v1957_v63, %v5776_v36  ;;  %v1968_v41 = vsel %vm1964_vm5, %v5372_v5, %v1957_v63  ;;  %4123 = vmatmul.mubr.msk.f32.vlgmr.msra.gmra.mrb[24].mxu0 %vm2541_vm12, %v5796_v22 }
 0x392   : > { %v2457_v62 = vmul.f32 %v4121_v43, %v2411_v19  ;;  %7519 = vst [vmem:[#allocation50_spill] sm:$0xff] %v5946_v33  ;;  %7520 = vst [vmem:[#allocation51_spill] sm:$0xff] %v5950_v2  ;;  %2618 = vmatprep.mubr.f32.mxu0 %v7511_v40  ;;  %v5961_v43 = vrot.slane %v5902_v12, %v5423_v17  ;;  %v5965_v19 = vrot.slane %v5907_v35, %v5423_v17 }
 0x393   : > { %v1882_v28 = vpop.permute.xlu0 %1881  ;;  %2795 = vmatprep.subr.mxu1 %v2458_v42  ;;  %v2009_v25 = vmul.f32 %v5922_v34, %v1968_v41  ;;  %v2010_v3 = vmul.f32 %v5926_v4, %v1967_v29 }
 0x394   : > { %v1894_v5 = vsel %vm1891_vm4, %v1882_v28, %v5741_v11  ;;  %v1895_v36 = vsel %vm1891_vm4, %v5354_v58, %v1882_v28  ;;  %v2103_v38 = vpop.permute.xlu1 %2102  ;;  %7521 = vst [vmem:[#allocation52_spill] sm:$0xff] %v5961_v43  ;;  %7522 = vst [vmem:[#allocation53_spill] sm:$0xff] %v5965_v19  ;;  %v5995_v28 = vrot.slane %v5907_v35, %v5543_v13 }
 0x395   : > { %v1936_v63 = vmul.f32 %v5930_v52, %v1895_v36  ;;  %v1937_v11 = vmul.f32 %v5934_v51, %v1894_v5  ;;  %2796 = vmatpush1.msra.mxu1 %v2457_v62  ;;  %v2113_v58 = vsel %vm2110_vm6, %v2103_v38, %v5791_v55  ;;  %v2114_v42 = vsel %vm2110_vm6, %v5401_v14, %v2103_v38 }
 0x396   : > { %4124 = vmatmul.mubr.msk.f32.gmra.mrb[26].mxu0 %vm2541_vm12, %v5836_v27  ;;  %4129 = vmatmul.mubr.msk.f32.vlgmr.msra.gmra.mrb[28].mxu1 %vm2541_vm12, %v5796_v22  ;;  %v5991_v62 = vrot.slane %v5902_v12, %v5543_v13  ;;  %7524 = vst [vmem:[#allocation55_spill] sm:$0xff] %v5995_v28  ;;  %v2155_v5 = vmul.f32 %v5946_v33, %v2114_v42 }
 0x397   : > { %v4383_v17 = vpack.c.bf16 %v2009_v25, %v1936_v63  ;;  %v2030_v29 = vpop.permute.xlu0 %2029  ;;  %v4381_v41 = vpack.c.bf16 %v2010_v3, %v1937_v11  ;;  %2849 = vmatprep.mubr.f32.mxu1 %v7511_v40  ;;  %2766 = vmatprep.mubr.f32.mxu0 %v7511_v40  ;;  %v2156_v36 = vmul.f32 %v5950_v2, %v2113_v58 }
 0x398   : > { %v2040_v55 = vsel %vm2037_vm7, %v2030_v29, %v5817_v39  ;;  %v2041_v14 = vsel %vm2037_vm7, %v5393_v44, %v2030_v29  ;;  %7523 = vst [vmem:[#allocation54_spill] sm:$0xff] %v5991_v62  ;;  %v2259_v25 = vpop.permute.xlu1 %2258  ;;  %v6005_v13 = vrot.slane %v5902_v12, %v5572_v47  ;;  %v6009_v11 = vrot.slane %v5907_v35, %v5572_v47 }
 0x399   : > { %v2082_v38 = vmul.f32 %v5961_v43, %v2041_v14  ;;  %v2083_v39 = vmul.f32 %v5965_v19, %v2040_v55  ;;  %4382 = vmatprep.subr.bf16.mxu0 %v4381_v41  ;;  %v6021_v41 = vrot.slane %v5902_v12, %v5564_v61  ;;  %v6025_v47 = vrot.slane %v5907_v35, %v5564_v61 }
 0x39a   : > { %4384 = vmatpush1.bf16.msra.mxu0 %v4383_v17  ;;  %4130 = vmatmul.mubr.msk.f32.gmra.mrb[30].mxu1 %vm2541_vm12, %v5836_v27  ;;  %7525 = vst [vmem:[#allocation56_spill] sm:$0xff] %v6005_v13  ;;  %7526 = vst [vmem:[#allocation57_spill] sm:$0xff] %v6009_v11 }
 0x39b   : > { %v4387_v44 = vpack.c.bf16 %v2155_v5, %v2082_v38  ;;  %v2186_v3 = vpop.permute.xlu0 %2185  ;;  %v4385_v63 = vpack.c.bf16 %v2156_v36, %v2083_v39  ;;  %7527 = vst [vmem:[#allocation58_spill] sm:$0xff] %v6021_v41  ;;  %7528 = vst [vmem:[#allocation59_spill] sm:$0xff] %v6025_v47  ;;  %v4119_v39 = vld [vmem:[%s7311_s5 + $0x60] ss:$0 sm:$0xff] }
 0x39c   : > { %v2193_v58 = vsel %vm2191_vm8, %v2186_v3, %v5615_v15  ;;  %v2194_v42 = vsel %vm2191_vm8, %v5642_v53, %v2186_v3  ;;  %v2266_v15 = vsel %vm2264_vm10, %v2259_v25, %v5857_v16  ;;  %v2267_v53 = vsel %vm2264_vm10, %v5651_v9, %v2259_v25  ;;  %v2405_v14 = vpop.permute.xlu1 %2404 }
 0x39d   : > { %v2236_v17 = vmul.f32 %v5991_v62, %v2194_v42  ;;  %v2237_v29 = vmul.f32 %v5995_v28, %v2193_v58  ;;  %4386 = vmatprep.subr.bf16.mxu0 %v4385_v63  ;;  %v2309_v16 = vmul.f32 %v6005_v13, %v2267_v53  ;;  %v2310_v36 = vmul.f32 %v6009_v11, %v2266_v15 }
 0x39e   : > { %4388 = vmatpush1.bf16.msra.mxu0 %v4387_v44  ;;  %v2413_v25 = vsel %vm2410_vm11, %v5727_v54, %v2405_v14 }
 0x39f   : > { %v4391_v55 = vpack.c.bf16 %v2236_v17, %v5235_v6  ;;  %v2332_v5 = vpop.permute.xlu0 %2331  ;;  %v4389_v12 = vpack.c.bf16 %v2237_v29, %v5247_v31  ;;  %v2412_v31 = vsel %vm2410_vm11, %v2405_v14, %v5894_v10  ;;  %v2455_v10 = vmul.f32 %v4119_v39, %v2413_v25 }
 0x3a0   : > { %v2339_v61 = vsel %vm2337_vm9, %v2332_v5, %v5830_v57  ;;  %v2340_v35 = vsel %vm2337_vm9, %v5685_v21, %v2332_v5  ;;  %v4120_v57 = vld [vmem:[%s7311_s5 + $0x68] ss:$0 sm:$0xff] }
 0x3a1   : > { %v2382_v9 = vmul.f32 %v6021_v41, %v2340_v35  ;;  %v2383_v6 = vmul.f32 %v6025_v47, %v2339_v61  ;;  %4390 = vmatprep.subr.bf16.mxu0 %v4389_v12  ;;  %v2456_v44 = vmul.f32 %v4120_v57, %v2412_v31 }
 0x3a2   : > { %4392 = vmatpush1.bf16.msra.mxu0 %v4391_v55 }
 0x3a3   : > { %v4395_v38 = vpack.c.bf16 %v2382_v9, %v2309_v16  ;;  %v4393_v21 = vpack.c.bf16 %v2383_v6, %v2310_v36 }
 0x3a5   : > { %4394 = vmatprep.subr.bf16.mxu0 %v4393_v21 }
 0x3a6   : > { %4396 = vmatpush1.bf16.msra.mxu0 %v4395_v38 }
 0x3a7   : > { %2718 = vmatprep.subr.mxu0 %v2456_v44 }
 0x3aa   : > { %2719 = vmatpush1.msra.mxu0 %v2455_v10 }
 0x3ab   : > { %4127 = vmatmul.mubr.msk.f32.vlgmr.msra.gmra.mrb[28].mxu0 %vm2541_vm12, %v5796_v22 }
 0x3ac   : > { %2772 = vmatprep.mubr.f32.mxu0 %v7511_v40 }
 0x3af   : > { %4128 = vmatmul.mubr.msk.f32.gmra.mrb[30].mxu0 %vm2541_vm12, %v5836_v27 }
 0x456   : > { %v2691_v3 = vpop.f32.mrb[24].mxu1 }
 0x457   : > { %v6062_v63 = vmax.f32 %v2691_v3, 0.0  ;;  %v2693_v58 = vpop.f32.mrb[25].mxu1 }
 0x458   : > { %v6068_v29 = vmax.f32 %v2693_v58, 0.0 }
 0x459   : > { %2880 = vrot.lane.b32.xlu0 %v6062_v63, %s4687_s12 }
 0x45a   : > { %v2697_v54 = vpop.f32.mrb[26].mxu1 }
 0x45b   : > { %v6066_v42 = vmax.f32 %v2697_v54, 0.0  ;;  %v2699_v17 = vpop.f32.mrb[27].mxu1 }
 0x45c   : > { %v6070_v15 = vmax.f32 %v2699_v17, 0.0 }
 0x45d   : > { %2960 = vrot.lane.b32.xlu0 %v6062_v63, %s4685_s10  ;;  %2882 = vrot.lane.b32.xlu1 %v6066_v42, %s4687_s12 }
 0x461   : > { %3040 = vrot.lane.b32.xlu0 %v6062_v63, %s4688_s13  ;;  %2962 = vrot.lane.b32.xlu1 %v6066_v42, %s4685_s10 }
 0x464   : > { %v2614_v27 = vpop.f32.mrb[24].mxu0 }
 0x465   : > { %3120 = vrot.lane.b32.xlu0 %v6062_v63, %s4689_s14  ;;  %3042 = vrot.lane.b32.xlu1 %v6066_v42, %s4688_s13  ;;  %v2616_v53 = vpop.f32.mrb[25].mxu0  ;;  %v6146_v36 = vmax.f32 %v2614_v27, 0.0 }
 0x466   : > { %v6188_v38 = vmax.f32 %v2616_v53, 0.0 }
 0x467   : > { %7529 = vst [vmem:[#allocation60_spill] sm:$0xff] %v6146_v36 }
 0x468   : > { %7531 = vst [vmem:[#allocation62_spill] sm:$0xff] %v6188_v38 }
 0x469   : > { %3216 = vrot.lane.b32.xlu0 %v6062_v63, %s4691_s16  ;;  %3122 = vrot.lane.b32.xlu1 %v6066_v42, %s4689_s14  ;;  %v2620_v55 = vpop.f32.mrb[26].mxu0  ;;  %v6092_v14 = vpop.f32.mrb[28].mxu1 }
 0x46a   : > { %v2622_v5 = vpop.f32.mrb[27].mxu0  ;;  %v6094_v12 = vpop.f32.mrb[29].mxu1  ;;  %v6158_v57 = vmax.f32 %v2620_v55, 0.0  ;;  %v6235_v58 = vmax.f32 %v6092_v14, 0.0 }
 0x46b   : > { %v6194_v21 = vmax.f32 %v2622_v5, 0.0 }
 0x46c   : > { %7530 = vst [vmem:[#allocation61_spill] sm:$0xff] %v6158_v57  ;;  %7533 = vst [vmem:[#allocation64_spill] sm:$0xff] %v6235_v58 }
 0x46d   : > { %3296 = vrot.lane.b32.xlu0 %v6062_v63, %s4690_s15  ;;  %3218 = vrot.lane.b32.xlu1 %v6066_v42, %s4691_s16  ;;  %v6100_v61 = vpop.f32.mrb[30].mxu1  ;;  %7532 = vst [vmem:[#allocation63_spill] sm:$0xff] %v6194_v21 }
 0x46e   : > { %v6102_v35 = vpop.f32.mrb[31].mxu1  ;;  %v6246_v27 = vmax.f32 %v6100_v61, 0.0 }
 0x470   : > { %7534 = vst [vmem:[#allocation65_spill] sm:$0xff] %v6246_v27 }
 0x471   : > { %3376 = vrot.lane.b32.xlu0 %v6062_v63, %s4686_s11  ;;  %3298 = vrot.lane.b32.xlu1 %v6066_v42, %s4690_s15 }
 0x475   : > { %3456 = vrot.lane.b32.xlu0 %v6062_v63, %s4692_s17  ;;  %3378 = vrot.lane.b32.xlu1 %v6066_v42, %s4686_s11 }
 0x479   : > { %2884 = vrot.lane.b32.xlu0 %v6068_v29, %s4687_s12  ;;  %3458 = vrot.lane.b32.xlu1 %v6066_v42, %s4692_s17 }
 0x47d   : > { %2964 = vrot.lane.b32.xlu0 %v6068_v29, %s4685_s10  ;;  %2886 = vrot.lane.b32.xlu1 %v6070_v15, %s4687_s12 }
 0x47e   : > { %v6140_v16 = vpop.f32.mrb[28].mxu0 }
 0x47f   : > { %v6148_v9 = vpop.f32.mrb[29].mxu0  ;;  %v6377_v52 = vmax.f32 %v6140_v16, 0.0 }
 0x481   : > { %3044 = vrot.lane.b32.xlu0 %v6068_v29, %s4688_s13  ;;  %2966 = vrot.lane.b32.xlu1 %v6070_v15, %s4685_s10  ;;  %7553 = vst [vmem:[#allocation84_spill] sm:$0xff] %v6377_v52 }
 0x482   : > { %v6150_v6 = vpop.f32.mrb[30].mxu0 }
 0x483   : > { %v6156_v31 = vpop.f32.mrb[31].mxu0  ;;  %v6388_v46 = vmax.f32 %v6150_v6, 0.0 }
 0x485   : > { %3124 = vrot.lane.b32.xlu0 %v6068_v29, %s4689_s14  ;;  %3046 = vrot.lane.b32.xlu1 %v6070_v15, %s4688_s13  ;;  %7555 = vst [vmem:[#allocation86_spill] sm:$0xff] %v6388_v46 }
 0x489   : > { %3220 = vrot.lane.b32.xlu0 %v6068_v29, %s4691_s16  ;;  %3126 = vrot.lane.b32.xlu1 %v6070_v15, %s4689_s14 }
 0x48d   : > { %3300 = vrot.lane.b32.xlu0 %v6068_v29, %s4690_s15  ;;  %3222 = vrot.lane.b32.xlu1 %v6070_v15, %s4691_s16 }
 0x491   : > { %3380 = vrot.lane.b32.xlu0 %v6068_v29, %s4686_s11  ;;  %3302 = vrot.lane.b32.xlu1 %v6070_v15, %s4690_s15 }
 0x495   : > { %3460 = vrot.lane.b32.xlu0 %v6068_v29, %s4692_s17  ;;  %3382 = vrot.lane.b32.xlu1 %v6070_v15, %s4686_s11 }
 0x499   : > { %3462 = vrot.lane.b32.xlu1 %v6070_v15, %s4692_s17  ;;  %2872 = vrot.lane.b32.xlu0 %v6146_v36, %s4687_s12 }
 0x49d   : > { %2952 = vrot.lane.b32.xlu0 %v6146_v36, %s4685_s10  ;;  %2874 = vrot.lane.b32.xlu1 %v6158_v57, %s4687_s12 }
 0x4a1   : > { %3032 = vrot.lane.b32.xlu0 %v6146_v36, %s4688_s13  ;;  %2954 = vrot.lane.b32.xlu1 %v6158_v57, %s4685_s10 }
 0x4a5   : > { %3112 = vrot.lane.b32.xlu0 %v6146_v36, %s4689_s14  ;;  %3034 = vrot.lane.b32.xlu1 %v6158_v57, %s4688_s13 }
 0x4a9   : > { %3208 = vrot.lane.b32.xlu0 %v6146_v36, %s4691_s16  ;;  %3114 = vrot.lane.b32.xlu1 %v6158_v57, %s4689_s14 }
 0x4ad   : > { %3288 = vrot.lane.b32.xlu0 %v6146_v36, %s4690_s15  ;;  %3210 = vrot.lane.b32.xlu1 %v6158_v57, %s4691_s16 }
 0x4b1   : > { %3368 = vrot.lane.b32.xlu0 %v6146_v36, %s4686_s11  ;;  %3290 = vrot.lane.b32.xlu1 %v6158_v57, %s4690_s15 }
 0x4b5   : > { %3448 = vrot.lane.b32.xlu0 %v6146_v36, %s4692_s17  ;;  %3370 = vrot.lane.b32.xlu1 %v6158_v57, %s4686_s11 }
 0x4b9   : > { %2876 = vrot.lane.b32.xlu0 %v6188_v38, %s4687_s12  ;;  %3450 = vrot.lane.b32.xlu1 %v6158_v57, %s4692_s17 }
 0x4bd   : > { %2956 = vrot.lane.b32.xlu0 %v6188_v38, %s4685_s10  ;;  %2878 = vrot.lane.b32.xlu1 %v6194_v21, %s4687_s12 }
 0x4c1   : > { %3036 = vrot.lane.b32.xlu0 %v6188_v38, %s4688_s13  ;;  %2958 = vrot.lane.b32.xlu1 %v6194_v21, %s4685_s10 }
 0x4c5   : > { %3116 = vrot.lane.b32.xlu0 %v6188_v38, %s4689_s14  ;;  %3038 = vrot.lane.b32.xlu1 %v6194_v21, %s4688_s13 }
 0x4c9   : > { %3212 = vrot.lane.b32.xlu0 %v6188_v38, %s4691_s16  ;;  %3118 = vrot.lane.b32.xlu1 %v6194_v21, %s4689_s14 }
 0x4cb   : > { %v6212_v39 = vpop.permute.xlu0 %2880 }
 0x4cd   : > { %3292 = vrot.lane.b32.xlu0 %v6188_v38, %s4690_s15  ;;  %3214 = vrot.lane.b32.xlu1 %v6194_v21, %s4691_s16 }
 0x4cf   : > { %v6218_v25 = vpop.permute.xlu0 %2960  ;;  %v6220_v44 = vpop.permute.xlu1 %2882 }
 0x4d1   : > { %3372 = vrot.lane.b32.xlu0 %v6188_v38, %s4686_s11  ;;  %3294 = vrot.lane.b32.xlu1 %v6194_v21, %s4690_s15 }
 0x4d3   : > { %v6226_v10 = vpop.permute.xlu0 %3040  ;;  %v6228_v3 = vpop.permute.xlu1 %2962 }
 0x4d5   : > { %3452 = vrot.lane.b32.xlu0 %v6188_v38, %s4692_s17  ;;  %3374 = vrot.lane.b32.xlu1 %v6194_v21, %s4686_s11 }
 0x4d7   : > { %v6237_v54 = vpop.permute.xlu0 %3120  ;;  %v6239_v17 = vpop.permute.xlu1 %3042 }
 0x4d9   : > { %3454 = vrot.lane.b32.xlu1 %v6194_v21, %s4692_s17  ;;  %2896 = vrot.lane.b32.xlu0 %v6235_v58, %s4687_s12 }
 0x4db   : > { %v6248_v53 = vpop.permute.xlu0 %3216  ;;  %v6250_v55 = vpop.permute.xlu1 %3122 }
 0x4dd   : > { %2976 = vrot.lane.b32.xlu0 %v6235_v58, %s4685_s10  ;;  %2898 = vrot.lane.b32.xlu1 %v6246_v27, %s4687_s12 }
 0x4df   : > { %v6256_v14 = vpop.permute.xlu0 %3296  ;;  %v6258_v5 = vpop.permute.xlu1 %3218 }
 0x4e1   : > { %3056 = vrot.lane.b32.xlu0 %v6235_v58, %s4688_s13  ;;  %2978 = vrot.lane.b32.xlu1 %v6246_v27, %s4685_s10 }
 0x4e3   : > { %v6264_v61 = vpop.permute.xlu0 %3376  ;;  %v6266_v22 = vpop.permute.xlu1 %3298 }
 0x4e5   : > { %3136 = vrot.lane.b32.xlu0 %v6235_v58, %s4689_s14  ;;  %3058 = vrot.lane.b32.xlu1 %v6246_v27, %s4688_s13 }
 0x4e7   : > { %v6272_v40 = vpop.permute.xlu0 %3456  ;;  %v6274_v41 = vpop.permute.xlu1 %3378 }
 0x4e9   : > { %3232 = vrot.lane.b32.xlu0 %v6235_v58, %s4691_s16  ;;  %3138 = vrot.lane.b32.xlu1 %v6246_v27, %s4689_s14 }
 0x4eb   : > { %v6280_v47 = vpop.permute.xlu0 %2884  ;;  %v6282_v13 = vpop.permute.xlu1 %3458 }
 0x4ec   : > { %7535 = vst [vmem:[#allocation66_spill] sm:$0xff] %v6280_v47  ;;  %v2912_v11 = vsel %vm1891_vm4, %v6212_v39, %v6280_v47 }
 0x4ed   : > { %3312 = vrot.lane.b32.xlu0 %v6235_v58, %s4690_s15  ;;  %3234 = vrot.lane.b32.xlu1 %v6246_v27, %s4691_s16  ;;  %v2923_v32 = vmul.f32 %v2912_v11, %v5376_v59 }
 0x4ef   : > { %v6292_v62 = vpop.permute.xlu0 %2964  ;;  %v6294_v26 = vpop.permute.xlu1 %2886 }
 0x4f0   : > { %7536 = vst [vmem:[#allocation67_spill] sm:$0xff] %v6292_v62  ;;  %7537 = vst [vmem:[#allocation68_spill] sm:$0xff] %v6294_v26  ;;  %v2913_v28 = vsel %vm1891_vm4, %v6220_v44, %v6294_v26  ;;  %v2992_v21 = vsel %vm1964_vm5, %v6218_v25, %v6292_v62  ;;  %v7568_v62 = vld [vmem:[#allocation10_spill] sm:$0xff] }
 0x4f1   : > { %v2931_v18 = vmul.f32 %v2913_v28, %v5376_v59  ;;  %3392 = vrot.lane.b32.xlu0 %v6235_v58, %s4686_s11  ;;  %3314 = vrot.lane.b32.xlu1 %v6246_v27, %s4690_s15  ;;  %v6315_v59 = vmax.f32 %v6094_v12, 0.0 }
 0x4f3   : > { %v6306_v2 = vpop.permute.xlu0 %3044  ;;  %v6308_v33 = vpop.permute.xlu1 %2966  ;;  %v4449_v20 = vpack.c.bf16 %v2931_v18, %v2923_v32  ;;  %7540 = vst [vmem:[#allocation71_spill] sm:$0xff] %v6315_v59  ;;  %v6326_v32 = vmax.f32 %v6102_v35, 0.0 }
 0x4f4   : > { %7538 = vst [vmem:[#allocation69_spill] sm:$0xff] %v6306_v2  ;;  %7539 = vst [vmem:[#allocation70_spill] sm:$0xff] %v6308_v33  ;;  %v2993_v57 = vsel %vm1964_vm5, %v6228_v3, %v6308_v33 }
 0x4f5   : > { %3472 = vrot.lane.b32.xlu0 %v6235_v58, %s4692_s17  ;;  %3394 = vrot.lane.b32.xlu1 %v6246_v27, %s4686_s11  ;;  %7543 = vst [vmem:[#allocation74_spill] sm:$0xff] %v6326_v32 }
 0x4f6   : > { %4450 = vmatprep.subr.bf16.mxu1 %v4449_v20 }
 0x4f7   : > { %v6317_v28 = vpop.permute.xlu0 %3124  ;;  %v6319_v11 = vpop.permute.xlu1 %3046 }
 0x4f8   : > { %7541 = vst [vmem:[#allocation72_spill] sm:$0xff] %v6317_v28  ;;  %7542 = vst [vmem:[#allocation73_spill] sm:$0xff] %v6319_v11 }
 0x4f9   : > { %2900 = vrot.lane.b32.xlu0 %v6315_v59, %s4687_s12  ;;  %3474 = vrot.lane.b32.xlu1 %v6246_v27, %s4692_s17 }
 0x4fb   : > { %v6328_v18 = vpop.permute.xlu0 %3220  ;;  %v6330_v58 = vpop.permute.xlu1 %3126 }
 0x4fc   : > { %7544 = vst [vmem:[#allocation75_spill] sm:$0xff] %v6328_v18  ;;  %7545 = vst [vmem:[#allocation76_spill] sm:$0xff] %v6330_v58 }
 0x4fd   : > { %2980 = vrot.lane.b32.xlu0 %v6315_v59, %s4685_s10  ;;  %2902 = vrot.lane.b32.xlu1 %v6326_v32, %s4687_s12 }
 0x4ff   : > { %v6336_v20 = vpop.permute.xlu0 %3300  ;;  %v6338_v12 = vpop.permute.xlu1 %3222 }
 0x500   : > { %7546 = vst [vmem:[#allocation77_spill] sm:$0xff] %v6336_v20  ;;  %7547 = vst [vmem:[#allocation78_spill] sm:$0xff] %v6338_v12 }
 0x501   : > { %3060 = vrot.lane.b32.xlu0 %v6315_v59, %s4688_s13  ;;  %2982 = vrot.lane.b32.xlu1 %v6326_v32, %s4685_s10 }
 0x503   : > { %v6344_v35 = vpop.permute.xlu0 %3380  ;;  %v6346_v27 = vpop.permute.xlu1 %3302 }
 0x504   : > { %7548 = vst [vmem:[#allocation79_spill] sm:$0xff] %v6344_v35  ;;  %7549 = vst [vmem:[#allocation80_spill] sm:$0xff] %v6346_v27 }
 0x505   : > { %3140 = vrot.lane.b32.xlu0 %v6315_v59, %s4689_s14  ;;  %3062 = vrot.lane.b32.xlu1 %v6326_v32, %s4688_s13 }
 0x507   : > { %v6352_v19 = vpop.permute.xlu0 %3460  ;;  %v6354_v43 = vpop.permute.xlu1 %3382 }
 0x508   : > { %7550 = vst [vmem:[#allocation81_spill] sm:$0xff] %v6352_v19  ;;  %7551 = vst [vmem:[#allocation82_spill] sm:$0xff] %v6354_v43 }
 0x509   : > { %3236 = vrot.lane.b32.xlu0 %v6315_v59, %s4691_s16  ;;  %3142 = vrot.lane.b32.xlu1 %v6326_v32, %s4689_s14 }
 0x50b   : > { %v6360_v30 = vpop.permute.xlu0 %2872  ;;  %v6362_v4 = vpop.permute.xlu1 %3462 }
 0x50c   : > { %7552 = vst [vmem:[#allocation83_spill] sm:$0xff] %v6362_v4 }
 0x50d   : > { %3316 = vrot.lane.b32.xlu0 %v6315_v59, %s4690_s15  ;;  %3238 = vrot.lane.b32.xlu1 %v6326_v32, %s4691_s16 }
 0x50f   : > { %v6368_v34 = vpop.permute.xlu0 %2952  ;;  %v6370_v51 = vpop.permute.xlu1 %2874 }
 0x511   : > { %3396 = vrot.lane.b32.xlu0 %v6315_v59, %s4686_s11  ;;  %3318 = vrot.lane.b32.xlu1 %v6326_v32, %s4690_s15 }
 0x513   : > { %v6379_v47 = vpop.permute.xlu0 %3032  ;;  %v6381_v26 = vpop.permute.xlu1 %2954 }
 0x514   : > { %7554 = vst [vmem:[#allocation85_spill] sm:$0xff] %v6379_v47 }
 0x515   : > { %3398 = vrot.lane.b32.xlu1 %v6326_v32, %s4686_s11  ;;  %3224 = vrot.lane.b32.xlu0 %v6377_v52, %s4691_s16 }
 0x517   : > { %v6390_v19 = vpop.permute.xlu0 %3112  ;;  %v6392_v4 = vpop.permute.xlu1 %3034 }
 0x518   : > { %7556 = vst [vmem:[#allocation87_spill] sm:$0xff] %v6390_v19  ;;  %7557 = vst [vmem:[#allocation88_spill] sm:$0xff] %v6392_v4  ;;  %v7567_v19 = vld [vmem:[#allocation12_spill] sm:$0xff]  ;;  %v3011_v4 = vmul.f32 %v2993_v57, %v7568_v62 }
 0x519   : > { %3304 = vrot.lane.b32.xlu0 %v6377_v52, %s4690_s15  ;;  %3226 = vrot.lane.b32.xlu1 %v6388_v46, %s4691_s16 }
 0x51b   : > { %v6398_v16 = vpop.permute.xlu0 %3208  ;;  %v6400_v35 = vpop.permute.xlu1 %3114 }
 0x51c   : > { %7558 = vst [vmem:[#allocation89_spill] sm:$0xff] %v6398_v16  ;;  %7559 = vst [vmem:[#allocation90_spill] sm:$0xff] %v6400_v35 }
 0x51d   : > { %3384 = vrot.lane.b32.xlu0 %v6377_v52, %s4686_s11  ;;  %3306 = vrot.lane.b32.xlu1 %v6388_v46, %s4690_s15 }
 0x51f   : > { %v6406_v6 = vpop.permute.xlu0 %3288  ;;  %v6408_v43 = vpop.permute.xlu1 %3210 }
 0x520   : > { %7560 = vst [vmem:[#allocation91_spill] sm:$0xff] %v6406_v6  ;;  %7561 = vst [vmem:[#allocation92_spill] sm:$0xff] %v6408_v43 }
 0x521   : > { %3464 = vrot.lane.b32.xlu0 %v6377_v52, %s4692_s17  ;;  %3386 = vrot.lane.b32.xlu1 %v6388_v46, %s4686_s11 }
 0x523   : > { %v6414_v20 = vpop.permute.xlu0 %3368  ;;  %v6416_v56 = vpop.permute.xlu1 %3290 }
 0x524   : > { %7562 = vst [vmem:[#allocation93_spill] sm:$0xff] %v6414_v20  ;;  %7563 = vst [vmem:[#allocation94_spill] sm:$0xff] %v6416_v56 }
 0x525   : > { %2888 = vrot.lane.b32.xlu0 %v6377_v52, %s4687_s12  ;;  %3466 = vrot.lane.b32.xlu1 %v6388_v46, %s4692_s17 }
 0x527   : > { %v6422_v27 = vpop.permute.xlu0 %3448  ;;  %v6424_v49 = vpop.permute.xlu1 %3370 }
 0x528   : > { %7564 = vst [vmem:[#allocation95_spill] sm:$0xff] %v6422_v27  ;;  %7565 = vst [vmem:[#allocation96_spill] sm:$0xff] %v6424_v49 }
 0x529   : > { %2968 = vrot.lane.b32.xlu0 %v6377_v52, %s4685_s10  ;;  %2890 = vrot.lane.b32.xlu1 %v6388_v46, %s4687_s12 }
 0x52b   : > { %v2877_v18 = vpop.permute.xlu0 %2876  ;;  %v6430_v24 = vpop.permute.xlu1 %3450 }
 0x52c   : > { %7566 = vst [vmem:[#allocation97_spill] sm:$0xff] %v6430_v24  ;;  %v2914_v12 = vsel %vm1891_vm4, %v2877_v18, %v6212_v39  ;;  %v2916_v48 = vsel %vm1891_vm4, %v6360_v30, %v2877_v18 }
 0x52d   : > { %3048 = vrot.lane.b32.xlu0 %v6377_v52, %s4688_s13  ;;  %2970 = vrot.lane.b32.xlu1 %v6388_v46, %s4685_s10  ;;  %v2921_v38 = vmul.f32 %v2916_v48, %v5489_v8  ;;  %v2922_v33 = vmul.f32 %v2914_v12, %v7567_v19 }
 0x52f   : > { %v6446_v36 = vpop.permute.xlu0 %2956  ;;  %v2879_v1 = vpop.permute.xlu1 %2878 }
 0x530   : > { %v2915_v39 = vsel %vm1891_vm4, %v2879_v1, %v6220_v44  ;;  %v2917_v18 = vsel %vm1891_vm4, %v6370_v51, %v2879_v1  ;;  %v2994_v44 = vsel %vm1964_vm5, %v6446_v36, %v6218_v25  ;;  %v6476_v1 = vmax.f32 %v6148_v9, 0.0 }
 0x531   : > { %v2929_v35 = vmul.f32 %v2917_v18, %v5489_v8  ;;  %v2930_v47 = vmul.f32 %v2915_v39, %v7567_v19  ;;  %3128 = vrot.lane.b32.xlu0 %v6377_v52, %s4689_s14  ;;  %3050 = vrot.lane.b32.xlu1 %v6388_v46, %s4688_s13  ;;  %v3073_v8 = vsel %vm2037_vm7, %v6239_v17, %v6319_v11  ;;  %v6490_v18 = vld [vmem:[%s7310_s4 + $0x8] sm:$0xff] }
 0x532   : > { %7569 = vst [vmem:[#allocation12_spill] sm:$0xff] %v6476_v1  ;;  %v3003_v39 = vmul.f32 %v2992_v21, %v7568_v62  ;;  %v7571_v62 = vld [vmem:[#allocation14_spill] sm:$0xff]  ;;  %4132 = vmatprep.mubr.msk.f32.mxu1 %vm300_vm0, %v6490_v18  ;;  %4131 = vmatprep.mubr.msk.f32.mxu0 %vm300_vm0, %v6490_v18 }
 0x533   : > { %v4451_v48 = vpack.c.bf16 %v2930_v47, %v2922_v33  ;;  %v6478_v19 = vpop.permute.xlu0 %3036  ;;  %v6480_v57 = vpop.permute.xlu1 %2958  ;;  %v4413_v12 = vpack.c.bf16 %v2929_v35, %v2921_v38  ;;  %v3072_v33 = vsel %vm2037_vm7, %v6226_v10, %v6306_v2  ;;  %v7570_v47 = vld [vmem:[#allocation13_spill] sm:$0xff]  ;;  %v3091_v21 = vmul.f32 %v3073_v8, %v7571_v62 }
 0x534   : > { %v2995_v25 = vsel %vm1964_vm5, %v6480_v57, %v6228_v3  ;;  %v3002_v9 = vmul.f32 %v2994_v44, %v7570_v47  ;;  %v3074_v3 = vsel %vm2037_vm7, %v6478_v19, %v6226_v10  ;;  %v4453_v35 = vpack.c.bf16 %v3011_v4, %v3003_v39 }
 0x535   : > { %v3010_v38 = vmul.f32 %v2995_v25, %v7570_v47  ;;  %2892 = vrot.lane.b32.xlu0 %v6476_v1, %s4687_s12  ;;  %3130 = vrot.lane.b32.xlu1 %v6388_v46, %s4689_s14  ;;  %v3153_v44 = vsel %vm2110_vm6, %v6250_v55, %v6330_v58  ;;  %v3083_v10 = vmul.f32 %v3072_v33, %v7571_v62  ;;  %v6519_v46 = vmax.f32 %v6156_v31, 0.0  ;;  %v7574_v31 = vld [vmem:[#allocation11_spill] sm:$0xff] }
 0x536   : > { %4414 = vmatprep.subr.bf16.mxu0 %v4413_v12  ;;  %4452 = vmatpush1.bf16.msra.mxu1 %v4451_v48  ;;  %v3152_v48 = vsel %vm2110_vm6, %v6237_v54, %v6317_v28  ;;  %v7573_v12 = vld [vmem:[#allocation15_spill] sm:$0xff]  ;;  %v3171_v33 = vmul.f32 %v3153_v44, %v7574_v31  ;;  %v7575_v44 = vld [vmem:[#allocation16_spill] sm:$0xff] }
 0x537   : > { %v4455_v25 = vpack.c.bf16 %v3010_v38, %v3002_v9  ;;  %v6511_v47 = vpop.permute.xlu0 %3116  ;;  %v6513_v8 = vpop.permute.xlu1 %3038  ;;  %7572 = vst [vmem:[#allocation10_spill] sm:$0xff] %v6519_v46  ;;  %4454 = vmatprep.subr.bf16.mxu1 %v4453_v35  ;;  %v3082_v39 = vmul.f32 %v3074_v3, %v7573_v12  ;;  %v7587_v58 = vld [vmem:[#allocation19_spill] sm:$0xff] }
 0x538   : > { %v3075_v4 = vsel %vm2037_vm7, %v6513_v8, %v6239_v17  ;;  %v3154_v38 = vsel %vm2110_vm6, %v6511_v47, %v6237_v54  ;;  %v4457_v17 = vpack.c.bf16 %v3091_v21, %v3083_v10 }
 0x539   : > { %v3090_v9 = vmul.f32 %v3075_v4, %v7573_v12  ;;  %2972 = vrot.lane.b32.xlu0 %v6476_v1, %s4685_s10  ;;  %2894 = vrot.lane.b32.xlu1 %v6519_v46, %s4687_s12  ;;  %v3163_v4 = vmul.f32 %v3152_v48, %v7574_v31  ;;  %v3162_v12 = vmul.f32 %v3154_v38, %v7575_v44 }
 0x53a   : > { %4456 = vmatpush1.bf16.msra.mxu1 %v4455_v25 }
 0x53b   : > { %v4459_v62 = vpack.c.bf16 %v3090_v9, %v3082_v39  ;;  %v3213_v3 = vpop.permute.xlu0 %3212  ;;  %v6542_v35 = vpop.permute.xlu1 %3118  ;;  %4458 = vmatprep.subr.bf16.mxu1 %v4457_v17  ;;  %v4461_v48 = vpack.c.bf16 %v3171_v33, %v3163_v4  ;;  %v7576_v17 = vld [vmem:[#allocation25_spill] sm:$0xff] }
 0x53c   : > { %v3155_v54 = vsel %vm2110_vm6, %v6542_v35, %v6250_v55  ;;  %v3250_v25 = vsel %vm2191_vm8, %v3213_v3, %v6248_v53  ;;  %v3252_v10 = vsel %vm2191_vm8, %v6398_v16, %v3213_v3  ;;  %v7577_v3 = vld [vmem:[#allocation22_spill] sm:$0xff] }
 0x53d   : > { %v3170_v21 = vmul.f32 %v3155_v54, %v7575_v44  ;;  %3052 = vrot.lane.b32.xlu0 %v6476_v1, %s4688_s13  ;;  %2974 = vrot.lane.b32.xlu1 %v6519_v46, %s4685_s10  ;;  %v6568_v54 = vmul.f32 %v3252_v10, %v7576_v17  ;;  %v6571_v44 = vmul.f32 %v3250_v25, %v7577_v3 }
 0x53e   : > { %4460 = vmatpush1.bf16.msra.mxu1 %v4459_v62 }
 0x53f   : > { %v4463_v55 = vpack.c.bf16 %v3170_v21, %v3162_v12  ;;  %v3293_v39 = vpop.permute.xlu0 %3292  ;;  %v3215_v9 = vpop.permute.xlu1 %3214  ;;  %4462 = vmatprep.subr.bf16.mxu1 %v4461_v48 }
 0x540   : > { %v3251_v31 = vsel %vm2191_vm8, %v3215_v9, %v6258_v5  ;;  %v3253_v38 = vsel %vm2191_vm8, %v6408_v43, %v3215_v9  ;;  %v3330_v4 = vsel %vm2264_vm10, %v3293_v39, %v6256_v14  ;;  %v3332_v12 = vsel %vm2264_vm10, %v6406_v6, %v3293_v39  ;;  %v7586_v43 = vld [vmem:[#allocation88_spill] sm:$0xff] }
 0x541   : > { %v6574_v33 = vmul.f32 %v3253_v38, %v7576_v17  ;;  %v6577_v62 = vmul.f32 %v3251_v31, %v7577_v3  ;;  %3132 = vrot.lane.b32.xlu0 %v6476_v1, %s4689_s14  ;;  %3054 = vrot.lane.b32.xlu1 %v6519_v46, %s4688_s13  ;;  %v7578_v9 = vpack.c.bf16 %v6070_v15, %v6068_v29 }
 0x542   : > { %4464 = vmatpush1.bf16.msra.mxu1 %v4463_v55  ;;  %v6603_v38 = vmul.f32 %v3332_v12, %v5613_v60  ;;  %v6606_v55 = vmul.f32 %v3330_v4, %v5604_v0 }
 0x543   : > { %v3373_v25 = vpop.permute.xlu0 %3372  ;;  %v3295_v10 = vpop.permute.xlu1 %3294  ;;  %4466 = vmatprep.subr.bf16.mxu1 %v7578_v9 }
 0x544   : > { %v3331_v39 = vsel %vm2264_vm10, %v3295_v10, %v6266_v22  ;;  %v3333_v31 = vsel %vm2264_vm10, %v6416_v56, %v3295_v10  ;;  %v3410_v15 = vsel %vm2337_vm9, %v3373_v25, %v6264_v61  ;;  %v3412_v3 = vsel %vm2337_vm9, %v6414_v20, %v3373_v25 }
 0x545   : > { %v6609_v17 = vmul.f32 %v3333_v31, %v5613_v60  ;;  %v6612_v29 = vmul.f32 %v3331_v39, %v5604_v0  ;;  %3228 = vrot.lane.b32.xlu0 %v6476_v1, %s4691_s16  ;;  %3134 = vrot.lane.b32.xlu1 %v6519_v46, %s4689_s14  ;;  %v7579_v0 = vpack.c.bf16 %v6066_v42, %v6062_v63 }
 0x546   : > { %v6638_v39 = vmul.f32 %v3412_v3, %v5623_v7  ;;  %v6641_v31 = vmul.f32 %v3410_v15, %v5586_v50 }
 0x547   : > { %4468 = vmatpush1.bf16.msra.mxu1 %v7579_v0  ;;  %v3453_v4 = vpop.permute.xlu0 %3452  ;;  %v3375_v12 = vpop.permute.xlu1 %3374 }
 0x548   : > { %v3411_v9 = vsel %vm2337_vm9, %v3375_v12, %v6274_v41  ;;  %v3413_v25 = vsel %vm2337_vm9, %v6424_v49, %v3375_v12  ;;  %v3490_v0 = vsel %vm2410_vm11, %v3453_v4, %v6272_v40  ;;  %v3492_v3 = vsel %vm2410_vm11, %v6422_v27, %v3453_v4 }
 0x549   : > { %v6644_v63 = vmul.f32 %v3413_v25, %v5623_v7  ;;  %v6647_v42 = vmul.f32 %v3411_v9, %v5586_v50  ;;  %3308 = vrot.lane.b32.xlu0 %v6476_v1, %s4690_s15  ;;  %3230 = vrot.lane.b32.xlu1 %v6519_v46, %s4691_s16  ;;  %v6672_v25 = vmul.f32 %v5880_v45, %v3492_v3 }
 0x54a   : > { %v6675_v60 = vmul.f32 %v5885_v37, %v3490_v0 }
 0x54b   : > { %v6661_v15 = vpop.permute.xlu0 %2896  ;;  %v3455_v50 = vpop.permute.xlu1 %3454 }
 0x54c   : > { %v3491_v9 = vsel %vm2410_vm11, %v3455_v50, %v6282_v13  ;;  %v3493_v4 = vsel %vm2410_vm11, %v6430_v24, %v3455_v50 }
 0x54d   : > { %v6678_v7 = vmul.f32 %v5880_v45, %v3493_v4  ;;  %v6681_v10 = vmul.f32 %v5885_v37, %v3491_v9  ;;  %3388 = vrot.lane.b32.xlu0 %v6476_v1, %s4686_s11  ;;  %3310 = vrot.lane.b32.xlu1 %v6519_v46, %s4690_s15 }
 0x54f   : > { %v6689_v3 = vpop.permute.xlu0 %2976  ;;  %v6691_v12 = vpop.permute.xlu1 %2898 }
 0x551   : > { %3468 = vrot.lane.b32.xlu0 %v6476_v1, %s4692_s17  ;;  %3390 = vrot.lane.b32.xlu1 %v6519_v46, %s4686_s11  ;;  %v2997_v1 = vsel %vm1964_vm5, %v6381_v26, %v6480_v57 }
 0x553   : > { %v6699_v37 = vpop.permute.xlu0 %3056  ;;  %v6701_v0 = vpop.permute.xlu1 %2978 }
 0x554   : > { %7580 = vst [vmem:[#allocation13_spill] sm:$0xff] %v6699_v37 }
 0x555   : > { %3476 = vrot.lane.b32.xlu0 %v6315_v59, %s4692_s17  ;;  %3470 = vrot.lane.b32.xlu1 %v6519_v46, %s4692_s17 }
 0x557   : > { %v6707_v9 = vpop.permute.xlu0 %3136  ;;  %v6709_v4 = vpop.permute.xlu1 %3058 }
 0x558   : > { %7581 = vst [vmem:[#allocation14_spill] sm:$0xff] %v6707_v9 }
 0x559   : > { %3478 = vrot.lane.b32.xlu1 %v6326_v32, %s4692_s17 }
 0x55b   : > { %v6713_v50 = vpop.permute.xlu0 %3232  ;;  %v6715_v45 = vpop.permute.xlu1 %3138 }
 0x55c   : > { %7582 = vst [vmem:[#allocation15_spill] sm:$0xff] %v6715_v45  ;;  %v7588_v45 = vld [vmem:[#allocation85_spill] sm:$0xff] }
 0x55f   : > { %v6717_v21 = vpop.permute.xlu0 %3312  ;;  %v6719_v48 = vpop.permute.xlu1 %3234 }
 0x563   : > { %v6721_v24 = vpop.permute.xlu0 %3392  ;;  %v6723_v27 = vpop.permute.xlu1 %3314 }
 0x567   : > { %v6725_v20 = vpop.permute.xlu0 %3472  ;;  %v6727_v49 = vpop.permute.xlu1 %3394 }
 0x568   : > { %7583 = vst [vmem:[#allocation11_spill] sm:$0xff] %v6725_v20  ;;  %v2996_v20 = vsel %vm1964_vm5, %v6368_v34, %v6446_v36 }
 0x56b   : > { %v6729_v52 = vpop.permute.xlu0 %2900  ;;  %v6731_v46 = vpop.permute.xlu1 %3474 }
 0x56c   : > { %7584 = vst [vmem:[#allocation16_spill] sm:$0xff] %v6731_v46  ;;  %v2918_v56 = vsel %vm1891_vm4, %v6729_v52, %v6360_v30  ;;  %v7585_v46 = vld [vmem:[#allocation17_spill] sm:$0xff]  ;;  %v3077_v30 = vsel %vm2037_vm7, %v7586_v43, %v6513_v8 }
 0x56d   : > { %v3009_v28 = vmul.f32 %v2997_v1, %v7585_v46  ;;  %v2920_v11 = vmul.f32 %v2918_v56, %v7587_v58  ;;  %v3001_v2 = vmul.f32 %v2996_v20, %v7585_v46  ;;  %v7589_v56 = vld [vmem:[#allocation21_spill] sm:$0xff] }
 0x56e   : > { %v3089_v9 = vmul.f32 %v3077_v30, %v7589_v56 }
 0x56f   : > { %v6745_v6 = vpop.permute.xlu0 %2980  ;;  %v6747_v16 = vpop.permute.xlu1 %2902 }
 0x570   : > { %v2919_v57 = vsel %vm1891_vm4, %v6747_v16, %v6370_v51  ;;  %v2998_v1 = vsel %vm1964_vm5, %v6745_v6, %v6368_v34  ;;  %v3076_v51 = vsel %vm2037_vm7, %v7588_v45, %v6478_v19  ;;  %v7590_v34 = vld [vmem:[#allocation90_spill] sm:$0xff] }
 0x571   : > { %v2928_v36 = vmul.f32 %v2919_v57, %v7587_v58  ;;  %v4417_v58 = vpack.c.bf16 %v3009_v28, %v3001_v2  ;;  %v3157_v20 = vsel %vm2110_vm6, %v7590_v34, %v6542_v35  ;;  %v7591_v57 = vld [vmem:[#allocation20_spill] sm:$0xff] }
 0x572   : > { %v3000_v19 = vmul.f32 %v2998_v1, %v7591_v57 }
 0x573   : > { %v4415_v32 = vpack.c.bf16 %v2928_v36, %v2920_v11  ;;  %v6769_v59 = vpop.permute.xlu0 %3060  ;;  %v6771_v8 = vpop.permute.xlu1 %2982  ;;  %v3081_v36 = vmul.f32 %v3076_v51, %v7589_v56 }
 0x574   : > { %v2999_v46 = vsel %vm1964_vm5, %v6771_v8, %v6381_v26  ;;  %v3078_v30 = vsel %vm2037_vm7, %v6769_v59, %v7588_v45  ;;  %v7592_v26 = vld [vmem:[#allocation87_spill] sm:$0xff] }
 0x575   : > { %v3008_v11 = vmul.f32 %v2999_v46, %v7591_v57  ;;  %4416 = vmatpush1.bf16.msra.mxu0 %v4415_v32  ;;  %v3156_v2 = vsel %vm2110_vm6, %v7592_v26, %v6511_v47  ;;  %v7593_v46 = vld [vmem:[#allocation18_spill] sm:$0xff]  ;;  %v4421_v56 = vpack.c.bf16 %v3089_v9, %v3081_v36  ;;  %v7594_v45 = vld [vmem:[#allocation23_spill] sm:$0xff]  ;;  %v7595_v36 = vld [vmem:[#allocation24_spill] sm:$0xff] }
 0x576   : > { %4418 = vmatprep.subr.bf16.mxu0 %v4417_v58  ;;  %v3169_v32 = vmul.f32 %v3157_v20, %v7593_v46  ;;  %v3080_v58 = vmul.f32 %v3078_v30, %v7594_v45  ;;  %v3161_v47 = vmul.f32 %v3156_v2, %v7593_v46 }
 0x577   : > { %v4419_v28 = vpack.c.bf16 %v3008_v11, %v3000_v19  ;;  %v6793_v35 = vpop.permute.xlu0 %3140  ;;  %v6795_v1 = vpop.permute.xlu1 %3062 }
 0x578   : > { %v3079_v51 = vsel %vm2037_vm7, %v6795_v1, %v7586_v43  ;;  %v3158_v19 = vsel %vm2110_vm6, %v6793_v35, %v7592_v26  ;;  %v4425_v9 = vpack.c.bf16 %v3169_v32, %v3161_v47  ;;  %v7596_v32 = vld [vmem:[#allocation62_spill] sm:$0xff] }
 0x579   : > { %v3088_v57 = vmul.f32 %v3079_v51, %v7594_v45  ;;  %4420 = vmatpush1.bf16.msra.mxu0 %v4419_v28  ;;  %v3160_v30 = vmul.f32 %v3158_v19, %v7595_v36 }
 0x57a   : > { %4422 = vmatprep.subr.bf16.mxu0 %v4421_v56  ;;  %v7597_v56 = vld [vmem:[#allocation63_spill] sm:$0xff] }
 0x57b   : > { %v4423_v20 = vpack.c.bf16 %v3088_v57, %v3080_v58  ;;  %v6809_v11 = vpop.permute.xlu0 %3236  ;;  %v6811_v37 = vpop.permute.xlu1 %3142  ;;  %v4429_v45 = vpack.c.bf16 %v7597_v56, %v7596_v32  ;;  %v7598_v58 = vld [vmem:[#allocation41_spill] sm:$0xff] }
 0x57c   : > { %v3159_v43 = vsel %vm2110_vm6, %v6811_v37, %v7590_v34  ;;  %v3240_v26 = vsel %vm2191_vm8, %v6713_v50, %v6809_v11 }
 0x57d   : > { %v3168_v2 = vmul.f32 %v3159_v43, %v7595_v36  ;;  %4424 = vmatpush1.bf16.msra.mxu0 %v4423_v20  ;;  %v6834_v57 = vmul.f32 %v3240_v26, %v7598_v58  ;;  %v7599_v36 = vld [vmem:[#allocation60_spill] sm:$0xff] }
 0x57e   : > { %4426 = vmatprep.subr.bf16.mxu0 %v4425_v9 }
 0x57f   : > { %v4427_v28 = vpack.c.bf16 %v3168_v2, %v3160_v30  ;;  %v6823_v46 = vpop.permute.xlu0 %3316  ;;  %v6825_v51 = vpop.permute.xlu1 %3238  ;;  %v7600_v30 = vld [vmem:[#allocation61_spill] sm:$0xff] }
 0x580   : > { %v3241_v34 = vsel %vm2191_vm8, %v6719_v48, %v6825_v51  ;;  %v3320_v19 = vsel %vm2264_vm10, %v6717_v21, %v6823_v46  ;;  %v4431_v2 = vpack.c.bf16 %v7600_v30, %v7599_v36 }
 0x581   : > { %v6837_v47 = vmul.f32 %v3241_v34, %v7598_v58  ;;  %4428 = vmatpush1.bf16.msra.mxu0 %v4427_v28  ;;  %v7601_v28 = vld [vmem:[#allocation44_spill] sm:$0xff]  ;;  %v7610_v58 = vld [vmem:[#allocation75_spill] sm:$0xff] }
 0x582   : > { %4430 = vmatprep.subr.bf16.mxu0 %v4429_v45  ;;  %v6856_v34 = vmul.f32 %v3320_v19, %v7601_v28  ;;  %v7604_v45 = vpack.c.bf16 %v6577_v62, %v6571_v44 }
 0x583   : > { %v6845_v43 = vpop.permute.xlu0 %3396  ;;  %v6847_v9 = vpop.permute.xlu1 %3318 }
 0x584   : > { %v3321_v26 = vsel %vm2264_vm10, %v6723_v27, %v6847_v9  ;;  %7602 = vst [vmem:[#allocation25_spill] sm:$0xff] %v6856_v34  ;;  %v3400_v56 = vsel %vm2337_vm9, %v6721_v24, %v6845_v43  ;;  %v7611_v34 = vpack.c.bf16 %v6612_v29, %v6606_v55  ;;  %v7613_v29 = vld [vmem:[#allocation80_spill] sm:$0xff] }
 0x585   : > { %v6859_v32 = vmul.f32 %v3321_v26, %v7601_v28  ;;  %4432 = vmatpush1.bf16.msra.mxu0 %v4431_v2  ;;  %v7605_v2 = vld [vmem:[#allocation78_spill] sm:$0xff]  ;;  %v7606_v28 = vld [vmem:[#allocation45_spill] sm:$0xff] }
 0x586   : > { %4434 = vmatprep.subr.bf16.mxu0 %v7604_v45  ;;  %v3249_v26 = vsel %vm2191_vm8, %v6258_v5, %v7605_v2  ;;  %v6883_v44 = vmul.f32 %v3400_v56, %v7606_v28  ;;  %v7609_v45 = vpack.c.bf16 %v6574_v33, %v6568_v54  ;;  %v3248_v5 = vsel %vm2191_vm8, %v6248_v53, %v7610_v58  ;;  %v7612_v33 = vld [vmem:[#allocation26_spill] sm:$0xff]  ;;  %v7614_v53 = vld [vmem:[#allocation27_spill] sm:$0xff] }
 0x587   : > { %7603 = vst [vmem:[#allocation22_spill] sm:$0xff] %v6859_v32  ;;  %v6870_v36 = vpop.permute.xlu0 %3224  ;;  %v6872_v19 = vpop.permute.xlu1 %3398  ;;  %v7615_v56 = vpack.c.bf16 %v6609_v17, %v6603_v38 }
 0x588   : > { %v3401_v30 = vsel %vm2337_vm9, %v6727_v49, %v6872_v19  ;;  %7607 = vst [vmem:[#allocation17_spill] sm:$0xff] %v6883_v44  ;;  %v3246_v20 = vsel %vm2191_vm8, %v7610_v58, %v6870_v36  ;;  %v7616_v44 = vld [vmem:[#allocation77_spill] sm:$0xff] }
 0x589   : > { %v6886_v62 = vmul.f32 %v3401_v30, %v7606_v28  ;;  %4436 = vmatpush1.bf16.msra.mxu0 %v7609_v45  ;;  %v3266_v28 = vmul.f32 %v3249_v26, %v7612_v33  ;;  %v3259_v58 = vmul.f32 %v3246_v20, %v7614_v53  ;;  %v3258_v26 = vmul.f32 %v3248_v5, %v7612_v33 }
 0x58a   : > { %4438 = vmatprep.subr.bf16.mxu0 %v7611_v34  ;;  %v3329_v34 = vsel %vm2264_vm10, %v6266_v22, %v7613_v29  ;;  %v3328_v22 = vsel %vm2264_vm10, %v6256_v14, %v7616_v44 }
 0x58b   : > { %7608 = vst [vmem:[#allocation88_spill] sm:$0xff] %v6886_v62  ;;  %v6904_v30 = vpop.permute.xlu0 %3304  ;;  %v6906_v54 = vpop.permute.xlu1 %3226  ;;  %v7617_v62 = vpack.c.bf16 %v6647_v42, %v6641_v31  ;;  %v4471_v5 = vpack.c.bf16 %v3266_v28, %v3258_v26  ;;  %v7619_v31 = vld [vmem:[#allocation82_spill] sm:$0xff] }
 0x58c   : > { %v3247_v55 = vsel %vm2191_vm8, %v7605_v2, %v6906_v54  ;;  %v3326_v2 = vsel %vm2264_vm10, %v7616_v44, %v6904_v30  ;;  %v3409_v42 = vsel %vm2337_vm9, %v6274_v41, %v7619_v31 }
 0x58d   : > { %v3267_v45 = vmul.f32 %v3247_v55, %v7614_v53  ;;  %4440 = vmatpush1.bf16.msra.mxu0 %v7615_v56  ;;  %v7618_v56 = vld [vmem:[#allocation31_spill] sm:$0xff]  ;;  %v7621_v53 = vpack.c.bf16 %v6644_v63, %v6638_v39 }
 0x58e   : > { %4442 = vmatprep.subr.bf16.mxu0 %v7617_v62  ;;  %v3346_v33 = vmul.f32 %v3329_v34, %v7618_v56  ;;  %v7620_v62 = vld [vmem:[#allocation29_spill] sm:$0xff]  ;;  %v3338_v28 = vmul.f32 %v3328_v22, %v7618_v56  ;;  %v7622_v34 = vld [vmem:[#allocation79_spill] sm:$0xff] }
 0x58f   : > { %v6934_v20 = vpop.permute.xlu0 %3384  ;;  %v6936_v38 = vpop.permute.xlu1 %3306  ;;  %v4469_v17 = vpack.c.bf16 %v3267_v45, %v3259_v58  ;;  %v3339_v14 = vmul.f32 %v3326_v2, %v7620_v62  ;;  %v7623_v58 = vpack.c.bf16 %v6681_v10, %v6675_v60  ;;  %v3408_v41 = vsel %vm2337_vm9, %v6264_v61, %v7622_v34  ;;  %v7625_v2 = vld [vmem:[#allocation28_spill] sm:$0xff]  ;;  %v7626_v10 = vld [vmem:[#allocation83_spill] sm:$0xff] }
 0x590   : > { %v3327_v55 = vsel %vm2264_vm10, %v7613_v29, %v6936_v38  ;;  %v3406_v29 = vsel %vm2337_vm9, %v7622_v34, %v6934_v20  ;;  %v4475_v26 = vpack.c.bf16 %v3346_v33, %v3338_v28  ;;  %v3426_v22 = vmul.f32 %v3409_v42, %v7625_v2  ;;  %v6985_v33 = vld [vmem:[%s7310_s4] sm:$0xff]  ;;  %v7630_v42 = vld [vmem:[#allocation81_spill] sm:$0xff] }
 0x591   : > { %v3347_v44 = vmul.f32 %v3327_v55, %v7620_v62  ;;  %4444 = vmatpush1.bf16.msra.mxu0 %v7621_v53  ;;  %4470 = vmatprep.subr.bf16.mxu1 %v4469_v17  ;;  %v3489_v17 = vsel %vm2410_vm11, %v6282_v13, %v7626_v10  ;;  %v7628_v55 = vpack.c.bf16 %v6678_v7, %v6672_v25 }
 0x592   : > { %4446 = vmatprep.subr.bf16.mxu0 %v7623_v58  ;;  %4472 = vmatpush1.bf16.msra.mxu1 %v4471_v5  ;;  %v7627_v5 = vld [vmem:[#allocation30_spill] sm:$0xff]  ;;  %7629 = vst [vmem:[#allocation85_spill] sm:$0xff] %v6985_v33  ;;  %v2905_v13 = vsel %vm1891_vm4, %v6691_v12, %v6747_v16  ;;  %v3488_v7 = vsel %vm2410_vm11, %v6272_v40, %v7630_v42 }
 0x593   : > { %v6964_v39 = vpop.permute.xlu0 %3464  ;;  %v6966_v63 = vpop.permute.xlu1 %3386  ;;  %v4473_v45 = vpack.c.bf16 %v3347_v44, %v3339_v14  ;;  %v3419_v61 = vmul.f32 %v3406_v29, %v7627_v5  ;;  %v4600_v16 = vld [vmem:[%s7311_s5 + $0x50] ss:$0 sm:$0xff]  ;;  %v2904_v34 = vsel %vm1891_vm4, %v6661_v15, %v6729_v52  ;;  %v7631_v29 = vld [vmem:[#allocation33_spill] sm:$0xff] }
 0x594   : > { %7624 = vst [vmem:[#allocation19_spill] sm:$0xff] %v6964_v39  ;;  %v3407_v60 = vsel %vm2337_vm9, %v7619_v31, %v6966_v63  ;;  %v3418_v31 = vmul.f32 %v3408_v41, %v7625_v2  ;;  %v3486_v62 = vsel %vm2410_vm11, %v7630_v42, %v6964_v39  ;;  %v3506_v28 = vmul.f32 %v4600_v16, %v3489_v17  ;;  %v4601_v41 = vld [vmem:[%s7311_s5 + $0x58] ss:$0 sm:$0xff]  ;;  %v7648_v39 = vld [vmem:[#allocation69_spill] sm:$0xff] }
 0x595   : > { %v3427_v56 = vmul.f32 %v3407_v60, %v7627_v5  ;;  %4448 = vmatpush1.bf16.msra.mxu0 %v7628_v55  ;;  %4474 = vmatprep.subr.bf16.mxu1 %v4473_v45  ;;  %v2935_v58 = vmul.f32 %v2905_v13, %v7631_v29  ;;  %v3499_v45 = vmul.f32 %v4601_v41, %v3486_v62 }
 0x596   : > { %4476 = vmatpush1.bf16.msra.mxu1 %v4475_v26  ;;  %v4479_v53 = vpack.c.bf16 %v3426_v22, %v3418_v31  ;;  %v3498_v52 = vmul.f32 %v4600_v16, %v3488_v7  ;;  %v2927_v2 = vmul.f32 %v2904_v34, %v7631_v29  ;;  %v2985_v55 = vsel %vm1964_vm5, %v6701_v0, %v6771_v8  ;;  %v7633_v8 = vld [vmem:[#allocation32_spill] sm:$0xff]  ;;  %v7635_v34 = vld [vmem:[#allocation14_spill] sm:$0xff] }
 0x597   : > { %v2889_v25 = vpop.permute.xlu0 %2888  ;;  %v7000_v14 = vpop.permute.xlu1 %3466  ;;  %v4477_v44 = vpack.c.bf16 %v3427_v56, %v3419_v61  ;;  %v3065_v13 = vsel %vm2037_vm7, %v6709_v4, %v6795_v1  ;;  %v2984_v62 = vsel %vm1964_vm5, %v6689_v3, %v6745_v6  ;;  %v7636_v29 = vld [vmem:[#allocation68_spill] sm:$0xff] }
 0x598   : > { %v3487_v40 = vsel %vm2410_vm11, %v7626_v10, %v7000_v14  ;;  %3742 = vmatmul.mubr.f32.vlgmr.msra.gmra.mrb[32].mxu0 %v6985_v33  ;;  %v4483_v17 = vpack.c.bf16 %v3506_v28, %v3498_v52  ;;  %v4521_v5 = vpack.c.bf16 %v2935_v58, %v2927_v2  ;;  %v3007_v1 = vmul.f32 %v2984_v62, %v7633_v8  ;;  %v7638_v2 = vld [vmem:[#allocation71_spill] sm:$0xff] }
 0x599   : > { %v3507_v26 = vmul.f32 %v4601_v41, %v3487_v40  ;;  %4478 = vmatprep.subr.bf16.mxu1 %v4477_v44  ;;  %4133 = vmatprep.mubr.msk.f32.mxu0 %vm300_vm0, %v6490_v18  ;;  %v3015_v44 = vmul.f32 %v2985_v55, %v7633_v8  ;;  %v3144_v40 = vsel %vm2110_vm6, %v7635_v34, %v6793_v35  ;;  %v7637_v41 = vld [vmem:[#allocation66_spill] sm:$0xff]  ;;  %v7641_v55 = vld [vmem:[#allocation48_spill] sm:$0xff] }
 0x59a   : > { %4480 = vmatpush1.bf16.msra.mxu1 %v4479_v53  ;;  %v7634_v53 = vld [vmem:[#allocation37_spill] sm:$0xff]  ;;  %v7647_v35 = vld [vmem:[#allocation46_spill] sm:$0xff] }
 0x59b   : > { %v2969_v22 = vpop.permute.xlu0 %2968  ;;  %v2891_v60 = vpop.permute.xlu1 %2890  ;;  %v4481_v10 = vpack.c.bf16 %v3507_v26, %v3499_v45  ;;  %v7046_v16 = vmul.f32 %v3065_v13, %v7634_v53  ;;  %v2910_v45 = vsel %vm1891_vm4, %v7637_v41, %v2889_v25  ;;  %v4525_v52 = vpack.c.bf16 %v3015_v44, %v3007_v1  ;;  %v7643_v1 = vld [vmem:[#allocation67_spill] sm:$0xff] }
 0x59c   : > { %v2911_v6 = vsel %vm1891_vm4, %v7636_v29, %v2891_v60  ;;  %v2924_v44 = vmul.f32 %v2910_v45, %v7641_v55  ;;  %v7644_v29 = vld [vmem:[#allocation70_spill] sm:$0xff]  ;;  %v7646_v45 = vld [vmem:[#allocation35_spill] sm:$0xff] }
 0x59d   : > { %4482 = vmatprep.subr.bf16.mxu1 %v4481_v10  ;;  %v7639_v10 = vld [vmem:[#allocation74_spill] sm:$0xff]  ;;  %v2932_v13 = vmul.f32 %v2911_v6, %v7641_v55 }
 0x59e   : > { %4484 = vmatpush1.bf16.msra.mxu1 %v4483_v17  ;;  %v7640_v17 = vld [vmem:[#allocation34_spill] sm:$0xff] }
 0x59f   : > { %v3049_v61 = vpop.permute.xlu0 %3048  ;;  %4522 = vmatprep.subr.bf16.mxu1 %v4521_v5  ;;  %v2971_v56 = vpop.permute.xlu1 %2970  ;;  %v7069_v5 = vmul.f32 %v3144_v40, %v7640_v17  ;;  %v2990_v40 = vsel %vm1964_vm5, %v7643_v1, %v2969_v22 }
 0x5a0   : > { %v2991_v6 = vsel %vm1964_vm5, %v7644_v29, %v2971_v56 }
 0x5a1   : > { %3813 = vmatmul.mubr.f32.vlgmr.msra.gmra.mrb[32].mxu1 %v6985_v33  ;;  %v3004_v33 = vmul.f32 %v2990_v40, %v7647_v35  ;;  %v3012_v32 = vmul.f32 %v2991_v6, %v7647_v35 }
 0x5a2   : > { %4134 = vmatprep.mubr.msk.f32.mxu1 %vm300_vm0, %v6490_v18  ;;  %v7632_v18 = vld [vmem:[#allocation13_spill] sm:$0xff] }
 0x5a3   : > { %v7028_v31 = vpop.permute.xlu0 %3128  ;;  %v7034_v42 = vpop.permute.xlu1 %3050  ;;  %v3064_v7 = vsel %vm2037_vm7, %v7632_v18, %v6769_v59 }
 0x5a4   : > { %v7059_v59 = vmul.f32 %v3064_v7, %v7634_v53  ;;  %v7642_v53 = vld [vmem:[#allocation15_spill] sm:$0xff] }
 0x5a6   : > { %v4529_v8 = vpack.c.bf16 %v7046_v16, %v7059_v59 }
 0x5a7   : > { %v2893_v28 = vpop.permute.xlu0 %2892  ;;  %v7056_v58 = vpop.permute.xlu1 %3130 }
 0x5a8   : > { %v2908_v26 = vsel %vm1891_vm4, %v2889_v25, %v2893_v28  ;;  %v2906_v62 = vsel %vm1891_vm4, %v2893_v28, %v6661_v15  ;;  %v3145_v25 = vsel %vm2110_vm6, %v7642_v53, %v6811_v37  ;;  %v7645_v28 = vld [vmem:[#allocation49_spill] sm:$0xff] }
 0x5a9   : > { %v2925_v41 = vmul.f32 %v2908_v26, %v7645_v28  ;;  %v2926_v55 = vmul.f32 %v2906_v62, %v7646_v45  ;;  %v7649_v62 = vld [vmem:[#allocation73_spill] sm:$0xff] }
 0x5ab   : > { %v2973_v7 = vpop.permute.xlu0 %2972  ;;  %v2895_v15 = vpop.permute.xlu1 %2894 }
 0x5ac   : > { %v2988_v16 = vsel %vm1964_vm5, %v2969_v22, %v2973_v7  ;;  %v2907_v37 = vsel %vm1891_vm4, %v2895_v15, %v6691_v12  ;;  %v2909_v59 = vsel %vm1891_vm4, %v2891_v60, %v2895_v15  ;;  %v2986_v1 = vsel %vm1964_vm5, %v2973_v7, %v6689_v3  ;;  %v7650_v3 = vld [vmem:[#allocation47_spill] sm:$0xff] }
 0x5ad   : > { %v2933_v29 = vmul.f32 %v2909_v59, %v7645_v28  ;;  %v2934_v26 = vmul.f32 %v2907_v37, %v7646_v45  ;;  %v4487_v22 = vpack.c.bf16 %v2932_v13, %v2924_v44  ;;  %v3070_v12 = vsel %vm2037_vm7, %v7648_v39, %v3049_v61  ;;  %v7651_v45 = vld [vmem:[#allocation36_spill] sm:$0xff] }
 0x5ae   : > { %v3071_v15 = vsel %vm2037_vm7, %v7649_v62, %v7034_v42  ;;  %v3005_v7 = vmul.f32 %v2988_v16, %v7650_v3  ;;  %v3006_v40 = vmul.f32 %v2986_v1, %v7651_v45  ;;  %v3175_v16 = vmul.f32 %v3145_v25, %v7640_v17 }
 0x5af   : > { %v3053_v60 = vpop.permute.xlu0 %3052  ;;  %v4523_v28 = vpack.c.bf16 %v2934_v26, %v2926_v55  ;;  %v2975_v59 = vpop.permute.xlu1 %2974  ;;  %v4485_v37 = vpack.c.bf16 %v2933_v29, %v2925_v41  ;;  %v7652_v55 = vld [vmem:[#allocation52_spill] sm:$0xff]  ;;  %v4491_v1 = vpack.c.bf16 %v3012_v32, %v3004_v33 }
 0x5b0   : > { %v3066_v13 = vsel %vm2037_vm7, %v3053_v60, %v7632_v18  ;;  %v2987_v39 = vsel %vm1964_vm5, %v2975_v59, %v6701_v0  ;;  %v2989_v35 = vsel %vm1964_vm5, %v2971_v56, %v2975_v59  ;;  %v3068_v44 = vsel %vm2037_vm7, %v3049_v61, %v3053_v60  ;;  %v7653_v56 = vld [vmem:[#allocation76_spill] sm:$0xff] }
 0x5b1   : > { %v3013_v6 = vmul.f32 %v2989_v35, %v7650_v3  ;;  %v3014_v41 = vmul.f32 %v2987_v39, %v7651_v45  ;;  %4486 = vmatprep.subr.bf16.mxu0 %v4485_v37  ;;  %4524 = vmatpush1.bf16.msra.mxu1 %v4523_v28  ;;  %v3084_v18 = vmul.f32 %v3070_v12, %v7652_v55  ;;  %v7654_v3 = vld [vmem:[#allocation53_spill] sm:$0xff]  ;;  %v7655_v59 = vld [vmem:[#allocation40_spill] sm:$0xff] }
 0x5b2   : > { %4488 = vmatpush1.bf16.msra.mxu0 %v4487_v22  ;;  %4526 = vmatprep.subr.bf16.mxu1 %v4525_v52  ;;  %v3092_v29 = vmul.f32 %v3071_v15, %v7652_v55  ;;  %v3151_v61 = vsel %vm2110_vm6, %v7653_v56, %v7056_v58  ;;  %v3085_v28 = vmul.f32 %v3068_v44, %v7654_v3  ;;  %v7656_v12 = vld [vmem:[#allocation92_spill] sm:$0xff]  ;;  %v7658_v44 = vld [vmem:[#allocation50_spill] sm:$0xff] }
 0x5b3   : > { %v3133_v0 = vpop.permute.xlu0 %3132  ;;  %v4527_v26 = vpack.c.bf16 %v3014_v41, %v3006_v40  ;;  %v3055_v60 = vpop.permute.xlu1 %3054  ;;  %v4489_v62 = vpack.c.bf16 %v3013_v6, %v3005_v7  ;;  %v3086_v17 = vmul.f32 %v3066_v13, %v7655_v59  ;;  %v3255_v15 = vsel %vm2191_vm8, %v6825_v51, %v7656_v12  ;;  %v7657_v37 = vld [vmem:[#allocation72_spill] sm:$0xff]  ;;  %v7659_v6 = vld [vmem:[#allocation51_spill] sm:$0xff]  ;;  %v7663_v56 = vld [vmem:[#allocation38_spill] sm:$0xff] }
 0x5b4   : > { %v3067_v32 = vsel %vm2037_vm7, %v3055_v60, %v6709_v4  ;;  %v3069_v33 = vsel %vm2037_vm7, %v7034_v42, %v3055_v60  ;;  %v3148_v52 = vsel %vm2110_vm6, %v7028_v31, %v3133_v0  ;;  %v3146_v4 = vsel %vm2110_vm6, %v3133_v0, %v7635_v34  ;;  %v7662_v0 = vld [vmem:[#allocation91_spill] sm:$0xff]  ;;  %v7669_v12 = vld [vmem:[#allocation65_spill] sm:$0xff] }
 0x5b5   : > { %v3093_v25 = vmul.f32 %v3069_v33, %v7654_v3  ;;  %v3094_v22 = vmul.f32 %v3067_v32, %v7655_v59  ;;  %4490 = vmatprep.subr.bf16.mxu0 %v4489_v62  ;;  %4528 = vmatpush1.bf16.msra.mxu1 %v4527_v26  ;;  %v4533_v7 = vpack.c.bf16 %v3175_v16, %v7069_v5  ;;  %v7664_v26 = vld [vmem:[#allocation94_spill] sm:$0xff]  ;;  %v7665_v32 = vld [vmem:[#allocation55_spill] sm:$0xff] }
 0x5b6   : > { %4492 = vmatpush1.bf16.msra.mxu0 %v4491_v1  ;;  %4530 = vmatprep.subr.bf16.mxu1 %v4529_v8  ;;  %v3150_v45 = vsel %vm2110_vm6, %v7657_v37, %v7028_v31  ;;  %v4495_v40 = vpack.c.bf16 %v3092_v29, %v3084_v18  ;;  %v3172_v51 = vmul.f32 %v3151_v61, %v7658_v44  ;;  %v7660_v8 = vld [vmem:[#allocation39_spill] sm:$0xff]  ;;  %v7661_v18 = vld [vmem:[#allocation89_spill] sm:$0xff] }
 0x5b7   : > { %v3229_v42 = vpop.permute.xlu0 %3228  ;;  %v4531_v13 = vpack.c.bf16 %v3094_v22, %v3086_v17  ;;  %v3135_v39 = vpop.permute.xlu1 %3134  ;;  %v4493_v35 = vpack.c.bf16 %v3093_v25, %v3085_v28  ;;  %v3165_v41 = vmul.f32 %v3148_v52, %v7659_v6  ;;  %v3166_v16 = vmul.f32 %v3146_v4, %v7660_v8  ;;  %v7667_v52 = vld [vmem:[#allocation10_spill] sm:$0xff]  ;;  %v7668_v22 = vld [vmem:[#allocation64_spill] sm:$0xff]  ;;  %v7670_v4 = vld [vmem:[#allocation43_spill] sm:$0xff] }
 0x5b8   : > { %v3147_v34 = vsel %vm2110_vm6, %v3135_v39, %v7642_v53  ;;  %v3149_v5 = vsel %vm2110_vm6, %v7056_v58, %v3135_v39  ;;  %v3254_v1 = vsel %vm2191_vm8, %v6809_v11, %v7661_v18  ;;  %v3334_v53 = vsel %vm2264_vm10, %v6823_v46, %v7662_v0  ;;  %v7678_v18 = vld [vmem:[#allocation42_spill] sm:$0xff] }
 0x5b9   : > { %v3173_v31 = vmul.f32 %v3149_v5, %v7659_v6  ;;  %v3174_v55 = vmul.f32 %v3147_v34, %v7660_v8  ;;  %4494 = vmatprep.subr.bf16.mxu0 %v4493_v35  ;;  %4532 = vmatpush1.bf16.msra.mxu1 %v4531_v13  ;;  %v3164_v58 = vmul.f32 %v3150_v45, %v7658_v44  ;;  %v7672_v13 = vld [vmem:[#allocation54_spill] sm:$0xff]  ;;  %v7673_v44 = vld [vmem:[#allocation84_spill] sm:$0xff]  ;;  %v7676_v8 = vld [vmem:[#allocation57_spill] sm:$0xff] }
 0x5ba   : > { %4496 = vmatpush1.bf16.msra.mxu0 %v4495_v40  ;;  %4534 = vmatprep.subr.bf16.mxu1 %v4533_v7  ;;  %v3271_v61 = vmul.f32 %v3255_v15, %v7663_v56  ;;  %v3335_v60 = vsel %vm2264_vm10, %v6847_v9, %v7664_v26  ;;  %v3242_v46 = vsel %vm2191_vm8, %v3229_v42, %v6713_v50  ;;  %v7666_v9 = vld [vmem:[#allocation12_spill] sm:$0xff] }
 0x5bb   : > { %v3309_v29 = vpop.permute.xlu0 %3308  ;;  %v4535_v62 = vpack.c.bf16 %v3174_v55, %v3166_v16  ;;  %v3231_v3 = vpop.permute.xlu1 %3230  ;;  %v4497_v11 = vpack.c.bf16 %v3173_v31, %v3165_v41  ;;  %v4499_v28 = vpack.c.bf16 %v3172_v51, %v3164_v58  ;;  %v4501_v25 = vpack.c.bf16 %v7667_v52, %v7666_v9  ;;  %v7674_v51 = vld [vmem:[#allocation86_spill] sm:$0xff]  ;;  %v7675_v41 = vld [vmem:[#allocation96_spill] sm:$0xff]  ;;  %v7683_v9 = vld [vmem:[#allocation11_spill] sm:$0xff] }
 0x5bc   : > { %v3243_v59 = vsel %vm2191_vm8, %v3231_v3, %v6719_v48  ;;  %v3245_v17 = vsel %vm2191_vm8, %v6906_v54, %v3231_v3  ;;  %v4539_v15 = vpack.c.bf16 %v7669_v12, %v7668_v22  ;;  %v3263_v50 = vmul.f32 %v3254_v1, %v7663_v56  ;;  %v4602_v12 = vld [vmem:[%s7311_s5 + $0x68] ss:$0 sm:$0xff] }
 0x5bd   : > { %v3269_v33 = vmul.f32 %v3243_v59, %v7665_v32  ;;  %4498 = vmatprep.subr.bf16.mxu0 %v4497_v11  ;;  %4536 = vmatpush1.bf16.msra.mxu1 %v4535_v62  ;;  %v3351_v7 = vmul.f32 %v3335_v60, %v7670_v4  ;;  %v3244_v48 = vsel %vm2191_vm8, %v6870_v36, %v3229_v42  ;;  %v7680_v62 = vld [vmem:[#allocation59_spill] sm:$0xff] }
 0x5be   : > { %4500 = vmatpush1.bf16.msra.mxu0 %v4499_v28  ;;  %v7671_v54 = vpack.c.bf16 %v7639_v10, %v7638_v2  ;;  %v3343_v45 = vmul.f32 %v3334_v53, %v7670_v4  ;;  %v3261_v40 = vmul.f32 %v3242_v46, %v7665_v32  ;;  %v3268_v39 = vmul.f32 %v3245_v17, %v7672_v13  ;;  %v7682_v46 = vld [vmem:[#allocation58_spill] sm:$0xff]  ;;  %v7686_v4 = vld [vmem:[#allocation25_spill] sm:$0xff] }
 0x5bf   : > { %v3389_v37 = vpop.permute.xlu0 %3388  ;;  %4502 = vmatprep.subr.bf16.mxu0 %v4501_v25  ;;  %v3311_v35 = vpop.permute.xlu1 %3310  ;;  %v4503_v6 = vpack.c.bf16 %v7674_v51, %v7673_v44  ;;  %v3415_v36 = vsel %vm2337_vm9, %v6872_v19, %v7675_v41  ;;  %v3322_v2 = vsel %vm2264_vm10, %v3309_v29, %v6717_v21  ;;  %v4541_v42 = vpack.c.bf16 %v3271_v61, %v3263_v50  ;;  %v7677_v19 = vld [vmem:[#allocation93_spill] sm:$0xff]  ;;  %v7685_v50 = vld [vmem:[#allocation22_spill] sm:$0xff]  ;;  %v4604_v51 = vld [vmem:[%s7311_s5 + $0x60] ss:$0 sm:$0xff] }
 0x5c0   : > { %4538 = vmatprep.subr.bf16.mxu1 %v7671_v54  ;;  %v3323_v10 = vsel %vm2264_vm10, %v3311_v35, %v6723_v27  ;;  %v3260_v34 = vmul.f32 %v3244_v48, %v7672_v13  ;;  %v3325_v5 = vsel %vm2264_vm10, %v6936_v38, %v3311_v35  ;;  %v4505_v31 = vpack.c.bf16 %v3269_v33, %v3261_v40  ;;  %v7688_v54 = vld [vmem:[#allocation95_spill] sm:$0xff]  ;;  %v4603_v35 = vld [vmem:[%s7311_s5 + $0x70] ss:$0 sm:$0xff] }
 0x5c1   : > { %v3349_v16 = vmul.f32 %v3323_v10, %v7676_v8  ;;  %4540 = vmatpush1.bf16.msra.mxu1 %v4539_v15  ;;  %v3414_v21 = vsel %vm2337_vm9, %v6845_v43, %v7677_v19  ;;  %v4545_v27 = vpack.c.bf16 %v3351_v7, %v3343_v45  ;;  %v3431_v1 = vmul.f32 %v3415_v36, %v7678_v18  ;;  %v7679_v43 = vld [vmem:[#allocation56_spill] sm:$0xff]  ;;  %v7689_v45 = vld [vmem:[#allocation19_spill] sm:$0xff]  ;;  %v7690_v36 = vld [vmem:[#allocation97_spill] sm:$0xff] }
 0x5c2   : > { %4504 = vmatpush1.bf16.msra.mxu0 %v4503_v6  ;;  %4542 = vmatprep.subr.bf16.mxu1 %v4541_v42  ;;  %v3324_v0 = vsel %vm2264_vm10, %v6904_v30, %v3309_v29  ;;  %v3341_v38 = vmul.f32 %v3322_v2, %v7676_v8  ;;  %v4507_v53 = vpack.c.bf16 %v3268_v39, %v3260_v34  ;;  %v4605_v10 = vld [vmem:[%s7311_s5 + $0x78] ss:$0 sm:$0xff]  ;;  %v7691_v8 = vld [vmem:[#allocation88_spill] sm:$0xff] }
 0x5c3   : > { %v3469_v55 = vpop.permute.xlu0 %3468  ;;  %4506 = vmatprep.subr.bf16.mxu0 %v4505_v31  ;;  %v3391_v58 = vpop.permute.xlu1 %3390  ;;  %v3402_v56 = vsel %vm2337_vm9, %v3389_v37, %v6721_v24  ;;  %v3348_v61 = vmul.f32 %v3325_v5, %v7679_v43  ;;  %v3423_v30 = vmul.f32 %v3414_v21, %v7678_v18  ;;  %v3404_v29 = vsel %vm2337_vm9, %v6934_v20, %v3389_v37  ;;  %v7694_v18 = vld [vmem:[#allocation85_spill] sm:$0xff] }
 0x5c4   : > { %v3403_v26 = vsel %vm2337_vm9, %v3391_v58, %v6727_v49  ;;  %v3405_v60 = vsel %vm2337_vm9, %v6966_v63, %v3391_v58  ;;  %v7681_v24 = vpack.c.bf16 %v6837_v47, %v6834_v57  ;;  %v4509_v11 = vpack.c.bf16 %v3349_v16, %v3341_v38  ;;  %v7684_v47 = vld [vmem:[#allocation16_spill] sm:$0xff]  ;;  %v7692_v16 = vld [vmem:[#allocation17_spill] sm:$0xff] }
 0x5c5   : > { %v3429_v3 = vmul.f32 %v3403_v26, %v7680_v62  ;;  %v3340_v28 = vmul.f32 %v3324_v0, %v7679_v43  ;;  %v3421_v63 = vmul.f32 %v3402_v56, %v7680_v62  ;;  %v3428_v59 = vmul.f32 %v3405_v60, %v7682_v46 }
 0x5c6   : > { %4544 = vmatpush1.bf16.msra.mxu1 %v7681_v24  ;;  %4508 = vmatpush1.bf16.msra.mxu0 %v4507_v53  ;;  %v4549_v32 = vpack.c.bf16 %v3431_v1, %v3423_v30  ;;  %v3420_v20 = vmul.f32 %v3404_v29, %v7682_v46  ;;  %v3482_v57 = vsel %vm2410_vm11, %v3469_v55, %v7683_v9 }
 0x5c7   : > { %4546 = vmatprep.subr.bf16.mxu1 %v4545_v27  ;;  %v3477_v49 = vpop.permute.xlu0 %3476  ;;  %4510 = vmatprep.subr.bf16.mxu0 %v4509_v11  ;;  %v3471_v17 = vpop.permute.xlu1 %3470  ;;  %v4511_v33 = vpack.c.bf16 %v3348_v61, %v3340_v28  ;;  %v7687_v7 = vpack.c.bf16 %v7685_v50, %v7686_v4  ;;  %v4513_v48 = vpack.c.bf16 %v3429_v3, %v3421_v63 }
 0x5c8   : > { %v3483_v52 = vsel %vm2410_vm11, %v3471_v17, %v7684_v47  ;;  %v3480_v25 = vsel %vm2410_vm11, %v7683_v9, %v3477_v49  ;;  %v3485_v22 = vsel %vm2410_vm11, %v7000_v14, %v3471_v17  ;;  %v3494_v37 = vsel %vm2410_vm11, %v3477_v49, %v7688_v54 }
 0x5c9   : > { %v3509_v15 = vmul.f32 %v4602_v12, %v3483_v52  ;;  %v3484_v14 = vsel %vm2410_vm11, %v7689_v45, %v3469_v55  ;;  %v3501_v40 = vmul.f32 %v4602_v12, %v3482_v57  ;;  %v4515_v13 = vpack.c.bf16 %v3428_v59, %v3420_v20 }
 0x5ca   : > { %4548 = vmatpush1.bf16.msra.mxu1 %v7687_v7  ;;  %4512 = vmatpush1.bf16.msra.mxu0 %v4511_v33  ;;  %v3502_v44 = vmul.f32 %v4603_v35, %v3480_v25  ;;  %v3508_v6 = vmul.f32 %v4604_v51, %v3485_v22  ;;  %v3503_v42 = vmul.f32 %v4605_v10, %v3494_v37 }
 0x5cb   : > { %4550 = vmatprep.subr.bf16.mxu1 %v4549_v32  ;;  %4514 = vmatprep.subr.bf16.mxu0 %v4513_v48  ;;  %v3479_v39 = vpop.permute.xlu1 %3478  ;;  %v7693_v31 = vpack.c.bf16 %v7691_v8, %v7692_v16  ;;  %v4517_v19 = vpack.c.bf16 %v3509_v15, %v3501_v40  ;;  %v3500_v21 = vmul.f32 %v4604_v51, %v3484_v14 }
 0x5cc   : > { %v3481_v41 = vsel %vm2410_vm11, %v7684_v47, %v3479_v39  ;;  %v3495_v2 = vsel %vm2410_vm11, %v3479_v39, %v7690_v36 }
 0x5cd   : > { %v3510_v34 = vmul.f32 %v4603_v35, %v3481_v41  ;;  %v3511_v5 = vmul.f32 %v4605_v10, %v3495_v2  ;;  %v4519_v23 = vpack.c.bf16 %v3508_v6, %v3500_v21 }
 0x5ce   : > { %4552 = vmatpush1.bf16.msra.mxu1 %v7693_v31  ;;  %4516 = vmatpush1.bf16.msra.mxu0 %v4515_v13 }
 0x5cf   : > { %v4555_v55 = vpack.c.bf16 %v3510_v34, %v3502_v44  ;;  %4518 = vmatprep.subr.bf16.mxu0 %v4517_v19  ;;  %v4553_v27 = vpack.c.bf16 %v3511_v5, %v3503_v42 }
 0x5d1   : > { %4554 = vmatprep.subr.bf16.mxu1 %v4553_v27 }
 0x5d2   : > { %4520 = vmatpush1.bf16.msra.mxu0 %v4519_v23  ;;  %4556 = vmatpush1.bf16.msra.mxu1 %v4555_v55 }
 0x5d5   : > { %3884 = vmatmul.mubr.f32.vlgmr.msra.gmra.mrb[34].mxu0 %v7694_v18  ;;  %3955 = vmatmul.mubr.f32.vlgmr.msra.gmra.mrb[34].mxu1 %v7694_v18 }
 0x66b   : > { %v3743_v1 = vpop.f32.mrb[32].mxu0 }
 0x66c   : > { %v3961_v0 = vmax.f32 %v3743_v1, 0.0  ;;  %v3745_v38 = vpop.f32.mrb[33].mxu0 }
 0x66d   : > { %v3962_v53 = vmax.f32 %v3745_v38, 0.0 }
 0x66e   : > { %3969 = vst [vmem:[%s281_s29] sm:$0xff] %v3961_v0 }
 0x66f   : > { %3970 = vst [vmem:[%s281_s29 + $0x8] sm:$0xff] %v3962_v53 }
 0x674   : > { %v3814_v58 = vpop.f32.mrb[32].mxu1 }
 0x675   : > { %v3963_v56 = vmax.f32 %v3814_v58, 0.0  ;;  %v3816_v43 = vpop.f32.mrb[33].mxu1 }
 0x676   : > { %v3964_v61 = vmax.f32 %v3816_v43, 0.0 }
 0x677   : > { %3971 = vst [vmem:[%s281_s29 + $0x10] sm:$0xff] %v3963_v56 }
 0x678   : > { %3972 = vst [vmem:[%s281_s29 + $0x18] sm:$0xff] %v3964_v61 }
 0x6a8   : > { %v3885_v26 = vpop.f32.mrb[34].mxu0  ;;  %v3956_v60 = vpop.f32.mrb[34].mxu1 }
 0x6a9   : > { %v3965_v30 = vmax.f32 %v3885_v26, 0.0  ;;  %v3967_v29 = vmax.f32 %v3956_v60, 0.0  ;;  %v3887_v62 = vpop.f32.mrb[35].mxu0  ;;  %v3958_v3 = vpop.f32.mrb[35].mxu1 }
 0x6aa   : > { %v3966_v24 = vmax.f32 %v3887_v62, 0.0  ;;  %v3968_v11 = vmax.f32 %v3958_v3, 0.0 }
 0x6ab   : > { %3973 = vst [vmem:[%s281_s29 + $0x20] sm:$0xff] %v3965_v30  ;;  %3975 = vst [vmem:[%s281_s29 + $0x30] sm:$0xff] %v3967_v29 }
 0x6ac   : > { %3974 = vst [vmem:[%s281_s29 + $0x28] sm:$0xff] %v3966_v24  ;;  %3976 = vst [vmem:[%s281_s29 + $0x38] sm:$0xff] %v3968_v11 }
 0x6ad PF: > { %s18_s21 = sadd.s32 1, %s4676_s21  }
 0x6ae   : > { %p15_p5 = scmp.ge.s32.totalorder %s18_s21, 4  }
 0x6b0   :  { %17 = sbr.rel (!%p15_p5) target bundleno = 2 (0x2), region = 83 }
 0x6b7   :  { %3998 = vsyncpa [#allocation5], 1 }
 0x6b8   :  { %4000 = vsyncpa [#allocation5 + $0x1], 1 }
 0x6b9   :  { %4001 = vsyncpa [#allocation7], 1 }

</bundles_post_ra>
